<compile_context>
chip_gen: v6e
topology: v6e:2x2x1
jax: 0.10.0
libtpu: 0.0.40
codegen_flags: <defaults>
</compile_context>

<pallas_src>
import math
import functools

import jax
import jax.numpy as jnp
from jax.experimental import pallas as pl
from jax.experimental.pallas import tpu as pltpu


# --------------------------------------------------------------------------- helpers
def _matmul_nt(a, b):
    """a @ b.T on the MXU (contract last dims), accumulate in f32."""
    return jax.lax.dot_general(
        a, b, (((1,), (1,)), ((), ())), preferred_element_type=jnp.float32)


def _erf(x):
    # Abramowitz & Stegun 7.1.26 rational approximation (max abs err ~1.5e-7),
    # built only from exp/mul/add/select so it lowers cleanly in Mosaic
    # (exp goes to the EUP slot, the polynomial to the VPU).
    a1, a2, a3, a4, a5 = 0.254829592, -0.284496736, 1.421413741, -1.453152027, 1.061405429
    p = 0.3275911
    ax = jnp.abs(x)
    t = 1.0 / (1.0 + p * ax)
    poly = ((((a5 * t + a4) * t + a3) * t + a2) * t + a1) * t
    y = 1.0 - poly * jnp.exp(-ax * ax)
    return jnp.where(x >= 0.0, y, -y)


def _gelu(x):
    # exact (erf-based) GELU, matching torch.nn.GELU() default
    return 0.5 * x * (1.0 + _erf(x * 0.7071067811865476))


def _layer_norm(x, g, b, eps=1e-5):
    mu = jnp.mean(x, axis=-1, keepdims=True)
    var = jnp.mean(jnp.square(x - mu), axis=-1, keepdims=True)
    return (x - mu) * jax.lax.rsqrt(var + eps) * g + b


# --------------------------------------------------------------------------- fused forward kernel
# per-layer ref order (16 refs):
#   0 wq (nh,hd,H)   1 wk   2 wv   3 bq (nh,1,hd)   4 bk   5 bv
#   6 woT (nh,hd,H)  7 bo (1,H)
#   8 l1w (H,H)   9 l1b (1,H)   10 l2w (H,H)   11 l2b (1,H)
#   12 g1 (1,H)  13 be1 (1,H)   14 g2 (1,H)    15 be2 (1,H)
def _encoder_body(x, p, nhead):
    (wq, wk, wv, bq, bk, bv, woT, bo,
     l1w, l1b, l2w, l2b, g1, be1, g2, be2) = p
    H = x.shape[-1]
    hd = H // nhead
    scale = 1.0 / math.sqrt(hd)

    # --- multi-head self-attention; out_proj folded into the head loop ---
    acc = None
    for h in range(nhead):                        # static unroll; ref[h] is a free major-axis offset
        qh = _matmul_nt(x, wq[h]) + bq[h]         # (S, hd)
        kh = _matmul_nt(x, wk[h]) + bk[h]         # (S, hd)
        vh = _matmul_nt(x, wv[h]) + bv[h]         # (S, hd)
        s = _matmul_nt(qh * scale, kh)            # (S, S)
        s = s - jnp.max(s, axis=-1, keepdims=True)
        e = jnp.exp(s)
        pr = e / jnp.sum(e, axis=-1, keepdims=True)                         # softmax over keys
        ctx = jnp.dot(pr, vh, preferred_element_type=jnp.float32)           # (S, hd)
        contrib = jnp.dot(ctx, woT[h], preferred_element_type=jnp.float32)  # (S, H) per-head out_proj
        acc = contrib if acc is None else acc + contrib
    attn = acc + bo[...]

    # --- custom encoder-layer body (matches the nonstandard reference) ---
    src = x + attn                                # src + dropout1(src2)
    ln1 = _layer_norm(src, g1[...], be1[...])     # norm1
    ff = _matmul_nt(ln1, l1w[...]) + l1b[...]     # linear1
    act = _gelu(ff)                               # GELU
    src2 = _matmul_nt(act, l2w[...]) + l2b[...]   # linear2
    src = ff + src2                               # residual on linear1 output
    return _layer_norm(src, g2[...], be2[...])    # norm2


def _fused_forward_kernel(*refs, nhead):
    x_ref, w0_ref, b0_ref = refs[0], refs[1], refs[2]
    layer0 = refs[3:19]
    layer1 = refs[19:35]
    wf_ref, bf_ref = refs[35], refs[36]
    o_ref = refs[37]

    # input projection:  (S, Din) @ (H, Din)^T + b0  -> (S, H)
    h = _matmul_nt(x_ref[...], w0_ref[...]) + b0_ref[...]
    # two transformer encoder layers
    h = _encoder_body(h, layer0, nhead)
    h = _encoder_body(h, layer1, nhead)
    # score head: mean over seq first (sublane reduce), then a single dot with wf
    hm = jnp.mean(h, axis=0, keepdims=True)                                  # (1, H)
    score = jnp.sum(hm * wf_ref[...], axis=-1, keepdims=True) + bf_ref[...]  # (1, 1)
    o_ref[...] = jnp.broadcast_to(score, o_ref.shape).astype(o_ref.dtype)    # lane-dense store


# --------------------------------------------------------------------------- wrapper
def _restack_layer(p, nhead):
    """Restack MHA weights onto a leading head axis (wrapper-side, one-time)."""
    H = p['out_proj_w'].shape[0]
    hd = H // nhead
    ipw, ipb = p['in_proj_w'], p['in_proj_b']
    wq = ipw[0:H].reshape(nhead, hd, H)
    wk = ipw[H:2 * H].reshape(nhead, hd, H)
    wv = ipw[2 * H:3 * H].reshape(nhead, hd, H)
    bq = ipb[0:H].reshape(nhead, 1, hd)
    bk = ipb[H:2 * H].reshape(nhead, 1, hd)
    bv = ipb[2 * H:3 * H].reshape(nhead, 1, hd)
    woT = p['out_proj_w'].T.reshape(nhead, hd, H)   # rows h*hd+d of Wo^T, per head
    bo = p['out_proj_b'].reshape(1, H)
    return [wq, wk, wv, bq, bk, bv, woT, bo,
            p['l1w'], p['l1b'].reshape(1, H),
            p['l2w'], p['l2b'].reshape(1, H),
            p['g1'].reshape(1, H), p['be1'].reshape(1, H),
            p['g2'].reshape(1, H), p['be2'].reshape(1, H)]


def align_module_forward(x, params, nhead):
    B, S, Din = x.shape
    H = params['w0'].shape[0]

    args = [x, params['w0'], params['b0'].reshape(1, H)]
    args += _restack_layer(params['layer0'], nhead)
    args += _restack_layer(params['layer1'], nhead)
    args += [params['wf'], params['bf'].reshape(1, 1)]

    # batch-tiled input; all weights use a constant block index -> fetched once,
    # resident in VMEM across the whole grid.
    in_specs = [pl.BlockSpec((None, S, Din), lambda b: (b, 0, 0))]
    for a in args[1:]:
        zeros = (0,) * a.ndim
        in_specs.append(pl.BlockSpec(a.shape, lambda b, _z=zeros: _z))

    kernel = functools.partial(_fused_forward_kernel, nhead=nhead)
    score = pl.pallas_call(
        kernel,
        out_shape=jax.ShapeDtypeStruct((B, 1, 128), jnp.float32),
        grid=(B,),
        in_specs=in_specs,
        out_specs=pl.BlockSpec((None, 1, 128), lambda b: (b, 0, 0)),
        compiler_params=pltpu.CompilerParams(
            dimension_semantics=("parallel",)),   # v7x megacore: shard batch across the 2 TCs
    )(*args)
    return score[:, 0, 0]                         # (B,) == final_score


# --------------------------------------------------------------------------- deterministic parameter init
def _init(key, shape, scale=0.1):
    return scale * jax.random.normal(key, shape, dtype=jnp.float32)


def _init_layer(key, H):
    ks = jax.random.split(key, 8)
    return dict(
        in_proj_w=_init(ks[0], (3 * H, H)),
        in_proj_b=_init(ks[1], (3 * H,)),
        out_proj_w=_init(ks[2], (H, H)),
        out_proj_b=_init(ks[3], (H,)),
        l1w=_init(ks[4], (H, H)),
        l1b=_init(ks[5], (H,)),
        l2w=_init(ks[6], (H, H)),
        l2b=_init(ks[7], (H,)),
        g1=jnp.ones((H,), jnp.float32),
        be1=jnp.zeros((H,), jnp.float32),
        g2=jnp.ones((H,), jnp.float32),
        be2=jnp.zeros((H,), jnp.float32),
    )


def init_params(key, input_dim, hid_dim):
    k0, k1, k2, k3, k4, k5 = jax.random.split(key, 6)
    return dict(
        w0=_init(k0, (hid_dim, input_dim)),
        b0=_init(k1, (hid_dim,)),
        layer0=_init_layer(k2, hid_dim),
        layer1=_init_layer(k3, hid_dim),
        wf=_init(k4, (1, hid_dim)),
        bf=_init(k5, (1,)),
    )


# --------------------------------------------------------------------------- pure-JAX reference (correctness check)
def _ref_encoder(x, p, nhead):
    B, S, H = x.shape
    hd = H // nhead
    qkv = x @ p['in_proj_w'].T + p['in_proj_b']
    q, k, v = jnp.split(qkv, 3, axis=-1)
    q = q.reshape(B, S, nhead, hd).transpose(0, 2, 1, 3)
    k = k.reshape(B, S, nhead, hd).transpose(0, 2, 1, 3)
    v = v.reshape(B, S, nhead, hd).transpose(0, 2, 1, 3)
    s = jnp.einsum('bhqd,bhkd->bhqk', q, k) / math.sqrt(hd)
    a = jax.nn.softmax(s, axis=-1)
    o = jnp.einsum('bhqk,bhkd->bhqd', a, v).transpose(0, 2, 1, 3).reshape(B, S, H)
    attn = o @ p['out_proj_w'].T + p['out_proj_b']
    src = x + attn
    ln1 = _layer_norm(src, p['g1'], p['be1'])
    src = ln1 @ p['l1w'].T + p['l1b']
    src2 = jax.nn.gelu(src, approximate=False) @ p['l2w'].T + p['l2b']
    src = src + src2
    return _layer_norm(src, p['g2'], p['be2'])


def reference_forward(x, params, nhead):
    h = x @ params['w0'].T + params['b0']
    h = _ref_encoder(h, params['layer0'], nhead)
    h = _ref_encoder(h, params['layer1'], nhead)
    proj = h @ params['wf'].T + params['bf']                   # (B, S, 1)
    return jnp.mean(proj, axis=(1, 2))


# --------------------------------------------------------------------------- main
if __name__ == "__main__":
    B, S, DIN, HID, NHEAD = 2, 8, 16, 32, 4
    key = jax.random.PRNGKey(0)
    kx, kp = jax.random.split(key)
    x = jax.random.normal(kx, (B, S, DIN), dtype=jnp.float32)
    params = init_params(kp, DIN, HID)

    out = align_module_forward(x, params, NHEAD)
    out = jax.block_until_ready(out)
    assert out.shape == (B,), out.shape

    ref = reference_forward(x, params, NHEAD)
    if not jnp.allclose(out, ref, atol=1e-3, rtol=1e-3):
        raise AssertionError(f"mismatch: pallas={out} ref={ref}")

    print("KERNEL_OK")
</pallas_src>

<mosaic_0001>
module attributes {stable_mosaic.version = 11 : i64} {
  func.func @_fused_forward_kernel(%arg0: i32, %arg1: memref<1x8x16xf32, #tpu.memory_space<vmem>>, %arg2: memref<32x16xf32, #tpu.memory_space<vmem>>, %arg3: memref<1x32xf32, #tpu.memory_space<vmem>>, %arg4: memref<4x8x32xf32, #tpu.memory_space<vmem>>, %arg5: memref<4x8x32xf32, #tpu.memory_space<vmem>>, %arg6: memref<4x8x32xf32, #tpu.memory_space<vmem>>, %arg7: memref<4x1x8xf32, #tpu.memory_space<vmem>>, %arg8: memref<4x1x8xf32, #tpu.memory_space<vmem>>, %arg9: memref<4x1x8xf32, #tpu.memory_space<vmem>>, %arg10: memref<4x8x32xf32, #tpu.memory_space<vmem>>, %arg11: memref<1x32xf32, #tpu.memory_space<vmem>>, %arg12: memref<32x32xf32, #tpu.memory_space<vmem>>, %arg13: memref<1x32xf32, #tpu.memory_space<vmem>>, %arg14: memref<32x32xf32, #tpu.memory_space<vmem>>, %arg15: memref<1x32xf32, #tpu.memory_space<vmem>>, %arg16: memref<1x32xf32, #tpu.memory_space<vmem>>, %arg17: memref<1x32xf32, #tpu.memory_space<vmem>>, %arg18: memref<1x32xf32, #tpu.memory_space<vmem>>, %arg19: memref<1x32xf32, #tpu.memory_space<vmem>>, %arg20: memref<4x8x32xf32, #tpu.memory_space<vmem>>, %arg21: memref<4x8x32xf32, #tpu.memory_space<vmem>>, %arg22: memref<4x8x32xf32, #tpu.memory_space<vmem>>, %arg23: memref<4x1x8xf32, #tpu.memory_space<vmem>>, %arg24: memref<4x1x8xf32, #tpu.memory_space<vmem>>, %arg25: memref<4x1x8xf32, #tpu.memory_space<vmem>>, %arg26: memref<4x8x32xf32, #tpu.memory_space<vmem>>, %arg27: memref<1x32xf32, #tpu.memory_space<vmem>>, %arg28: memref<32x32xf32, #tpu.memory_space<vmem>>, %arg29: memref<1x32xf32, #tpu.memory_space<vmem>>, %arg30: memref<32x32xf32, #tpu.memory_space<vmem>>, %arg31: memref<1x32xf32, #tpu.memory_space<vmem>>, %arg32: memref<1x32xf32, #tpu.memory_space<vmem>>, %arg33: memref<1x32xf32, #tpu.memory_space<vmem>>, %arg34: memref<1x32xf32, #tpu.memory_space<vmem>>, %arg35: memref<1x32xf32, #tpu.memory_space<vmem>>, %arg36: memref<1x32xf32, #tpu.memory_space<vmem>>, %arg37: memref<1x1xf32, #tpu.memory_space<vmem>>, %arg38: memref<1x1x128xf32, #tpu.memory_space<vmem>>) attributes {dimension_semantics = [#tpu.dimension_semantics<parallel>], iteration_bounds = array<i64: 2>, scalar_prefetch = 0 : i64, scratch_operands = 0 : i64, tpu.core_type = #tpu.core_type<tc>, window_params = [{transform_indices = @transform_0, window_bounds = array<i64: 1, 8, 16>}, {pipeline_mode = #tpu.pipeline_mode<synchronous>, transform_indices = @transform_1, window_bounds = array<i64: 32, 16>}, {pipeline_mode = #tpu.pipeline_mode<synchronous>, transform_indices = @transform_2, window_bounds = array<i64: 1, 32>}, {pipeline_mode = #tpu.pipeline_mode<synchronous>, transform_indices = @transform_3, window_bounds = array<i64: 4, 8, 32>}, {pipeline_mode = #tpu.pipeline_mode<synchronous>, transform_indices = @transform_4, window_bounds = array<i64: 4, 8, 32>}, {pipeline_mode = #tpu.pipeline_mode<synchronous>, transform_indices = @transform_5, window_bounds = array<i64: 4, 8, 32>}, {pipeline_mode = #tpu.pipeline_mode<synchronous>, transform_indices = @transform_6, window_bounds = array<i64: 4, 1, 8>}, {pipeline_mode = #tpu.pipeline_mode<synchronous>, transform_indices = @transform_7, window_bounds = array<i64: 4, 1, 8>}, {pipeline_mode = #tpu.pipeline_mode<synchronous>, transform_indices = @transform_8, window_bounds = array<i64: 4, 1, 8>}, {pipeline_mode = #tpu.pipeline_mode<synchronous>, transform_indices = @transform_9, window_bounds = array<i64: 4, 8, 32>}, {pipeline_mode = #tpu.pipeline_mode<synchronous>, transform_indices = @transform_10, window_bounds = array<i64: 1, 32>}, {pipeline_mode = #tpu.pipeline_mode<synchronous>, transform_indices = @transform_11, window_bounds = array<i64: 32, 32>}, {pipeline_mode = #tpu.pipeline_mode<synchronous>, transform_indices = @transform_12, window_bounds = array<i64: 1, 32>}, {pipeline_mode = #tpu.pipeline_mode<synchronous>, transform_indices = @transform_13, window_bounds = array<i64: 32, 32>}, {pipeline_mode = #tpu.pipeline_mode<synchronous>, transform_indices = @transform_14, window_bounds = array<i64: 1, 32>}, {pipeline_mode = #tpu.pipeline_mode<synchronous>, transform_indices = @transform_15, window_bounds = array<i64: 1, 32>}, {pipeline_mode = #tpu.pipeline_mode<synchronous>, transform_indices = @transform_16, window_bounds = array<i64: 1, 32>}, {pipeline_mode = #tpu.pipeline_mode<synchronous>, transform_indices = @transform_17, window_bounds = array<i64: 1, 32>}, {pipeline_mode = #tpu.pipeline_mode<synchronous>, transform_indices = @transform_18, window_bounds = array<i64: 1, 32>}, {pipeline_mode = #tpu.pipeline_mode<synchronous>, transform_indices = @transform_19, window_bounds = array<i64: 4, 8, 32>}, {pipeline_mode = #tpu.pipeline_mode<synchronous>, transform_indices = @transform_20, window_bounds = array<i64: 4, 8, 32>}, {pipeline_mode = #tpu.pipeline_mode<synchronous>, transform_indices = @transform_21, window_bounds = array<i64: 4, 8, 32>}, {pipeline_mode = #tpu.pipeline_mode<synchronous>, transform_indices = @transform_22, window_bounds = array<i64: 4, 1, 8>}, {pipeline_mode = #tpu.pipeline_mode<synchronous>, transform_indices = @transform_23, window_bounds = array<i64: 4, 1, 8>}, {pipeline_mode = #tpu.pipeline_mode<synchronous>, transform_indices = @transform_24, window_bounds = array<i64: 4, 1, 8>}, {pipeline_mode = #tpu.pipeline_mode<synchronous>, transform_indices = @transform_25, window_bounds = array<i64: 4, 8, 32>}, {pipeline_mode = #tpu.pipeline_mode<synchronous>, transform_indices = @transform_26, window_bounds = array<i64: 1, 32>}, {pipeline_mode = #tpu.pipeline_mode<synchronous>, transform_indices = @transform_27, window_bounds = array<i64: 32, 32>}, {pipeline_mode = #tpu.pipeline_mode<synchronous>, transform_indices = @transform_28, window_bounds = array<i64: 1, 32>}, {pipeline_mode = #tpu.pipeline_mode<synchronous>, transform_indices = @transform_29, window_bounds = array<i64: 32, 32>}, {pipeline_mode = #tpu.pipeline_mode<synchronous>, transform_indices = @transform_30, window_bounds = array<i64: 1, 32>}, {pipeline_mode = #tpu.pipeline_mode<synchronous>, transform_indices = @transform_31, window_bounds = array<i64: 1, 32>}, {pipeline_mode = #tpu.pipeline_mode<synchronous>, transform_indices = @transform_32, window_bounds = array<i64: 1, 32>}, {pipeline_mode = #tpu.pipeline_mode<synchronous>, transform_indices = @transform_33, window_bounds = array<i64: 1, 32>}, {pipeline_mode = #tpu.pipeline_mode<synchronous>, transform_indices = @transform_34, window_bounds = array<i64: 1, 32>}, {pipeline_mode = #tpu.pipeline_mode<synchronous>, transform_indices = @transform_35, window_bounds = array<i64: 1, 32>}, {pipeline_mode = #tpu.pipeline_mode<synchronous>, transform_indices = @transform_36, window_bounds = array<i64: 1, 1>}, {transform_indices = @transform_37, window_bounds = array<i64: 1, 1, 128>}]} {
    %c0 = arith.constant 0 : index
    %c0_0 = arith.constant 0 : index
    %c0_1 = arith.constant 0 : index
    %0 = vector.load %arg1[%c0, %c0_0, %c0_1] : memref<1x8x16xf32, #tpu.memory_space<vmem>>, vector<1x8x16xf32>
    %1 = vector.shape_cast %0 : vector<1x8x16xf32> to vector<8x16xf32>
    %c0_2 = arith.constant 0 : index
    %c0_3 = arith.constant 0 : index
    %2 = vector.load %arg2[%c0_2, %c0_3] : memref<32x16xf32, #tpu.memory_space<vmem>>, vector<32x16xf32>
    %cst = arith.constant dense<0.000000e+00> : vector<8x32xf32>
    %3 = tpu.matmul %1, %2, %cst {dimension_numbers = #tpu.dot_dimension_numbers<[1], [1], [0], [0], [0, 0, 1, 0], [], []>} : vector<8x16xf32>, vector<32x16xf32>, vector<8x32xf32> -> vector<8x32xf32>
    %c0_4 = arith.constant 0 : index
    %c0_5 = arith.constant 0 : index
    %4 = vector.load %arg3[%c0_4, %c0_5] : memref<1x32xf32, #tpu.memory_space<vmem>>, vector<1x32xf32>
    %5 = vector.broadcast %4 : vector<1x32xf32> to vector<8x32xf32>
    %6 = arith.addf %3, %5 : vector<8x32xf32>
    %c0_6 = arith.constant 0 : index
    %c0_7 = arith.constant 0 : index
    %c0_8 = arith.constant 0 : index
    %7 = vector.load %arg4[%c0_6, %c0_7, %c0_8] : memref<4x8x32xf32, #tpu.memory_space<vmem>>, vector<1x8x32xf32>
    %8 = vector.shape_cast %7 : vector<1x8x32xf32> to vector<8x32xf32>
    %cst_9 = arith.constant dense<0.000000e+00> : vector<8x8xf32>
    %9 = tpu.matmul %6, %8, %cst_9 {dimension_numbers = #tpu.dot_dimension_numbers<[1], [1], [0], [0], [0, 0, 1, 0], [], []>} : vector<8x32xf32>, vector<8x32xf32>, vector<8x8xf32> -> vector<8x8xf32>
    %c0_10 = arith.constant 0 : index
    %c0_11 = arith.constant 0 : index
    %c0_12 = arith.constant 0 : index
    %10 = vector.load %arg7[%c0_10, %c0_11, %c0_12] : memref<4x1x8xf32, #tpu.memory_space<vmem>>, vector<1x1x8xf32>
    %11 = vector.shape_cast %10 : vector<1x1x8xf32> to vector<1x8xf32>
    %12 = vector.broadcast %11 : vector<1x8xf32> to vector<8x8xf32>
    %13 = arith.addf %9, %12 : vector<8x8xf32>
    %c0_13 = arith.constant 0 : index
    %c0_14 = arith.constant 0 : index
    %c0_15 = arith.constant 0 : index
    %14 = vector.load %arg5[%c0_13, %c0_14, %c0_15] : memref<4x8x32xf32, #tpu.memory_space<vmem>>, vector<1x8x32xf32>
    %15 = vector.shape_cast %14 : vector<1x8x32xf32> to vector<8x32xf32>
    %cst_16 = arith.constant dense<0.000000e+00> : vector<8x8xf32>
    %16 = tpu.matmul %6, %15, %cst_16 {dimension_numbers = #tpu.dot_dimension_numbers<[1], [1], [0], [0], [0, 0, 1, 0], [], []>} : vector<8x32xf32>, vector<8x32xf32>, vector<8x8xf32> -> vector<8x8xf32>
    %c0_17 = arith.constant 0 : index
    %c0_18 = arith.constant 0 : index
    %c0_19 = arith.constant 0 : index
    %17 = vector.load %arg8[%c0_17, %c0_18, %c0_19] : memref<4x1x8xf32, #tpu.memory_space<vmem>>, vector<1x1x8xf32>
    %18 = vector.shape_cast %17 : vector<1x1x8xf32> to vector<1x8xf32>
    %19 = vector.broadcast %18 : vector<1x8xf32> to vector<8x8xf32>
    %20 = arith.addf %16, %19 : vector<8x8xf32>
    %c0_20 = arith.constant 0 : index
    %c0_21 = arith.constant 0 : index
    %c0_22 = arith.constant 0 : index
    %21 = vector.load %arg6[%c0_20, %c0_21, %c0_22] : memref<4x8x32xf32, #tpu.memory_space<vmem>>, vector<1x8x32xf32>
    %22 = vector.shape_cast %21 : vector<1x8x32xf32> to vector<8x32xf32>
    %cst_23 = arith.constant dense<0.000000e+00> : vector<8x8xf32>
    %23 = tpu.matmul %6, %22, %cst_23 {dimension_numbers = #tpu.dot_dimension_numbers<[1], [1], [0], [0], [0, 0, 1, 0], [], []>} : vector<8x32xf32>, vector<8x32xf32>, vector<8x8xf32> -> vector<8x8xf32>
    %c0_24 = arith.constant 0 : index
    %c0_25 = arith.constant 0 : index
    %c0_26 = arith.constant 0 : index
    %24 = vector.load %arg9[%c0_24, %c0_25, %c0_26] : memref<4x1x8xf32, #tpu.memory_space<vmem>>, vector<1x1x8xf32>
    %25 = vector.shape_cast %24 : vector<1x1x8xf32> to vector<1x8xf32>
    %26 = vector.broadcast %25 : vector<1x8xf32> to vector<8x8xf32>
    %27 = arith.addf %23, %26 : vector<8x8xf32>
    %cst_27 = arith.constant 0.353553385 : f32
    %28 = vector.broadcast %cst_27 : f32 to vector<8x8xf32>
    %29 = arith.mulf %13, %28 : vector<8x8xf32>
    %cst_28 = arith.constant dense<0.000000e+00> : vector<8x8xf32>
    %30 = tpu.matmul %29, %20, %cst_28 {dimension_numbers = #tpu.dot_dimension_numbers<[1], [1], [0], [0], [0, 0, 1, 0], [], []>} : vector<8x8xf32>, vector<8x8xf32>, vector<8x8xf32> -> vector<8x8xf32>
    %cst_29 = arith.constant dense<0xFF800000> : vector<8xf32>
    %31 = vector.multi_reduction <maximumf>, %30, %cst_29 [1] : vector<8x8xf32> to vector<8xf32>
    %32 = vector.shape_cast %31 : vector<8xf32> to vector<8x1xf32>
    %33 = vector.broadcast %32 : vector<8x1xf32> to vector<8x8xf32>
    %34 = arith.subf %30, %33 : vector<8x8xf32>
    %35 = math.exp %34 : vector<8x8xf32>
    %cst_30 = arith.constant dense<0.000000e+00> : vector<8xf32>
    %36 = vector.multi_reduction <add>, %35, %cst_30 [1] : vector<8x8xf32> to vector<8xf32>
    %37 = vector.shape_cast %36 : vector<8xf32> to vector<8x1xf32>
    %38 = vector.broadcast %37 : vector<8x1xf32> to vector<8x8xf32>
    %39 = arith.divf %35, %38 : vector<8x8xf32>
    %cst_31 = arith.constant dense<0.000000e+00> : vector<8x8xf32>
    %40 = tpu.matmul %39, %27, %cst_31 {dimension_numbers = #tpu.dot_dimension_numbers<[1], [0], [0], [1], [0, 0, 1, 1], [], []>} : vector<8x8xf32>, vector<8x8xf32>, vector<8x8xf32> -> vector<8x8xf32>
    %c0_32 = arith.constant 0 : index
    %c0_33 = arith.constant 0 : index
    %c0_34 = arith.constant 0 : index
    %41 = vector.load %arg10[%c0_32, %c0_33, %c0_34] : memref<4x8x32xf32, #tpu.memory_space<vmem>>, vector<1x8x32xf32>
    %42 = vector.shape_cast %41 : vector<1x8x32xf32> to vector<8x32xf32>
    %cst_35 = arith.constant dense<0.000000e+00> : vector<8x32xf32>
    %43 = tpu.matmul %40, %42, %cst_35 {dimension_numbers = #tpu.dot_dimension_numbers<[1], [0], [0], [1], [0, 0, 1, 1], [], []>} : vector<8x8xf32>, vector<8x32xf32>, vector<8x32xf32> -> vector<8x32xf32>
    %c1 = arith.constant 1 : index
    %c0_36 = arith.constant 0 : index
    %c0_37 = arith.constant 0 : index
    %44 = vector.load %arg4[%c1, %c0_36, %c0_37] : memref<4x8x32xf32, #tpu.memory_space<vmem>>, vector<1x8x32xf32>
    %45 = vector.shape_cast %44 : vector<1x8x32xf32> to vector<8x32xf32>
    %cst_38 = arith.constant dense<0.000000e+00> : vector<8x8xf32>
    %46 = tpu.matmul %6, %45, %cst_38 {dimension_numbers = #tpu.dot_dimension_numbers<[1], [1], [0], [0], [0, 0, 1, 0], [], []>} : vector<8x32xf32>, vector<8x32xf32>, vector<8x8xf32> -> vector<8x8xf32>
    %c1_39 = arith.constant 1 : index
    %c0_40 = arith.constant 0 : index
    %c0_41 = arith.constant 0 : index
    %47 = vector.load %arg7[%c1_39, %c0_40, %c0_41] : memref<4x1x8xf32, #tpu.memory_space<vmem>>, vector<1x1x8xf32>
    %48 = vector.shape_cast %47 : vector<1x1x8xf32> to vector<1x8xf32>
    %49 = vector.broadcast %48 : vector<1x8xf32> to vector<8x8xf32>
    %50 = arith.addf %46, %49 : vector<8x8xf32>
    %c1_42 = arith.constant 1 : index
    %c0_43 = arith.constant 0 : index
    %c0_44 = arith.constant 0 : index
    %51 = vector.load %arg5[%c1_42, %c0_43, %c0_44] : memref<4x8x32xf32, #tpu.memory_space<vmem>>, vector<1x8x32xf32>
    %52 = vector.shape_cast %51 : vector<1x8x32xf32> to vector<8x32xf32>
    %cst_45 = arith.constant dense<0.000000e+00> : vector<8x8xf32>
    %53 = tpu.matmul %6, %52, %cst_45 {dimension_numbers = #tpu.dot_dimension_numbers<[1], [1], [0], [0], [0, 0, 1, 0], [], []>} : vector<8x32xf32>, vector<8x32xf32>, vector<8x8xf32> -> vector<8x8xf32>
    %c1_46 = arith.constant 1 : index
    %c0_47 = arith.constant 0 : index
    %c0_48 = arith.constant 0 : index
    %54 = vector.load %arg8[%c1_46, %c0_47, %c0_48] : memref<4x1x8xf32, #tpu.memory_space<vmem>>, vector<1x1x8xf32>
    %55 = vector.shape_cast %54 : vector<1x1x8xf32> to vector<1x8xf32>
    %56 = vector.broadcast %55 : vector<1x8xf32> to vector<8x8xf32>
    %57 = arith.addf %53, %56 : vector<8x8xf32>
    %c1_49 = arith.constant 1 : index
    %c0_50 = arith.constant 0 : index
    %c0_51 = arith.constant 0 : index
    %58 = vector.load %arg6[%c1_49, %c0_50, %c0_51] : memref<4x8x32xf32, #tpu.memory_space<vmem>>, vector<1x8x32xf32>
    %59 = vector.shape_cast %58 : vector<1x8x32xf32> to vector<8x32xf32>
    %cst_52 = arith.constant dense<0.000000e+00> : vector<8x8xf32>
    %60 = tpu.matmul %6, %59, %cst_52 {dimension_numbers = #tpu.dot_dimension_numbers<[1], [1], [0], [0], [0, 0, 1, 0], [], []>} : vector<8x32xf32>, vector<8x32xf32>, vector<8x8xf32> -> vector<8x8xf32>
    %c1_53 = arith.constant 1 : index
    %c0_54 = arith.constant 0 : index
    %c0_55 = arith.constant 0 : index
    %61 = vector.load %arg9[%c1_53, %c0_54, %c0_55] : memref<4x1x8xf32, #tpu.memory_space<vmem>>, vector<1x1x8xf32>
    %62 = vector.shape_cast %61 : vector<1x1x8xf32> to vector<1x8xf32>
    %63 = vector.broadcast %62 : vector<1x8xf32> to vector<8x8xf32>
    %64 = arith.addf %60, %63 : vector<8x8xf32>
    %cst_56 = arith.constant 0.353553385 : f32
    %65 = vector.broadcast %cst_56 : f32 to vector<8x8xf32>
    %66 = arith.mulf %50, %65 : vector<8x8xf32>
    %cst_57 = arith.constant dense<0.000000e+00> : vector<8x8xf32>
    %67 = tpu.matmul %66, %57, %cst_57 {dimension_numbers = #tpu.dot_dimension_numbers<[1], [1], [0], [0], [0, 0, 1, 0], [], []>} : vector<8x8xf32>, vector<8x8xf32>, vector<8x8xf32> -> vector<8x8xf32>
    %cst_58 = arith.constant dense<0xFF800000> : vector<8xf32>
    %68 = vector.multi_reduction <maximumf>, %67, %cst_58 [1] : vector<8x8xf32> to vector<8xf32>
    %69 = vector.shape_cast %68 : vector<8xf32> to vector<8x1xf32>
    %70 = vector.broadcast %69 : vector<8x1xf32> to vector<8x8xf32>
    %71 = arith.subf %67, %70 : vector<8x8xf32>
    %72 = math.exp %71 : vector<8x8xf32>
    %cst_59 = arith.constant dense<0.000000e+00> : vector<8xf32>
    %73 = vector.multi_reduction <add>, %72, %cst_59 [1] : vector<8x8xf32> to vector<8xf32>
    %74 = vector.shape_cast %73 : vector<8xf32> to vector<8x1xf32>
    %75 = vector.broadcast %74 : vector<8x1xf32> to vector<8x8xf32>
    %76 = arith.divf %72, %75 : vector<8x8xf32>
    %cst_60 = arith.constant dense<0.000000e+00> : vector<8x8xf32>
    %77 = tpu.matmul %76, %64, %cst_60 {dimension_numbers = #tpu.dot_dimension_numbers<[1], [0], [0], [1], [0, 0, 1, 1], [], []>} : vector<8x8xf32>, vector<8x8xf32>, vector<8x8xf32> -> vector<8x8xf32>
    %c1_61 = arith.constant 1 : index
    %c0_62 = arith.constant 0 : index
    %c0_63 = arith.constant 0 : index
    %78 = vector.load %arg10[%c1_61, %c0_62, %c0_63] : memref<4x8x32xf32, #tpu.memory_space<vmem>>, vector<1x8x32xf32>
    %79 = vector.shape_cast %78 : vector<1x8x32xf32> to vector<8x32xf32>
    %cst_64 = arith.constant dense<0.000000e+00> : vector<8x32xf32>
    %80 = tpu.matmul %77, %79, %cst_64 {dimension_numbers = #tpu.dot_dimension_numbers<[1], [0], [0], [1], [0, 0, 1, 1], [], []>} : vector<8x8xf32>, vector<8x32xf32>, vector<8x32xf32> -> vector<8x32xf32>
    %81 = arith.addf %43, %80 : vector<8x32xf32>
    %c2 = arith.constant 2 : index
    %c0_65 = arith.constant 0 : index
    %c0_66 = arith.constant 0 : index
    %82 = vector.load %arg4[%c2, %c0_65, %c0_66] : memref<4x8x32xf32, #tpu.memory_space<vmem>>, vector<1x8x32xf32>
    %83 = vector.shape_cast %82 : vector<1x8x32xf32> to vector<8x32xf32>
    %cst_67 = arith.constant dense<0.000000e+00> : vector<8x8xf32>
    %84 = tpu.matmul %6, %83, %cst_67 {dimension_numbers = #tpu.dot_dimension_numbers<[1], [1], [0], [0], [0, 0, 1, 0], [], []>} : vector<8x32xf32>, vector<8x32xf32>, vector<8x8xf32> -> vector<8x8xf32>
    %c2_68 = arith.constant 2 : index
    %c0_69 = arith.constant 0 : index
    %c0_70 = arith.constant 0 : index
    %85 = vector.load %arg7[%c2_68, %c0_69, %c0_70] : memref<4x1x8xf32, #tpu.memory_space<vmem>>, vector<1x1x8xf32>
    %86 = vector.shape_cast %85 : vector<1x1x8xf32> to vector<1x8xf32>
    %87 = vector.broadcast %86 : vector<1x8xf32> to vector<8x8xf32>
    %88 = arith.addf %84, %87 : vector<8x8xf32>
    %c2_71 = arith.constant 2 : index
    %c0_72 = arith.constant 0 : index
    %c0_73 = arith.constant 0 : index
    %89 = vector.load %arg5[%c2_71, %c0_72, %c0_73] : memref<4x8x32xf32, #tpu.memory_space<vmem>>, vector<1x8x32xf32>
    %90 = vector.shape_cast %89 : vector<1x8x32xf32> to vector<8x32xf32>
    %cst_74 = arith.constant dense<0.000000e+00> : vector<8x8xf32>
    %91 = tpu.matmul %6, %90, %cst_74 {dimension_numbers = #tpu.dot_dimension_numbers<[1], [1], [0], [0], [0, 0, 1, 0], [], []>} : vector<8x32xf32>, vector<8x32xf32>, vector<8x8xf32> -> vector<8x8xf32>
    %c2_75 = arith.constant 2 : index
    %c0_76 = arith.constant 0 : index
    %c0_77 = arith.constant 0 : index
    %92 = vector.load %arg8[%c2_75, %c0_76, %c0_77] : memref<4x1x8xf32, #tpu.memory_space<vmem>>, vector<1x1x8xf32>
    %93 = vector.shape_cast %92 : vector<1x1x8xf32> to vector<1x8xf32>
    %94 = vector.broadcast %93 : vector<1x8xf32> to vector<8x8xf32>
    %95 = arith.addf %91, %94 : vector<8x8xf32>
    %c2_78 = arith.constant 2 : index
    %c0_79 = arith.constant 0 : index
    %c0_80 = arith.constant 0 : index
    %96 = vector.load %arg6[%c2_78, %c0_79, %c0_80] : memref<4x8x32xf32, #tpu.memory_space<vmem>>, vector<1x8x32xf32>
    %97 = vector.shape_cast %96 : vector<1x8x32xf32> to vector<8x32xf32>
    %cst_81 = arith.constant dense<0.000000e+00> : vector<8x8xf32>
    %98 = tpu.matmul %6, %97, %cst_81 {dimension_numbers = #tpu.dot_dimension_numbers<[1], [1], [0], [0], [0, 0, 1, 0], [], []>} : vector<8x32xf32>, vector<8x32xf32>, vector<8x8xf32> -> vector<8x8xf32>
    %c2_82 = arith.constant 2 : index
    %c0_83 = arith.constant 0 : index
    %c0_84 = arith.constant 0 : index
    %99 = vector.load %arg9[%c2_82, %c0_83, %c0_84] : memref<4x1x8xf32, #tpu.memory_space<vmem>>, vector<1x1x8xf32>
    %100 = vector.shape_cast %99 : vector<1x1x8xf32> to vector<1x8xf32>
    %101 = vector.broadcast %100 : vector<1x8xf32> to vector<8x8xf32>
    %102 = arith.addf %98, %101 : vector<8x8xf32>
    %cst_85 = arith.constant 0.353553385 : f32
    %103 = vector.broadcast %cst_85 : f32 to vector<8x8xf32>
    %104 = arith.mulf %88, %103 : vector<8x8xf32>
    %cst_86 = arith.constant dense<0.000000e+00> : vector<8x8xf32>
    %105 = tpu.matmul %104, %95, %cst_86 {dimension_numbers = #tpu.dot_dimension_numbers<[1], [1], [0], [0], [0, 0, 1, 0], [], []>} : vector<8x8xf32>, vector<8x8xf32>, vector<8x8xf32> -> vector<8x8xf32>
    %cst_87 = arith.constant dense<0xFF800000> : vector<8xf32>
    %106 = vector.multi_reduction <maximumf>, %105, %cst_87 [1] : vector<8x8xf32> to vector<8xf32>
    %107 = vector.shape_cast %106 : vector<8xf32> to vector<8x1xf32>
    %108 = vector.broadcast %107 : vector<8x1xf32> to vector<8x8xf32>
    %109 = arith.subf %105, %108 : vector<8x8xf32>
    %110 = math.exp %109 : vector<8x8xf32>
    %cst_88 = arith.constant dense<0.000000e+00> : vector<8xf32>
    %111 = vector.multi_reduction <add>, %110, %cst_88 [1] : vector<8x8xf32> to vector<8xf32>
    %112 = vector.shape_cast %111 : vector<8xf32> to vector<8x1xf32>
    %113 = vector.broadcast %112 : vector<8x1xf32> to vector<8x8xf32>
    %114 = arith.divf %110, %113 : vector<8x8xf32>
    %cst_89 = arith.constant dense<0.000000e+00> : vector<8x8xf32>
    %115 = tpu.matmul %114, %102, %cst_89 {dimension_numbers = #tpu.dot_dimension_numbers<[1], [0], [0], [1], [0, 0, 1, 1], [], []>} : vector<8x8xf32>, vector<8x8xf32>, vector<8x8xf32> -> vector<8x8xf32>
    %c2_90 = arith.constant 2 : index
    %c0_91 = arith.constant 0 : index
    %c0_92 = arith.constant 0 : index
    %116 = vector.load %arg10[%c2_90, %c0_91, %c0_92] : memref<4x8x32xf32, #tpu.memory_space<vmem>>, vector<1x8x32xf32>
    %117 = vector.shape_cast %116 : vector<1x8x32xf32> to vector<8x32xf32>
    %cst_93 = arith.constant dense<0.000000e+00> : vector<8x32xf32>
    %118 = tpu.matmul %115, %117, %cst_93 {dimension_numbers = #tpu.dot_dimension_numbers<[1], [0], [0], [1], [0, 0, 1, 1], [], []>} : vector<8x8xf32>, vector<8x32xf32>, vector<8x32xf32> -> vector<8x32xf32>
    %119 = arith.addf %81, %118 : vector<8x32xf32>
    %c3 = arith.constant 3 : index
    %c0_94 = arith.constant 0 : index
    %c0_95 = arith.constant 0 : index
    %120 = vector.load %arg4[%c3, %c0_94, %c0_95] : memref<4x8x32xf32, #tpu.memory_space<vmem>>, vector<1x8x32xf32>
    %121 = vector.shape_cast %120 : vector<1x8x32xf32> to vector<8x32xf32>
    %cst_96 = arith.constant dense<0.000000e+00> : vector<8x8xf32>
    %122 = tpu.matmul %6, %121, %cst_96 {dimension_numbers = #tpu.dot_dimension_numbers<[1], [1], [0], [0], [0, 0, 1, 0], [], []>} : vector<8x32xf32>, vector<8x32xf32>, vector<8x8xf32> -> vector<8x8xf32>
    %c3_97 = arith.constant 3 : index
    %c0_98 = arith.constant 0 : index
    %c0_99 = arith.constant 0 : index
    %123 = vector.load %arg7[%c3_97, %c0_98, %c0_99] : memref<4x1x8xf32, #tpu.memory_space<vmem>>, vector<1x1x8xf32>
    %124 = vector.shape_cast %123 : vector<1x1x8xf32> to vector<1x8xf32>
    %125 = vector.broadcast %124 : vector<1x8xf32> to vector<8x8xf32>
    %126 = arith.addf %122, %125 : vector<8x8xf32>
    %c3_100 = arith.constant 3 : index
    %c0_101 = arith.constant 0 : index
    %c0_102 = arith.constant 0 : index
    %127 = vector.load %arg5[%c3_100, %c0_101, %c0_102] : memref<4x8x32xf32, #tpu.memory_space<vmem>>, vector<1x8x32xf32>
    %128 = vector.shape_cast %127 : vector<1x8x32xf32> to vector<8x32xf32>
    %cst_103 = arith.constant dense<0.000000e+00> : vector<8x8xf32>
    %129 = tpu.matmul %6, %128, %cst_103 {dimension_numbers = #tpu.dot_dimension_numbers<[1], [1], [0], [0], [0, 0, 1, 0], [], []>} : vector<8x32xf32>, vector<8x32xf32>, vector<8x8xf32> -> vector<8x8xf32>
    %c3_104 = arith.constant 3 : index
    %c0_105 = arith.constant 0 : index
    %c0_106 = arith.constant 0 : index
    %130 = vector.load %arg8[%c3_104, %c0_105, %c0_106] : memref<4x1x8xf32, #tpu.memory_space<vmem>>, vector<1x1x8xf32>
    %131 = vector.shape_cast %130 : vector<1x1x8xf32> to vector<1x8xf32>
    %132 = vector.broadcast %131 : vector<1x8xf32> to vector<8x8xf32>
    %133 = arith.addf %129, %132 : vector<8x8xf32>
    %c3_107 = arith.constant 3 : index
    %c0_108 = arith.constant 0 : index
    %c0_109 = arith.constant 0 : index
    %134 = vector.load %arg6[%c3_107, %c0_108, %c0_109] : memref<4x8x32xf32, #tpu.memory_space<vmem>>, vector<1x8x32xf32>
    %135 = vector.shape_cast %134 : vector<1x8x32xf32> to vector<8x32xf32>
    %cst_110 = arith.constant dense<0.000000e+00> : vector<8x8xf32>
    %136 = tpu.matmul %6, %135, %cst_110 {dimension_numbers = #tpu.dot_dimension_numbers<[1], [1], [0], [0], [0, 0, 1, 0], [], []>} : vector<8x32xf32>, vector<8x32xf32>, vector<8x8xf32> -> vector<8x8xf32>
    %c3_111 = arith.constant 3 : index
    %c0_112 = arith.constant 0 : index
    %c0_113 = arith.constant 0 : index
    %137 = vector.load %arg9[%c3_111, %c0_112, %c0_113] : memref<4x1x8xf32, #tpu.memory_space<vmem>>, vector<1x1x8xf32>
    %138 = vector.shape_cast %137 : vector<1x1x8xf32> to vector<1x8xf32>
    %139 = vector.broadcast %138 : vector<1x8xf32> to vector<8x8xf32>
    %140 = arith.addf %136, %139 : vector<8x8xf32>
    %cst_114 = arith.constant 0.353553385 : f32
    %141 = vector.broadcast %cst_114 : f32 to vector<8x8xf32>
    %142 = arith.mulf %126, %141 : vector<8x8xf32>
    %cst_115 = arith.constant dense<0.000000e+00> : vector<8x8xf32>
    %143 = tpu.matmul %142, %133, %cst_115 {dimension_numbers = #tpu.dot_dimension_numbers<[1], [1], [0], [0], [0, 0, 1, 0], [], []>} : vector<8x8xf32>, vector<8x8xf32>, vector<8x8xf32> -> vector<8x8xf32>
    %cst_116 = arith.constant dense<0xFF800000> : vector<8xf32>
    %144 = vector.multi_reduction <maximumf>, %143, %cst_116 [1] : vector<8x8xf32> to vector<8xf32>
    %145 = vector.shape_cast %144 : vector<8xf32> to vector<8x1xf32>
    %146 = vector.broadcast %145 : vector<8x1xf32> to vector<8x8xf32>
    %147 = arith.subf %143, %146 : vector<8x8xf32>
    %148 = math.exp %147 : vector<8x8xf32>
    %cst_117 = arith.constant dense<0.000000e+00> : vector<8xf32>
    %149 = vector.multi_reduction <add>, %148, %cst_117 [1] : vector<8x8xf32> to vector<8xf32>
    %150 = vector.shape_cast %149 : vector<8xf32> to vector<8x1xf32>
    %151 = vector.broadcast %150 : vector<8x1xf32> to vector<8x8xf32>
    %152 = arith.divf %148, %151 : vector<8x8xf32>
    %cst_118 = arith.constant dense<0.000000e+00> : vector<8x8xf32>
    %153 = tpu.matmul %152, %140, %cst_118 {dimension_numbers = #tpu.dot_dimension_numbers<[1], [0], [0], [1], [0, 0, 1, 1], [], []>} : vector<8x8xf32>, vector<8x8xf32>, vector<8x8xf32> -> vector<8x8xf32>
    %c3_119 = arith.constant 3 : index
    %c0_120 = arith.constant 0 : index
    %c0_121 = arith.constant 0 : index
    %154 = vector.load %arg10[%c3_119, %c0_120, %c0_121] : memref<4x8x32xf32, #tpu.memory_space<vmem>>, vector<1x8x32xf32>
    %155 = vector.shape_cast %154 : vector<1x8x32xf32> to vector<8x32xf32>
    %cst_122 = arith.constant dense<0.000000e+00> : vector<8x32xf32>
    %156 = tpu.matmul %153, %155, %cst_122 {dimension_numbers = #tpu.dot_dimension_numbers<[1], [0], [0], [1], [0, 0, 1, 1], [], []>} : vector<8x8xf32>, vector<8x32xf32>, vector<8x32xf32> -> vector<8x32xf32>
    %157 = arith.addf %119, %156 : vector<8x32xf32>
    %c0_123 = arith.constant 0 : index
    %c0_124 = arith.constant 0 : index
    %158 = vector.load %arg11[%c0_123, %c0_124] : memref<1x32xf32, #tpu.memory_space<vmem>>, vector<1x32xf32>
    %159 = vector.broadcast %158 : vector<1x32xf32> to vector<8x32xf32>
    %160 = arith.addf %157, %159 : vector<8x32xf32>
    %161 = arith.addf %6, %160 : vector<8x32xf32>
    %c0_125 = arith.constant 0 : index
    %c0_126 = arith.constant 0 : index
    %162 = vector.load %arg16[%c0_125, %c0_126] : memref<1x32xf32, #tpu.memory_space<vmem>>, vector<1x32xf32>
    %c0_127 = arith.constant 0 : index
    %c0_128 = arith.constant 0 : index
    %163 = vector.load %arg17[%c0_127, %c0_128] : memref<1x32xf32, #tpu.memory_space<vmem>>, vector<1x32xf32>
    %cst_129 = arith.constant dense<0.000000e+00> : vector<8xf32>
    %164 = vector.multi_reduction <add>, %161, %cst_129 [1] : vector<8x32xf32> to vector<8xf32>
    %165 = vector.shape_cast %164 : vector<8xf32> to vector<8x1xf32>
    %cst_130 = arith.constant 3.200000e+01 : f32
    %166 = vector.broadcast %cst_130 : f32 to vector<8x1xf32>
    %167 = arith.divf %165, %166 : vector<8x1xf32>
    %168 = vector.broadcast %167 : vector<8x1xf32> to vector<8x32xf32>
    %169 = arith.subf %161, %168 : vector<8x32xf32>
    %170 = arith.mulf %169, %169 : vector<8x32xf32>
    %cst_131 = arith.constant dense<0.000000e+00> : vector<8xf32>
    %171 = vector.multi_reduction <add>, %170, %cst_131 [1] : vector<8x32xf32> to vector<8xf32>
    %172 = vector.shape_cast %171 : vector<8xf32> to vector<8x1xf32>
    %cst_132 = arith.constant 3.200000e+01 : f32
    %173 = vector.broadcast %cst_132 : f32 to vector<8x1xf32>
    %174 = arith.divf %172, %173 : vector<8x1xf32>
    %175 = vector.broadcast %167 : vector<8x1xf32> to vector<8x32xf32>
    %176 = arith.subf %161, %175 : vector<8x32xf32>
    %cst_133 = arith.constant 9.99999974E-6 : f32
    %177 = vector.broadcast %cst_133 : f32 to vector<8x1xf32>
    %178 = arith.addf %174, %177 : vector<8x1xf32>
    %179 = math.rsqrt %178 : vector<8x1xf32>
    %180 = vector.broadcast %179 : vector<8x1xf32> to vector<8x32xf32>
    %181 = arith.mulf %176, %180 : vector<8x32xf32>
    %182 = vector.broadcast %162 : vector<1x32xf32> to vector<8x32xf32>
    %183 = arith.mulf %181, %182 : vector<8x32xf32>
    %184 = vector.broadcast %163 : vector<1x32xf32> to vector<8x32xf32>
    %185 = arith.addf %183, %184 : vector<8x32xf32>
    %c0_134 = arith.constant 0 : index
    %c0_135 = arith.constant 0 : index
    %186 = vector.load %arg12[%c0_134, %c0_135] : memref<32x32xf32, #tpu.memory_space<vmem>>, vector<32x32xf32>
    %cst_136 = arith.constant dense<0.000000e+00> : vector<8x32xf32>
    %187 = tpu.matmul %185, %186, %cst_136 {dimension_numbers = #tpu.dot_dimension_numbers<[1], [1], [0], [0], [0, 0, 1, 0], [], []>} : vector<8x32xf32>, vector<32x32xf32>, vector<8x32xf32> -> vector<8x32xf32>
    %c0_137 = arith.constant 0 : index
    %c0_138 = arith.constant 0 : index
    %188 = vector.load %arg13[%c0_137, %c0_138] : memref<1x32xf32, #tpu.memory_space<vmem>>, vector<1x32xf32>
    %189 = vector.broadcast %188 : vector<1x32xf32> to vector<8x32xf32>
    %190 = arith.addf %187, %189 : vector<8x32xf32>
    %cst_139 = arith.constant 5.000000e-01 : f32
    %191 = vector.broadcast %cst_139 : f32 to vector<8x32xf32>
    %192 = arith.mulf %191, %190 : vector<8x32xf32>
    %cst_140 = arith.constant 0.707106769 : f32
    %193 = vector.broadcast %cst_140 : f32 to vector<8x32xf32>
    %194 = arith.mulf %190, %193 : vector<8x32xf32>
    %195 = math.absf %194 : vector<8x32xf32>
    %cst_141 = arith.constant 0.327591091 : f32
    %196 = vector.broadcast %cst_141 : f32 to vector<8x32xf32>
    %197 = arith.mulf %196, %195 : vector<8x32xf32>
    %cst_142 = arith.constant 1.000000e+00 : f32
    %198 = vector.broadcast %cst_142 : f32 to vector<8x32xf32>
    %199 = arith.addf %198, %197 : vector<8x32xf32>
    %cst_143 = arith.constant 1.000000e+00 : f32
    %200 = vector.broadcast %cst_143 : f32 to vector<8x32xf32>
    %201 = arith.divf %200, %199 : vector<8x32xf32>
    %cst_144 = arith.constant 1.06140542 : f32
    %202 = vector.broadcast %cst_144 : f32 to vector<8x32xf32>
    %203 = arith.mulf %202, %201 : vector<8x32xf32>
    %cst_145 = arith.constant -1.45315206 : f32
    %204 = vector.broadcast %cst_145 : f32 to vector<8x32xf32>
    %205 = arith.addf %203, %204 : vector<8x32xf32>
    %206 = arith.mulf %205, %201 : vector<8x32xf32>
    %cst_146 = arith.constant 1.42141378 : f32
    %207 = vector.broadcast %cst_146 : f32 to vector<8x32xf32>
    %208 = arith.addf %206, %207 : vector<8x32xf32>
    %209 = arith.mulf %208, %201 : vector<8x32xf32>
    %cst_147 = arith.constant -0.284496725 : f32
    %210 = vector.broadcast %cst_147 : f32 to vector<8x32xf32>
    %211 = arith.addf %209, %210 : vector<8x32xf32>
    %212 = arith.mulf %211, %201 : vector<8x32xf32>
    %cst_148 = arith.constant 0.254829586 : f32
    %213 = vector.broadcast %cst_148 : f32 to vector<8x32xf32>
    %214 = arith.addf %212, %213 : vector<8x32xf32>
    %215 = arith.mulf %214, %201 : vector<8x32xf32>
    %cst_149 = arith.constant 0.000000e+00 : f32
    %216 = vector.broadcast %cst_149 : f32 to vector<8x32xf32>
    %217 = arith.subf %216, %195 : vector<8x32xf32>
    %218 = arith.mulf %217, %195 : vector<8x32xf32>
    %219 = math.exp %218 : vector<8x32xf32>
    %220 = arith.mulf %215, %219 : vector<8x32xf32>
    %cst_150 = arith.constant 1.000000e+00 : f32
    %221 = vector.broadcast %cst_150 : f32 to vector<8x32xf32>
    %222 = arith.subf %221, %220 : vector<8x32xf32>
    %cst_151 = arith.constant 0.000000e+00 : f32
    %223 = vector.broadcast %cst_151 : f32 to vector<8x32xf32>
    %224 = arith.cmpf oge, %194, %223 : vector<8x32xf32>
    %cst_152 = arith.constant 0.000000e+00 : f32
    %225 = vector.broadcast %cst_152 : f32 to vector<8x32xf32>
    %226 = arith.subf %225, %222 : vector<8x32xf32>
    %227 = arith.select %224, %222, %226 : vector<8x32xi1>, vector<8x32xf32>
    %cst_153 = arith.constant 1.000000e+00 : f32
    %228 = vector.broadcast %cst_153 : f32 to vector<8x32xf32>
    %229 = arith.addf %228, %227 : vector<8x32xf32>
    %230 = arith.mulf %192, %229 : vector<8x32xf32>
    %c0_154 = arith.constant 0 : index
    %c0_155 = arith.constant 0 : index
    %231 = vector.load %arg14[%c0_154, %c0_155] : memref<32x32xf32, #tpu.memory_space<vmem>>, vector<32x32xf32>
    %cst_156 = arith.constant dense<0.000000e+00> : vector<8x32xf32>
    %232 = tpu.matmul %230, %231, %cst_156 {dimension_numbers = #tpu.dot_dimension_numbers<[1], [1], [0], [0], [0, 0, 1, 0], [], []>} : vector<8x32xf32>, vector<32x32xf32>, vector<8x32xf32> -> vector<8x32xf32>
    %c0_157 = arith.constant 0 : index
    %c0_158 = arith.constant 0 : index
    %233 = vector.load %arg15[%c0_157, %c0_158] : memref<1x32xf32, #tpu.memory_space<vmem>>, vector<1x32xf32>
    %234 = vector.broadcast %233 : vector<1x32xf32> to vector<8x32xf32>
    %235 = arith.addf %232, %234 : vector<8x32xf32>
    %236 = arith.addf %190, %235 : vector<8x32xf32>
    %c0_159 = arith.constant 0 : index
    %c0_160 = arith.constant 0 : index
    %237 = vector.load %arg18[%c0_159, %c0_160] : memref<1x32xf32, #tpu.memory_space<vmem>>, vector<1x32xf32>
    %c0_161 = arith.constant 0 : index
    %c0_162 = arith.constant 0 : index
    %238 = vector.load %arg19[%c0_161, %c0_162] : memref<1x32xf32, #tpu.memory_space<vmem>>, vector<1x32xf32>
    %cst_163 = arith.constant dense<0.000000e+00> : vector<8xf32>
    %239 = vector.multi_reduction <add>, %236, %cst_163 [1] : vector<8x32xf32> to vector<8xf32>
    %240 = vector.shape_cast %239 : vector<8xf32> to vector<8x1xf32>
    %cst_164 = arith.constant 3.200000e+01 : f32
    %241 = vector.broadcast %cst_164 : f32 to vector<8x1xf32>
    %242 = arith.divf %240, %241 : vector<8x1xf32>
    %243 = vector.broadcast %242 : vector<8x1xf32> to vector<8x32xf32>
    %244 = arith.subf %236, %243 : vector<8x32xf32>
    %245 = arith.mulf %244, %244 : vector<8x32xf32>
    %cst_165 = arith.constant dense<0.000000e+00> : vector<8xf32>
    %246 = vector.multi_reduction <add>, %245, %cst_165 [1] : vector<8x32xf32> to vector<8xf32>
    %247 = vector.shape_cast %246 : vector<8xf32> to vector<8x1xf32>
    %cst_166 = arith.constant 3.200000e+01 : f32
    %248 = vector.broadcast %cst_166 : f32 to vector<8x1xf32>
    %249 = arith.divf %247, %248 : vector<8x1xf32>
    %250 = vector.broadcast %242 : vector<8x1xf32> to vector<8x32xf32>
    %251 = arith.subf %236, %250 : vector<8x32xf32>
    %cst_167 = arith.constant 9.99999974E-6 : f32
    %252 = vector.broadcast %cst_167 : f32 to vector<8x1xf32>
    %253 = arith.addf %249, %252 : vector<8x1xf32>
    %254 = math.rsqrt %253 : vector<8x1xf32>
    %255 = vector.broadcast %254 : vector<8x1xf32> to vector<8x32xf32>
    %256 = arith.mulf %251, %255 : vector<8x32xf32>
    %257 = vector.broadcast %237 : vector<1x32xf32> to vector<8x32xf32>
    %258 = arith.mulf %256, %257 : vector<8x32xf32>
    %259 = vector.broadcast %238 : vector<1x32xf32> to vector<8x32xf32>
    %260 = arith.addf %258, %259 : vector<8x32xf32>
    %c0_168 = arith.constant 0 : index
    %c0_169 = arith.constant 0 : index
    %c0_170 = arith.constant 0 : index
    %261 = vector.load %arg20[%c0_168, %c0_169, %c0_170] : memref<4x8x32xf32, #tpu.memory_space<vmem>>, vector<1x8x32xf32>
    %262 = vector.shape_cast %261 : vector<1x8x32xf32> to vector<8x32xf32>
    %cst_171 = arith.constant dense<0.000000e+00> : vector<8x8xf32>
    %263 = tpu.matmul %260, %262, %cst_171 {dimension_numbers = #tpu.dot_dimension_numbers<[1], [1], [0], [0], [0, 0, 1, 0], [], []>} : vector<8x32xf32>, vector<8x32xf32>, vector<8x8xf32> -> vector<8x8xf32>
    %c0_172 = arith.constant 0 : index
    %c0_173 = arith.constant 0 : index
    %c0_174 = arith.constant 0 : index
    %264 = vector.load %arg23[%c0_172, %c0_173, %c0_174] : memref<4x1x8xf32, #tpu.memory_space<vmem>>, vector<1x1x8xf32>
    %265 = vector.shape_cast %264 : vector<1x1x8xf32> to vector<1x8xf32>
    %266 = vector.broadcast %265 : vector<1x8xf32> to vector<8x8xf32>
    %267 = arith.addf %263, %266 : vector<8x8xf32>
    %c0_175 = arith.constant 0 : index
    %c0_176 = arith.constant 0 : index
    %c0_177 = arith.constant 0 : index
    %268 = vector.load %arg21[%c0_175, %c0_176, %c0_177] : memref<4x8x32xf32, #tpu.memory_space<vmem>>, vector<1x8x32xf32>
    %269 = vector.shape_cast %268 : vector<1x8x32xf32> to vector<8x32xf32>
    %cst_178 = arith.constant dense<0.000000e+00> : vector<8x8xf32>
    %270 = tpu.matmul %260, %269, %cst_178 {dimension_numbers = #tpu.dot_dimension_numbers<[1], [1], [0], [0], [0, 0, 1, 0], [], []>} : vector<8x32xf32>, vector<8x32xf32>, vector<8x8xf32> -> vector<8x8xf32>
    %c0_179 = arith.constant 0 : index
    %c0_180 = arith.constant 0 : index
    %c0_181 = arith.constant 0 : index
    %271 = vector.load %arg24[%c0_179, %c0_180, %c0_181] : memref<4x1x8xf32, #tpu.memory_space<vmem>>, vector<1x1x8xf32>
    %272 = vector.shape_cast %271 : vector<1x1x8xf32> to vector<1x8xf32>
    %273 = vector.broadcast %272 : vector<1x8xf32> to vector<8x8xf32>
    %274 = arith.addf %270, %273 : vector<8x8xf32>
    %c0_182 = arith.constant 0 : index
    %c0_183 = arith.constant 0 : index
    %c0_184 = arith.constant 0 : index
    %275 = vector.load %arg22[%c0_182, %c0_183, %c0_184] : memref<4x8x32xf32, #tpu.memory_space<vmem>>, vector<1x8x32xf32>
    %276 = vector.shape_cast %275 : vector<1x8x32xf32> to vector<8x32xf32>
    %cst_185 = arith.constant dense<0.000000e+00> : vector<8x8xf32>
    %277 = tpu.matmul %260, %276, %cst_185 {dimension_numbers = #tpu.dot_dimension_numbers<[1], [1], [0], [0], [0, 0, 1, 0], [], []>} : vector<8x32xf32>, vector<8x32xf32>, vector<8x8xf32> -> vector<8x8xf32>
    %c0_186 = arith.constant 0 : index
    %c0_187 = arith.constant 0 : index
    %c0_188 = arith.constant 0 : index
    %278 = vector.load %arg25[%c0_186, %c0_187, %c0_188] : memref<4x1x8xf32, #tpu.memory_space<vmem>>, vector<1x1x8xf32>
    %279 = vector.shape_cast %278 : vector<1x1x8xf32> to vector<1x8xf32>
    %280 = vector.broadcast %279 : vector<1x8xf32> to vector<8x8xf32>
    %281 = arith.addf %277, %280 : vector<8x8xf32>
    %cst_189 = arith.constant 0.353553385 : f32
    %282 = vector.broadcast %cst_189 : f32 to vector<8x8xf32>
    %283 = arith.mulf %267, %282 : vector<8x8xf32>
    %cst_190 = arith.constant dense<0.000000e+00> : vector<8x8xf32>
    %284 = tpu.matmul %283, %274, %cst_190 {dimension_numbers = #tpu.dot_dimension_numbers<[1], [1], [0], [0], [0, 0, 1, 0], [], []>} : vector<8x8xf32>, vector<8x8xf32>, vector<8x8xf32> -> vector<8x8xf32>
    %cst_191 = arith.constant dense<0xFF800000> : vector<8xf32>
    %285 = vector.multi_reduction <maximumf>, %284, %cst_191 [1] : vector<8x8xf32> to vector<8xf32>
    %286 = vector.shape_cast %285 : vector<8xf32> to vector<8x1xf32>
    %287 = vector.broadcast %286 : vector<8x1xf32> to vector<8x8xf32>
    %288 = arith.subf %284, %287 : vector<8x8xf32>
    %289 = math.exp %288 : vector<8x8xf32>
    %cst_192 = arith.constant dense<0.000000e+00> : vector<8xf32>
    %290 = vector.multi_reduction <add>, %289, %cst_192 [1] : vector<8x8xf32> to vector<8xf32>
    %291 = vector.shape_cast %290 : vector<8xf32> to vector<8x1xf32>
    %292 = vector.broadcast %291 : vector<8x1xf32> to vector<8x8xf32>
    %293 = arith.divf %289, %292 : vector<8x8xf32>
    %cst_193 = arith.constant dense<0.000000e+00> : vector<8x8xf32>
    %294 = tpu.matmul %293, %281, %cst_193 {dimension_numbers = #tpu.dot_dimension_numbers<[1], [0], [0], [1], [0, 0, 1, 1], [], []>} : vector<8x8xf32>, vector<8x8xf32>, vector<8x8xf32> -> vector<8x8xf32>
    %c0_194 = arith.constant 0 : index
    %c0_195 = arith.constant 0 : index
    %c0_196 = arith.constant 0 : index
    %295 = vector.load %arg26[%c0_194, %c0_195, %c0_196] : memref<4x8x32xf32, #tpu.memory_space<vmem>>, vector<1x8x32xf32>
    %296 = vector.shape_cast %295 : vector<1x8x32xf32> to vector<8x32xf32>
    %cst_197 = arith.constant dense<0.000000e+00> : vector<8x32xf32>
    %297 = tpu.matmul %294, %296, %cst_197 {dimension_numbers = #tpu.dot_dimension_numbers<[1], [0], [0], [1], [0, 0, 1, 1], [], []>} : vector<8x8xf32>, vector<8x32xf32>, vector<8x32xf32> -> vector<8x32xf32>
    %c1_198 = arith.constant 1 : index
    %c0_199 = arith.constant 0 : index
    %c0_200 = arith.constant 0 : index
    %298 = vector.load %arg20[%c1_198, %c0_199, %c0_200] : memref<4x8x32xf32, #tpu.memory_space<vmem>>, vector<1x8x32xf32>
    %299 = vector.shape_cast %298 : vector<1x8x32xf32> to vector<8x32xf32>
    %cst_201 = arith.constant dense<0.000000e+00> : vector<8x8xf32>
    %300 = tpu.matmul %260, %299, %cst_201 {dimension_numbers = #tpu.dot_dimension_numbers<[1], [1], [0], [0], [0, 0, 1, 0], [], []>} : vector<8x32xf32>, vector<8x32xf32>, vector<8x8xf32> -> vector<8x8xf32>
    %c1_202 = arith.constant 1 : index
    %c0_203 = arith.constant 0 : index
    %c0_204 = arith.constant 0 : index
    %301 = vector.load %arg23[%c1_202, %c0_203, %c0_204] : memref<4x1x8xf32, #tpu.memory_space<vmem>>, vector<1x1x8xf32>
    %302 = vector.shape_cast %301 : vector<1x1x8xf32> to vector<1x8xf32>
    %303 = vector.broadcast %302 : vector<1x8xf32> to vector<8x8xf32>
    %304 = arith.addf %300, %303 : vector<8x8xf32>
    %c1_205 = arith.constant 1 : index
    %c0_206 = arith.constant 0 : index
    %c0_207 = arith.constant 0 : index
    %305 = vector.load %arg21[%c1_205, %c0_206, %c0_207] : memref<4x8x32xf32, #tpu.memory_space<vmem>>, vector<1x8x32xf32>
    %306 = vector.shape_cast %305 : vector<1x8x32xf32> to vector<8x32xf32>
    %cst_208 = arith.constant dense<0.000000e+00> : vector<8x8xf32>
    %307 = tpu.matmul %260, %306, %cst_208 {dimension_numbers = #tpu.dot_dimension_numbers<[1], [1], [0], [0], [0, 0, 1, 0], [], []>} : vector<8x32xf32>, vector<8x32xf32>, vector<8x8xf32> -> vector<8x8xf32>
    %c1_209 = arith.constant 1 : index
    %c0_210 = arith.constant 0 : index
    %c0_211 = arith.constant 0 : index
    %308 = vector.load %arg24[%c1_209, %c0_210, %c0_211] : memref<4x1x8xf32, #tpu.memory_space<vmem>>, vector<1x1x8xf32>
    %309 = vector.shape_cast %308 : vector<1x1x8xf32> to vector<1x8xf32>
    %310 = vector.broadcast %309 : vector<1x8xf32> to vector<8x8xf32>
    %311 = arith.addf %307, %310 : vector<8x8xf32>
    %c1_212 = arith.constant 1 : index
    %c0_213 = arith.constant 0 : index
    %c0_214 = arith.constant 0 : index
    %312 = vector.load %arg22[%c1_212, %c0_213, %c0_214] : memref<4x8x32xf32, #tpu.memory_space<vmem>>, vector<1x8x32xf32>
    %313 = vector.shape_cast %312 : vector<1x8x32xf32> to vector<8x32xf32>
    %cst_215 = arith.constant dense<0.000000e+00> : vector<8x8xf32>
    %314 = tpu.matmul %260, %313, %cst_215 {dimension_numbers = #tpu.dot_dimension_numbers<[1], [1], [0], [0], [0, 0, 1, 0], [], []>} : vector<8x32xf32>, vector<8x32xf32>, vector<8x8xf32> -> vector<8x8xf32>
    %c1_216 = arith.constant 1 : index
    %c0_217 = arith.constant 0 : index
    %c0_218 = arith.constant 0 : index
    %315 = vector.load %arg25[%c1_216, %c0_217, %c0_218] : memref<4x1x8xf32, #tpu.memory_space<vmem>>, vector<1x1x8xf32>
    %316 = vector.shape_cast %315 : vector<1x1x8xf32> to vector<1x8xf32>
    %317 = vector.broadcast %316 : vector<1x8xf32> to vector<8x8xf32>
    %318 = arith.addf %314, %317 : vector<8x8xf32>
    %cst_219 = arith.constant 0.353553385 : f32
    %319 = vector.broadcast %cst_219 : f32 to vector<8x8xf32>
    %320 = arith.mulf %304, %319 : vector<8x8xf32>
    %cst_220 = arith.constant dense<0.000000e+00> : vector<8x8xf32>
    %321 = tpu.matmul %320, %311, %cst_220 {dimension_numbers = #tpu.dot_dimension_numbers<[1], [1], [0], [0], [0, 0, 1, 0], [], []>} : vector<8x8xf32>, vector<8x8xf32>, vector<8x8xf32> -> vector<8x8xf32>
    %cst_221 = arith.constant dense<0xFF800000> : vector<8xf32>
    %322 = vector.multi_reduction <maximumf>, %321, %cst_221 [1] : vector<8x8xf32> to vector<8xf32>
    %323 = vector.shape_cast %322 : vector<8xf32> to vector<8x1xf32>
    %324 = vector.broadcast %323 : vector<8x1xf32> to vector<8x8xf32>
    %325 = arith.subf %321, %324 : vector<8x8xf32>
    %326 = math.exp %325 : vector<8x8xf32>
    %cst_222 = arith.constant dense<0.000000e+00> : vector<8xf32>
    %327 = vector.multi_reduction <add>, %326, %cst_222 [1] : vector<8x8xf32> to vector<8xf32>
    %328 = vector.shape_cast %327 : vector<8xf32> to vector<8x1xf32>
    %329 = vector.broadcast %328 : vector<8x1xf32> to vector<8x8xf32>
    %330 = arith.divf %326, %329 : vector<8x8xf32>
    %cst_223 = arith.constant dense<0.000000e+00> : vector<8x8xf32>
    %331 = tpu.matmul %330, %318, %cst_223 {dimension_numbers = #tpu.dot_dimension_numbers<[1], [0], [0], [1], [0, 0, 1, 1], [], []>} : vector<8x8xf32>, vector<8x8xf32>, vector<8x8xf32> -> vector<8x8xf32>
    %c1_224 = arith.constant 1 : index
    %c0_225 = arith.constant 0 : index
    %c0_226 = arith.constant 0 : index
    %332 = vector.load %arg26[%c1_224, %c0_225, %c0_226] : memref<4x8x32xf32, #tpu.memory_space<vmem>>, vector<1x8x32xf32>
    %333 = vector.shape_cast %332 : vector<1x8x32xf32> to vector<8x32xf32>
    %cst_227 = arith.constant dense<0.000000e+00> : vector<8x32xf32>
    %334 = tpu.matmul %331, %333, %cst_227 {dimension_numbers = #tpu.dot_dimension_numbers<[1], [0], [0], [1], [0, 0, 1, 1], [], []>} : vector<8x8xf32>, vector<8x32xf32>, vector<8x32xf32> -> vector<8x32xf32>
    %335 = arith.addf %297, %334 : vector<8x32xf32>
    %c2_228 = arith.constant 2 : index
    %c0_229 = arith.constant 0 : index
    %c0_230 = arith.constant 0 : index
    %336 = vector.load %arg20[%c2_228, %c0_229, %c0_230] : memref<4x8x32xf32, #tpu.memory_space<vmem>>, vector<1x8x32xf32>
    %337 = vector.shape_cast %336 : vector<1x8x32xf32> to vector<8x32xf32>
    %cst_231 = arith.constant dense<0.000000e+00> : vector<8x8xf32>
    %338 = tpu.matmul %260, %337, %cst_231 {dimension_numbers = #tpu.dot_dimension_numbers<[1], [1], [0], [0], [0, 0, 1, 0], [], []>} : vector<8x32xf32>, vector<8x32xf32>, vector<8x8xf32> -> vector<8x8xf32>
    %c2_232 = arith.constant 2 : index
    %c0_233 = arith.constant 0 : index
    %c0_234 = arith.constant 0 : index
    %339 = vector.load %arg23[%c2_232, %c0_233, %c0_234] : memref<4x1x8xf32, #tpu.memory_space<vmem>>, vector<1x1x8xf32>
    %340 = vector.shape_cast %339 : vector<1x1x8xf32> to vector<1x8xf32>
    %341 = vector.broadcast %340 : vector<1x8xf32> to vector<8x8xf32>
    %342 = arith.addf %338, %341 : vector<8x8xf32>
    %c2_235 = arith.constant 2 : index
    %c0_236 = arith.constant 0 : index
    %c0_237 = arith.constant 0 : index
    %343 = vector.load %arg21[%c2_235, %c0_236, %c0_237] : memref<4x8x32xf32, #tpu.memory_space<vmem>>, vector<1x8x32xf32>
    %344 = vector.shape_cast %343 : vector<1x8x32xf32> to vector<8x32xf32>
    %cst_238 = arith.constant dense<0.000000e+00> : vector<8x8xf32>
    %345 = tpu.matmul %260, %344, %cst_238 {dimension_numbers = #tpu.dot_dimension_numbers<[1], [1], [0], [0], [0, 0, 1, 0], [], []>} : vector<8x32xf32>, vector<8x32xf32>, vector<8x8xf32> -> vector<8x8xf32>
    %c2_239 = arith.constant 2 : index
    %c0_240 = arith.constant 0 : index
    %c0_241 = arith.constant 0 : index
    %346 = vector.load %arg24[%c2_239, %c0_240, %c0_241] : memref<4x1x8xf32, #tpu.memory_space<vmem>>, vector<1x1x8xf32>
    %347 = vector.shape_cast %346 : vector<1x1x8xf32> to vector<1x8xf32>
    %348 = vector.broadcast %347 : vector<1x8xf32> to vector<8x8xf32>
    %349 = arith.addf %345, %348 : vector<8x8xf32>
    %c2_242 = arith.constant 2 : index
    %c0_243 = arith.constant 0 : index
    %c0_244 = arith.constant 0 : index
    %350 = vector.load %arg22[%c2_242, %c0_243, %c0_244] : memref<4x8x32xf32, #tpu.memory_space<vmem>>, vector<1x8x32xf32>
    %351 = vector.shape_cast %350 : vector<1x8x32xf32> to vector<8x32xf32>
    %cst_245 = arith.constant dense<0.000000e+00> : vector<8x8xf32>
    %352 = tpu.matmul %260, %351, %cst_245 {dimension_numbers = #tpu.dot_dimension_numbers<[1], [1], [0], [0], [0, 0, 1, 0], [], []>} : vector<8x32xf32>, vector<8x32xf32>, vector<8x8xf32> -> vector<8x8xf32>
    %c2_246 = arith.constant 2 : index
    %c0_247 = arith.constant 0 : index
    %c0_248 = arith.constant 0 : index
    %353 = vector.load %arg25[%c2_246, %c0_247, %c0_248] : memref<4x1x8xf32, #tpu.memory_space<vmem>>, vector<1x1x8xf32>
    %354 = vector.shape_cast %353 : vector<1x1x8xf32> to vector<1x8xf32>
    %355 = vector.broadcast %354 : vector<1x8xf32> to vector<8x8xf32>
    %356 = arith.addf %352, %355 : vector<8x8xf32>
    %cst_249 = arith.constant 0.353553385 : f32
    %357 = vector.broadcast %cst_249 : f32 to vector<8x8xf32>
    %358 = arith.mulf %342, %357 : vector<8x8xf32>
    %cst_250 = arith.constant dense<0.000000e+00> : vector<8x8xf32>
    %359 = tpu.matmul %358, %349, %cst_250 {dimension_numbers = #tpu.dot_dimension_numbers<[1], [1], [0], [0], [0, 0, 1, 0], [], []>} : vector<8x8xf32>, vector<8x8xf32>, vector<8x8xf32> -> vector<8x8xf32>
    %cst_251 = arith.constant dense<0xFF800000> : vector<8xf32>
    %360 = vector.multi_reduction <maximumf>, %359, %cst_251 [1] : vector<8x8xf32> to vector<8xf32>
    %361 = vector.shape_cast %360 : vector<8xf32> to vector<8x1xf32>
    %362 = vector.broadcast %361 : vector<8x1xf32> to vector<8x8xf32>
    %363 = arith.subf %359, %362 : vector<8x8xf32>
    %364 = math.exp %363 : vector<8x8xf32>
    %cst_252 = arith.constant dense<0.000000e+00> : vector<8xf32>
    %365 = vector.multi_reduction <add>, %364, %cst_252 [1] : vector<8x8xf32> to vector<8xf32>
    %366 = vector.shape_cast %365 : vector<8xf32> to vector<8x1xf32>
    %367 = vector.broadcast %366 : vector<8x1xf32> to vector<8x8xf32>
    %368 = arith.divf %364, %367 : vector<8x8xf32>
    %cst_253 = arith.constant dense<0.000000e+00> : vector<8x8xf32>
    %369 = tpu.matmul %368, %356, %cst_253 {dimension_numbers = #tpu.dot_dimension_numbers<[1], [0], [0], [1], [0, 0, 1, 1], [], []>} : vector<8x8xf32>, vector<8x8xf32>, vector<8x8xf32> -> vector<8x8xf32>
    %c2_254 = arith.constant 2 : index
    %c0_255 = arith.constant 0 : index
    %c0_256 = arith.constant 0 : index
    %370 = vector.load %arg26[%c2_254, %c0_255, %c0_256] : memref<4x8x32xf32, #tpu.memory_space<vmem>>, vector<1x8x32xf32>
    %371 = vector.shape_cast %370 : vector<1x8x32xf32> to vector<8x32xf32>
    %cst_257 = arith.constant dense<0.000000e+00> : vector<8x32xf32>
    %372 = tpu.matmul %369, %371, %cst_257 {dimension_numbers = #tpu.dot_dimension_numbers<[1], [0], [0], [1], [0, 0, 1, 1], [], []>} : vector<8x8xf32>, vector<8x32xf32>, vector<8x32xf32> -> vector<8x32xf32>
    %373 = arith.addf %335, %372 : vector<8x32xf32>
    %c3_258 = arith.constant 3 : index
    %c0_259 = arith.constant 0 : index
    %c0_260 = arith.constant 0 : index
    %374 = vector.load %arg20[%c3_258, %c0_259, %c0_260] : memref<4x8x32xf32, #tpu.memory_space<vmem>>, vector<1x8x32xf32>
    %375 = vector.shape_cast %374 : vector<1x8x32xf32> to vector<8x32xf32>
    %cst_261 = arith.constant dense<0.000000e+00> : vector<8x8xf32>
    %376 = tpu.matmul %260, %375, %cst_261 {dimension_numbers = #tpu.dot_dimension_numbers<[1], [1], [0], [0], [0, 0, 1, 0], [], []>} : vector<8x32xf32>, vector<8x32xf32>, vector<8x8xf32> -> vector<8x8xf32>
    %c3_262 = arith.constant 3 : index
    %c0_263 = arith.constant 0 : index
    %c0_264 = arith.constant 0 : index
    %377 = vector.load %arg23[%c3_262, %c0_263, %c0_264] : memref<4x1x8xf32, #tpu.memory_space<vmem>>, vector<1x1x8xf32>
    %378 = vector.shape_cast %377 : vector<1x1x8xf32> to vector<1x8xf32>
    %379 = vector.broadcast %378 : vector<1x8xf32> to vector<8x8xf32>
    %380 = arith.addf %376, %379 : vector<8x8xf32>
    %c3_265 = arith.constant 3 : index
    %c0_266 = arith.constant 0 : index
    %c0_267 = arith.constant 0 : index
    %381 = vector.load %arg21[%c3_265, %c0_266, %c0_267] : memref<4x8x32xf32, #tpu.memory_space<vmem>>, vector<1x8x32xf32>
    %382 = vector.shape_cast %381 : vector<1x8x32xf32> to vector<8x32xf32>
    %cst_268 = arith.constant dense<0.000000e+00> : vector<8x8xf32>
    %383 = tpu.matmul %260, %382, %cst_268 {dimension_numbers = #tpu.dot_dimension_numbers<[1], [1], [0], [0], [0, 0, 1, 0], [], []>} : vector<8x32xf32>, vector<8x32xf32>, vector<8x8xf32> -> vector<8x8xf32>
    %c3_269 = arith.constant 3 : index
    %c0_270 = arith.constant 0 : index
    %c0_271 = arith.constant 0 : index
    %384 = vector.load %arg24[%c3_269, %c0_270, %c0_271] : memref<4x1x8xf32, #tpu.memory_space<vmem>>, vector<1x1x8xf32>
    %385 = vector.shape_cast %384 : vector<1x1x8xf32> to vector<1x8xf32>
    %386 = vector.broadcast %385 : vector<1x8xf32> to vector<8x8xf32>
    %387 = arith.addf %383, %386 : vector<8x8xf32>
    %c3_272 = arith.constant 3 : index
    %c0_273 = arith.constant 0 : index
    %c0_274 = arith.constant 0 : index
    %388 = vector.load %arg22[%c3_272, %c0_273, %c0_274] : memref<4x8x32xf32, #tpu.memory_space<vmem>>, vector<1x8x32xf32>
    %389 = vector.shape_cast %388 : vector<1x8x32xf32> to vector<8x32xf32>
    %cst_275 = arith.constant dense<0.000000e+00> : vector<8x8xf32>
    %390 = tpu.matmul %260, %389, %cst_275 {dimension_numbers = #tpu.dot_dimension_numbers<[1], [1], [0], [0], [0, 0, 1, 0], [], []>} : vector<8x32xf32>, vector<8x32xf32>, vector<8x8xf32> -> vector<8x8xf32>
    %c3_276 = arith.constant 3 : index
    %c0_277 = arith.constant 0 : index
    %c0_278 = arith.constant 0 : index
    %391 = vector.load %arg25[%c3_276, %c0_277, %c0_278] : memref<4x1x8xf32, #tpu.memory_space<vmem>>, vector<1x1x8xf32>
    %392 = vector.shape_cast %391 : vector<1x1x8xf32> to vector<1x8xf32>
    %393 = vector.broadcast %392 : vector<1x8xf32> to vector<8x8xf32>
    %394 = arith.addf %390, %393 : vector<8x8xf32>
    %cst_279 = arith.constant 0.353553385 : f32
    %395 = vector.broadcast %cst_279 : f32 to vector<8x8xf32>
    %396 = arith.mulf %380, %395 : vector<8x8xf32>
    %cst_280 = arith.constant dense<0.000000e+00> : vector<8x8xf32>
    %397 = tpu.matmul %396, %387, %cst_280 {dimension_numbers = #tpu.dot_dimension_numbers<[1], [1], [0], [0], [0, 0, 1, 0], [], []>} : vector<8x8xf32>, vector<8x8xf32>, vector<8x8xf32> -> vector<8x8xf32>
    %cst_281 = arith.constant dense<0xFF800000> : vector<8xf32>
    %398 = vector.multi_reduction <maximumf>, %397, %cst_281 [1] : vector<8x8xf32> to vector<8xf32>
    %399 = vector.shape_cast %398 : vector<8xf32> to vector<8x1xf32>
    %400 = vector.broadcast %399 : vector<8x1xf32> to vector<8x8xf32>
    %401 = arith.subf %397, %400 : vector<8x8xf32>
    %402 = math.exp %401 : vector<8x8xf32>
    %cst_282 = arith.constant dense<0.000000e+00> : vector<8xf32>
    %403 = vector.multi_reduction <add>, %402, %cst_282 [1] : vector<8x8xf32> to vector<8xf32>
    %404 = vector.shape_cast %403 : vector<8xf32> to vector<8x1xf32>
    %405 = vector.broadcast %404 : vector<8x1xf32> to vector<8x8xf32>
    %406 = arith.divf %402, %405 : vector<8x8xf32>
    %cst_283 = arith.constant dense<0.000000e+00> : vector<8x8xf32>
    %407 = tpu.matmul %406, %394, %cst_283 {dimension_numbers = #tpu.dot_dimension_numbers<[1], [0], [0], [1], [0, 0, 1, 1], [], []>} : vector<8x8xf32>, vector<8x8xf32>, vector<8x8xf32> -> vector<8x8xf32>
    %c3_284 = arith.constant 3 : index
    %c0_285 = arith.constant 0 : index
    %c0_286 = arith.constant 0 : index
    %408 = vector.load %arg26[%c3_284, %c0_285, %c0_286] : memref<4x8x32xf32, #tpu.memory_space<vmem>>, vector<1x8x32xf32>
    %409 = vector.shape_cast %408 : vector<1x8x32xf32> to vector<8x32xf32>
    %cst_287 = arith.constant dense<0.000000e+00> : vector<8x32xf32>
    %410 = tpu.matmul %407, %409, %cst_287 {dimension_numbers = #tpu.dot_dimension_numbers<[1], [0], [0], [1], [0, 0, 1, 1], [], []>} : vector<8x8xf32>, vector<8x32xf32>, vector<8x32xf32> -> vector<8x32xf32>
    %411 = arith.addf %373, %410 : vector<8x32xf32>
    %c0_288 = arith.constant 0 : index
    %c0_289 = arith.constant 0 : index
    %412 = vector.load %arg27[%c0_288, %c0_289] : memref<1x32xf32, #tpu.memory_space<vmem>>, vector<1x32xf32>
    %413 = vector.broadcast %412 : vector<1x32xf32> to vector<8x32xf32>
    %414 = arith.addf %411, %413 : vector<8x32xf32>
    %415 = arith.addf %260, %414 : vector<8x32xf32>
    %c0_290 = arith.constant 0 : index
    %c0_291 = arith.constant 0 : index
    %416 = vector.load %arg32[%c0_290, %c0_291] : memref<1x32xf32, #tpu.memory_space<vmem>>, vector<1x32xf32>
    %c0_292 = arith.constant 0 : index
    %c0_293 = arith.constant 0 : index
    %417 = vector.load %arg33[%c0_292, %c0_293] : memref<1x32xf32, #tpu.memory_space<vmem>>, vector<1x32xf32>
    %cst_294 = arith.constant dense<0.000000e+00> : vector<8xf32>
    %418 = vector.multi_reduction <add>, %415, %cst_294 [1] : vector<8x32xf32> to vector<8xf32>
    %419 = vector.shape_cast %418 : vector<8xf32> to vector<8x1xf32>
    %cst_295 = arith.constant 3.200000e+01 : f32
    %420 = vector.broadcast %cst_295 : f32 to vector<8x1xf32>
    %421 = arith.divf %419, %420 : vector<8x1xf32>
    %422 = vector.broadcast %421 : vector<8x1xf32> to vector<8x32xf32>
    %423 = arith.subf %415, %422 : vector<8x32xf32>
    %424 = arith.mulf %423, %423 : vector<8x32xf32>
    %cst_296 = arith.constant dense<0.000000e+00> : vector<8xf32>
    %425 = vector.multi_reduction <add>, %424, %cst_296 [1] : vector<8x32xf32> to vector<8xf32>
    %426 = vector.shape_cast %425 : vector<8xf32> to vector<8x1xf32>
    %cst_297 = arith.constant 3.200000e+01 : f32
    %427 = vector.broadcast %cst_297 : f32 to vector<8x1xf32>
    %428 = arith.divf %426, %427 : vector<8x1xf32>
    %429 = vector.broadcast %421 : vector<8x1xf32> to vector<8x32xf32>
    %430 = arith.subf %415, %429 : vector<8x32xf32>
    %cst_298 = arith.constant 9.99999974E-6 : f32
    %431 = vector.broadcast %cst_298 : f32 to vector<8x1xf32>
    %432 = arith.addf %428, %431 : vector<8x1xf32>
    %433 = math.rsqrt %432 : vector<8x1xf32>
    %434 = vector.broadcast %433 : vector<8x1xf32> to vector<8x32xf32>
    %435 = arith.mulf %430, %434 : vector<8x32xf32>
    %436 = vector.broadcast %416 : vector<1x32xf32> to vector<8x32xf32>
    %437 = arith.mulf %435, %436 : vector<8x32xf32>
    %438 = vector.broadcast %417 : vector<1x32xf32> to vector<8x32xf32>
    %439 = arith.addf %437, %438 : vector<8x32xf32>
    %c0_299 = arith.constant 0 : index
    %c0_300 = arith.constant 0 : index
    %440 = vector.load %arg28[%c0_299, %c0_300] : memref<32x32xf32, #tpu.memory_space<vmem>>, vector<32x32xf32>
    %cst_301 = arith.constant dense<0.000000e+00> : vector<8x32xf32>
    %441 = tpu.matmul %439, %440, %cst_301 {dimension_numbers = #tpu.dot_dimension_numbers<[1], [1], [0], [0], [0, 0, 1, 0], [], []>} : vector<8x32xf32>, vector<32x32xf32>, vector<8x32xf32> -> vector<8x32xf32>
    %c0_302 = arith.constant 0 : index
    %c0_303 = arith.constant 0 : index
    %442 = vector.load %arg29[%c0_302, %c0_303] : memref<1x32xf32, #tpu.memory_space<vmem>>, vector<1x32xf32>
    %443 = vector.broadcast %442 : vector<1x32xf32> to vector<8x32xf32>
    %444 = arith.addf %441, %443 : vector<8x32xf32>
    %cst_304 = arith.constant 5.000000e-01 : f32
    %445 = vector.broadcast %cst_304 : f32 to vector<8x32xf32>
    %446 = arith.mulf %445, %444 : vector<8x32xf32>
    %cst_305 = arith.constant 0.707106769 : f32
    %447 = vector.broadcast %cst_305 : f32 to vector<8x32xf32>
    %448 = arith.mulf %444, %447 : vector<8x32xf32>
    %449 = math.absf %448 : vector<8x32xf32>
    %cst_306 = arith.constant 0.327591091 : f32
    %450 = vector.broadcast %cst_306 : f32 to vector<8x32xf32>
    %451 = arith.mulf %450, %449 : vector<8x32xf32>
    %cst_307 = arith.constant 1.000000e+00 : f32
    %452 = vector.broadcast %cst_307 : f32 to vector<8x32xf32>
    %453 = arith.addf %452, %451 : vector<8x32xf32>
    %cst_308 = arith.constant 1.000000e+00 : f32
    %454 = vector.broadcast %cst_308 : f32 to vector<8x32xf32>
    %455 = arith.divf %454, %453 : vector<8x32xf32>
    %cst_309 = arith.constant 1.06140542 : f32
    %456 = vector.broadcast %cst_309 : f32 to vector<8x32xf32>
    %457 = arith.mulf %456, %455 : vector<8x32xf32>
    %cst_310 = arith.constant -1.45315206 : f32
    %458 = vector.broadcast %cst_310 : f32 to vector<8x32xf32>
    %459 = arith.addf %457, %458 : vector<8x32xf32>
    %460 = arith.mulf %459, %455 : vector<8x32xf32>
    %cst_311 = arith.constant 1.42141378 : f32
    %461 = vector.broadcast %cst_311 : f32 to vector<8x32xf32>
    %462 = arith.addf %460, %461 : vector<8x32xf32>
    %463 = arith.mulf %462, %455 : vector<8x32xf32>
    %cst_312 = arith.constant -0.284496725 : f32
    %464 = vector.broadcast %cst_312 : f32 to vector<8x32xf32>
    %465 = arith.addf %463, %464 : vector<8x32xf32>
    %466 = arith.mulf %465, %455 : vector<8x32xf32>
    %cst_313 = arith.constant 0.254829586 : f32
    %467 = vector.broadcast %cst_313 : f32 to vector<8x32xf32>
    %468 = arith.addf %466, %467 : vector<8x32xf32>
    %469 = arith.mulf %468, %455 : vector<8x32xf32>
    %cst_314 = arith.constant 0.000000e+00 : f32
    %470 = vector.broadcast %cst_314 : f32 to vector<8x32xf32>
    %471 = arith.subf %470, %449 : vector<8x32xf32>
    %472 = arith.mulf %471, %449 : vector<8x32xf32>
    %473 = math.exp %472 : vector<8x32xf32>
    %474 = arith.mulf %469, %473 : vector<8x32xf32>
    %cst_315 = arith.constant 1.000000e+00 : f32
    %475 = vector.broadcast %cst_315 : f32 to vector<8x32xf32>
    %476 = arith.subf %475, %474 : vector<8x32xf32>
    %cst_316 = arith.constant 0.000000e+00 : f32
    %477 = vector.broadcast %cst_316 : f32 to vector<8x32xf32>
    %478 = arith.cmpf oge, %448, %477 : vector<8x32xf32>
    %cst_317 = arith.constant 0.000000e+00 : f32
    %479 = vector.broadcast %cst_317 : f32 to vector<8x32xf32>
    %480 = arith.subf %479, %476 : vector<8x32xf32>
    %481 = arith.select %478, %476, %480 : vector<8x32xi1>, vector<8x32xf32>
    %cst_318 = arith.constant 1.000000e+00 : f32
    %482 = vector.broadcast %cst_318 : f32 to vector<8x32xf32>
    %483 = arith.addf %482, %481 : vector<8x32xf32>
    %484 = arith.mulf %446, %483 : vector<8x32xf32>
    %c0_319 = arith.constant 0 : index
    %c0_320 = arith.constant 0 : index
    %485 = vector.load %arg30[%c0_319, %c0_320] : memref<32x32xf32, #tpu.memory_space<vmem>>, vector<32x32xf32>
    %cst_321 = arith.constant dense<0.000000e+00> : vector<8x32xf32>
    %486 = tpu.matmul %484, %485, %cst_321 {dimension_numbers = #tpu.dot_dimension_numbers<[1], [1], [0], [0], [0, 0, 1, 0], [], []>} : vector<8x32xf32>, vector<32x32xf32>, vector<8x32xf32> -> vector<8x32xf32>
    %c0_322 = arith.constant 0 : index
    %c0_323 = arith.constant 0 : index
    %487 = vector.load %arg31[%c0_322, %c0_323] : memref<1x32xf32, #tpu.memory_space<vmem>>, vector<1x32xf32>
    %488 = vector.broadcast %487 : vector<1x32xf32> to vector<8x32xf32>
    %489 = arith.addf %486, %488 : vector<8x32xf32>
    %490 = arith.addf %444, %489 : vector<8x32xf32>
    %c0_324 = arith.constant 0 : index
    %c0_325 = arith.constant 0 : index
    %491 = vector.load %arg34[%c0_324, %c0_325] : memref<1x32xf32, #tpu.memory_space<vmem>>, vector<1x32xf32>
    %c0_326 = arith.constant 0 : index
    %c0_327 = arith.constant 0 : index
    %492 = vector.load %arg35[%c0_326, %c0_327] : memref<1x32xf32, #tpu.memory_space<vmem>>, vector<1x32xf32>
    %cst_328 = arith.constant dense<0.000000e+00> : vector<8xf32>
    %493 = vector.multi_reduction <add>, %490, %cst_328 [1] : vector<8x32xf32> to vector<8xf32>
    %494 = vector.shape_cast %493 : vector<8xf32> to vector<8x1xf32>
    %cst_329 = arith.constant 3.200000e+01 : f32
    %495 = vector.broadcast %cst_329 : f32 to vector<8x1xf32>
    %496 = arith.divf %494, %495 : vector<8x1xf32>
    %497 = vector.broadcast %496 : vector<8x1xf32> to vector<8x32xf32>
    %498 = arith.subf %490, %497 : vector<8x32xf32>
    %499 = arith.mulf %498, %498 : vector<8x32xf32>
    %cst_330 = arith.constant dense<0.000000e+00> : vector<8xf32>
    %500 = vector.multi_reduction <add>, %499, %cst_330 [1] : vector<8x32xf32> to vector<8xf32>
    %501 = vector.shape_cast %500 : vector<8xf32> to vector<8x1xf32>
    %cst_331 = arith.constant 3.200000e+01 : f32
    %502 = vector.broadcast %cst_331 : f32 to vector<8x1xf32>
    %503 = arith.divf %501, %502 : vector<8x1xf32>
    %504 = vector.broadcast %496 : vector<8x1xf32> to vector<8x32xf32>
    %505 = arith.subf %490, %504 : vector<8x32xf32>
    %cst_332 = arith.constant 9.99999974E-6 : f32
    %506 = vector.broadcast %cst_332 : f32 to vector<8x1xf32>
    %507 = arith.addf %503, %506 : vector<8x1xf32>
    %508 = math.rsqrt %507 : vector<8x1xf32>
    %509 = vector.broadcast %508 : vector<8x1xf32> to vector<8x32xf32>
    %510 = arith.mulf %505, %509 : vector<8x32xf32>
    %511 = vector.broadcast %491 : vector<1x32xf32> to vector<8x32xf32>
    %512 = arith.mulf %510, %511 : vector<8x32xf32>
    %513 = vector.broadcast %492 : vector<1x32xf32> to vector<8x32xf32>
    %514 = arith.addf %512, %513 : vector<8x32xf32>
    %cst_333 = arith.constant dense<0.000000e+00> : vector<32xf32>
    %515 = vector.multi_reduction <add>, %514, %cst_333 [0] : vector<8x32xf32> to vector<32xf32>
    %516 = vector.shape_cast %515 : vector<32xf32> to vector<1x32xf32>
    %cst_334 = arith.constant 8.000000e+00 : f32
    %517 = vector.broadcast %cst_334 : f32 to vector<1x32xf32>
    %518 = arith.divf %516, %517 : vector<1x32xf32>
    %c0_335 = arith.constant 0 : index
    %c0_336 = arith.constant 0 : index
    %519 = vector.load %arg36[%c0_335, %c0_336] : memref<1x32xf32, #tpu.memory_space<vmem>>, vector<1x32xf32>
    %520 = arith.mulf %518, %519 : vector<1x32xf32>
    %cst_337 = arith.constant dense<0.000000e+00> : vector<1xf32>
    %521 = vector.multi_reduction <add>, %520, %cst_337 [1] : vector<1x32xf32> to vector<1xf32>
    %522 = vector.shape_cast %521 : vector<1xf32> to vector<1x1xf32>
    %c0_338 = arith.constant 0 : index
    %c0_339 = arith.constant 0 : index
    %523 = vector.load %arg37[%c0_338, %c0_339] : memref<1x1xf32, #tpu.memory_space<vmem>>, vector<1x1xf32>
    %524 = arith.addf %522, %523 : vector<1x1xf32>
    %525 = vector.shape_cast %524 : vector<1x1xf32> to vector<1x1xf32>
    %526 = vector.broadcast %525 : vector<1x1xf32> to vector<1x128xf32>
    %c0_340 = arith.constant 0 : index
    %c0_341 = arith.constant 0 : index
    %c0_342 = arith.constant 0 : index
    %527 = vector.load %arg38[%c0_340, %c0_341, %c0_342] : memref<1x1x128xf32, #tpu.memory_space<vmem>>, vector<1x1x128xf32>
    %528 = vector.shape_cast %527 : vector<1x1x128xf32> to vector<1x128xf32>
    %529 = vector.shape_cast %526 : vector<1x128xf32> to vector<1x1x128xf32>
    tpu.vector_store %arg38[%c0_340, %c0_341, %c0_342], %529 {strides = array<i32>} : memref<1x1x128xf32, #tpu.memory_space<vmem>>, vector<1x1x128xf32>,
    return
  }
  func.func @transform_0(%arg0: i32) -> (i32, i32, i32) {
    %c0_i32 = arith.constant 0 : i32
    %c0_i32_0 = arith.constant 0 : i32
    %c0_i32_1 = arith.constant 0 : i32
    return %arg0, %c0_i32, %c0_i32_0 : i32, i32, i32
  }
  func.func @transform_1(%arg0: i32) -> (i32, i32) {
    %c0_i32 = arith.constant 0 : i32
    %c0_i32_0 = arith.constant 0 : i32
    %c0_i32_1 = arith.constant 0 : i32
    return %c0_i32, %c0_i32_0 : i32, i32
  }
  func.func @transform_2(%arg0: i32) -> (i32, i32) {
    %c0_i32 = arith.constant 0 : i32
    %c0_i32_0 = arith.constant 0 : i32
    %c0_i32_1 = arith.constant 0 : i32
    return %c0_i32, %c0_i32_0 : i32, i32
  }
  func.func @transform_3(%arg0: i32) -> (i32, i32, i32) {
    %c0_i32 = arith.constant 0 : i32
    %c0_i32_0 = arith.constant 0 : i32
    %c0_i32_1 = arith.constant 0 : i32
    %c0_i32_2 = arith.constant 0 : i32
    return %c0_i32, %c0_i32_0, %c0_i32_1 : i32, i32, i32
  }
  func.func @transform_4(%arg0: i32) -> (i32, i32, i32) {
    %c0_i32 = arith.constant 0 : i32
    %c0_i32_0 = arith.constant 0 : i32
    %c0_i32_1 = arith.constant 0 : i32
    %c0_i32_2 = arith.constant 0 : i32
    return %c0_i32, %c0_i32_0, %c0_i32_1 : i32, i32, i32
  }
  func.func @transform_5(%arg0: i32) -> (i32, i32, i32) {
    %c0_i32 = arith.constant 0 : i32
    %c0_i32_0 = arith.constant 0 : i32
    %c0_i32_1 = arith.constant 0 : i32
    %c0_i32_2 = arith.constant 0 : i32
    return %c0_i32, %c0_i32_0, %c0_i32_1 : i32, i32, i32
  }
  func.func @transform_6(%arg0: i32) -> (i32, i32, i32) {
    %c0_i32 = arith.constant 0 : i32
    %c0_i32_0 = arith.constant 0 : i32
    %c0_i32_1 = arith.constant 0 : i32
    %c0_i32_2 = arith.constant 0 : i32
    return %c0_i32, %c0_i32_0, %c0_i32_1 : i32, i32, i32
  }
  func.func @transform_7(%arg0: i32) -> (i32, i32, i32) {
    %c0_i32 = arith.constant 0 : i32
    %c0_i32_0 = arith.constant 0 : i32
    %c0_i32_1 = arith.constant 0 : i32
    %c0_i32_2 = arith.constant 0 : i32
    return %c0_i32, %c0_i32_0, %c0_i32_1 : i32, i32, i32
  }
  func.func @transform_8(%arg0: i32) -> (i32, i32, i32) {
    %c0_i32 = arith.constant 0 : i32
    %c0_i32_0 = arith.constant 0 : i32
    %c0_i32_1 = arith.constant 0 : i32
    %c0_i32_2 = arith.constant 0 : i32
    return %c0_i32, %c0_i32_0, %c0_i32_1 : i32, i32, i32
  }
  func.func @transform_9(%arg0: i32) -> (i32, i32, i32) {
    %c0_i32 = arith.constant 0 : i32
    %c0_i32_0 = arith.constant 0 : i32
    %c0_i32_1 = arith.constant 0 : i32
    %c0_i32_2 = arith.constant 0 : i32
    return %c0_i32, %c0_i32_0, %c0_i32_1 : i32, i32, i32
  }
  func.func @transform_10(%arg0: i32) -> (i32, i32) {
    %c0_i32 = arith.constant 0 : i32
    %c0_i32_0 = arith.constant 0 : i32
    %c0_i32_1 = arith.constant 0 : i32
    return %c0_i32, %c0_i32_0 : i32, i32
  }
  func.func @transform_11(%arg0: i32) -> (i32, i32) {
    %c0_i32 = arith.constant 0 : i32
    %c0_i32_0 = arith.constant 0 : i32
    %c0_i32_1 = arith.constant 0 : i32
    return %c0_i32, %c0_i32_0 : i32, i32
  }
  func.func @transform_12(%arg0: i32) -> (i32, i32) {
    %c0_i32 = arith.constant 0 : i32
    %c0_i32_0 = arith.constant 0 : i32
    %c0_i32_1 = arith.constant 0 : i32
    return %c0_i32, %c0_i32_0 : i32, i32
  }
  func.func @transform_13(%arg0: i32) -> (i32, i32) {
    %c0_i32 = arith.constant 0 : i32
    %c0_i32_0 = arith.constant 0 : i32
    %c0_i32_1 = arith.constant 0 : i32
    return %c0_i32, %c0_i32_0 : i32, i32
  }
  func.func @transform_14(%arg0: i32) -> (i32, i32) {
    %c0_i32 = arith.constant 0 : i32
    %c0_i32_0 = arith.constant 0 : i32
    %c0_i32_1 = arith.constant 0 : i32
    return %c0_i32, %c0_i32_0 : i32, i32
  }
  func.func @transform_15(%arg0: i32) -> (i32, i32) {
    %c0_i32 = arith.constant 0 : i32
    %c0_i32_0 = arith.constant 0 : i32
    %c0_i32_1 = arith.constant 0 : i32
    return %c0_i32, %c0_i32_0 : i32, i32
  }
  func.func @transform_16(%arg0: i32) -> (i32, i32) {
    %c0_i32 = arith.constant 0 : i32
    %c0_i32_0 = arith.constant 0 : i32
    %c0_i32_1 = arith.constant 0 : i32
    return %c0_i32, %c0_i32_0 : i32, i32
  }
  func.func @transform_17(%arg0: i32) -> (i32, i32) {
    %c0_i32 = arith.constant 0 : i32
    %c0_i32_0 = arith.constant 0 : i32
    %c0_i32_1 = arith.constant 0 : i32
    return %c0_i32, %c0_i32_0 : i32, i32
  }
  func.func @transform_18(%arg0: i32) -> (i32, i32) {
    %c0_i32 = arith.constant 0 : i32
    %c0_i32_0 = arith.constant 0 : i32
    %c0_i32_1 = arith.constant 0 : i32
    return %c0_i32, %c0_i32_0 : i32, i32
  }
  func.func @transform_19(%arg0: i32) -> (i32, i32, i32) {
    %c0_i32 = arith.constant 0 : i32
    %c0_i32_0 = arith.constant 0 : i32
    %c0_i32_1 = arith.constant 0 : i32
    %c0_i32_2 = arith.constant 0 : i32
    return %c0_i32, %c0_i32_0, %c0_i32_1 : i32, i32, i32
  }
  func.func @transform_20(%arg0: i32) -> (i32, i32, i32) {
    %c0_i32 = arith.constant 0 : i32
    %c0_i32_0 = arith.constant 0 : i32
    %c0_i32_1 = arith.constant 0 : i32
    %c0_i32_2 = arith.constant 0 : i32
    return %c0_i32, %c0_i32_0, %c0_i32_1 : i32, i32, i32
  }
  func.func @transform_21(%arg0: i32) -> (i32, i32, i32) {
    %c0_i32 = arith.constant 0 : i32
    %c0_i32_0 = arith.constant 0 : i32
    %c0_i32_1 = arith.constant 0 : i32
    %c0_i32_2 = arith.constant 0 : i32
    return %c0_i32, %c0_i32_0, %c0_i32_1 : i32, i32, i32
  }
  func.func @transform_22(%arg0: i32) -> (i32, i32, i32) {
    %c0_i32 = arith.constant 0 : i32
    %c0_i32_0 = arith.constant 0 : i32
    %c0_i32_1 = arith.constant 0 : i32
    %c0_i32_2 = arith.constant 0 : i32
    return %c0_i32, %c0_i32_0, %c0_i32_1 : i32, i32, i32
  }
  func.func @transform_23(%arg0: i32) -> (i32, i32, i32) {
    %c0_i32 = arith.constant 0 : i32
    %c0_i32_0 = arith.constant 0 : i32
    %c0_i32_1 = arith.constant 0 : i32
    %c0_i32_2 = arith.constant 0 : i32
    return %c0_i32, %c0_i32_0, %c0_i32_1 : i32, i32, i32
  }
  func.func @transform_24(%arg0: i32) -> (i32, i32, i32) {
    %c0_i32 = arith.constant 0 : i32
    %c0_i32_0 = arith.constant 0 : i32
    %c0_i32_1 = arith.constant 0 : i32
    %c0_i32_2 = arith.constant 0 : i32
    return %c0_i32, %c0_i32_0, %c0_i32_1 : i32, i32, i32
  }
  func.func @transform_25(%arg0: i32) -> (i32, i32, i32) {
    %c0_i32 = arith.constant 0 : i32
    %c0_i32_0 = arith.constant 0 : i32
    %c0_i32_1 = arith.constant 0 : i32
    %c0_i32_2 = arith.constant 0 : i32
    return %c0_i32, %c0_i32_0, %c0_i32_1 : i32, i32, i32
  }
  func.func @transform_26(%arg0: i32) -> (i32, i32) {
    %c0_i32 = arith.constant 0 : i32
    %c0_i32_0 = arith.constant 0 : i32
    %c0_i32_1 = arith.constant 0 : i32
    return %c0_i32, %c0_i32_0 : i32, i32
  }
  func.func @transform_27(%arg0: i32) -> (i32, i32) {
    %c0_i32 = arith.constant 0 : i32
    %c0_i32_0 = arith.constant 0 : i32
    %c0_i32_1 = arith.constant 0 : i32
    return %c0_i32, %c0_i32_0 : i32, i32
  }
  func.func @transform_28(%arg0: i32) -> (i32, i32) {
    %c0_i32 = arith.constant 0 : i32
    %c0_i32_0 = arith.constant 0 : i32
    %c0_i32_1 = arith.constant 0 : i32
    return %c0_i32, %c0_i32_0 : i32, i32
  }
  func.func @transform_29(%arg0: i32) -> (i32, i32) {
    %c0_i32 = arith.constant 0 : i32
    %c0_i32_0 = arith.constant 0 : i32
    %c0_i32_1 = arith.constant 0 : i32
    return %c0_i32, %c0_i32_0 : i32, i32
  }
  func.func @transform_30(%arg0: i32) -> (i32, i32) {
    %c0_i32 = arith.constant 0 : i32
    %c0_i32_0 = arith.constant 0 : i32
    %c0_i32_1 = arith.constant 0 : i32
    return %c0_i32, %c0_i32_0 : i32, i32
  }
  func.func @transform_31(%arg0: i32) -> (i32, i32) {
    %c0_i32 = arith.constant 0 : i32
    %c0_i32_0 = arith.constant 0 : i32
    %c0_i32_1 = arith.constant 0 : i32
    return %c0_i32, %c0_i32_0 : i32, i32
  }
  func.func @transform_32(%arg0: i32) -> (i32, i32) {
    %c0_i32 = arith.constant 0 : i32
    %c0_i32_0 = arith.constant 0 : i32
    %c0_i32_1 = arith.constant 0 : i32
    return %c0_i32, %c0_i32_0 : i32, i32
  }
  func.func @transform_33(%arg0: i32) -> (i32, i32) {
    %c0_i32 = arith.constant 0 : i32
    %c0_i32_0 = arith.constant 0 : i32
    %c0_i32_1 = arith.constant 0 : i32
    return %c0_i32, %c0_i32_0 : i32, i32
  }
  func.func @transform_34(%arg0: i32) -> (i32, i32) {
    %c0_i32 = arith.constant 0 : i32
    %c0_i32_0 = arith.constant 0 : i32
    %c0_i32_1 = arith.constant 0 : i32
    return %c0_i32, %c0_i32_0 : i32, i32
  }
  func.func @transform_35(%arg0: i32) -> (i32, i32) {
    %c0_i32 = arith.constant 0 : i32
    %c0_i32_0 = arith.constant 0 : i32
    %c0_i32_1 = arith.constant 0 : i32
    return %c0_i32, %c0_i32_0 : i32, i32
  }
  func.func @transform_36(%arg0: i32) -> (i32, i32) {
    %c0_i32 = arith.constant 0 : i32
    %c0_i32_0 = arith.constant 0 : i32
    %c0_i32_1 = arith.constant 0 : i32
    return %c0_i32, %c0_i32_0 : i32, i32
  }
  func.func @transform_37(%arg0: i32) -> (i32, i32, i32) {
    %c0_i32 = arith.constant 0 : i32
    %c0_i32_0 = arith.constant 0 : i32
    %c0_i32_1 = arith.constant 0 : i32
    return %arg0, %c0_i32, %c0_i32_0 : i32, i32, i32
  }
}

</mosaic_0001>

<bundles_post_ra>
// kernel: tpu_custom_call.1
= control target key start
LH: loop header
LB: loop body
LE: loop exit
PB: predicated region body
PF: predicated region fallthrough
CT: control target
= control target key end

     0   :  { %s8103_s6 = smov 1   ;;  %s8104_s10 = smov 2   ;;  %s9084_s0 = inlined_call_operand.smem [shape: u32[38], index: -1, kind: input, shape index: {}] }
   0x1   :  { %s8180_s5 = sld [smem:[%s9084_s0]]   ;;  %s8105_s14 = smov 3  }
   0x2   :  { %s8185_s9 = sld [smem:[%s9084_s0 + %s8103_s6]]   ;;  %s8106_s18 = smov 4  }
   0x3   :  { %s8190_s13 = sld [smem:[%s9084_s0 + %s8104_s10]]   ;;  %s8107_s22 = smov 5  }
   0x4   :  { %s8195_s17 = sld [smem:[%s9084_s0 + %s8105_s14]]   ;;  %s8108_s26 = smov 6  }
   0x5   :  { %s8200_s21 = sld [smem:[%s9084_s0 + %s8106_s18]]   ;;  %s8109_s30 = smov 7  }
   0x6   :  { %s8205_s25 = sld [smem:[%s9084_s0 + %s8107_s22]]   ;;  %s8110_s4 = smov 8  }
   0x7   :  { %9105 = sst [smem:[#allocation56_spill]] %s8180_s5  ;;  %s8111_s10 = smov 9  }
   0x8   :  { %9106 = sst [smem:[#allocation57_spill]] %s8185_s9  ;;  %s8112_s15 = smov 10  }
   0x9   :  { %9107 = sst [smem:[#allocation58_spill]] %s8190_s13  ;;  %s8113_s20 = smov 11  }
   0xa   :  { %9108 = sst [smem:[#allocation59_spill]] %s8195_s17  ;;  %s8115_s1 = smov 13  }
   0xb   :  { %s8210_s29 = sld [smem:[%s9084_s0 + %s8108_s26]]   ;;  %s8114_s26 = smov 12  }
   0xc   :  { %9109 = sst [smem:[#allocation60_spill]] %s8205_s25  ;;  %s8116_s7 = smov 14  }
   0xd   :  { %s8215_s3 = sld [smem:[%s9084_s0 + %s8109_s30]]   ;;  %s8118_s22 = smov 16  }
   0xe   :  { %s8220_s8 = sld [smem:[%s9084_s0 + %s8110_s4]]   ;;  %s8119_s28 = smov 17  }
   0xf   :  { %s8225_s14 = sld [smem:[%s9084_s0 + %s8111_s10]]  }
  0x10   :  { %s8230_s19 = sld [smem:[%s9084_s0 + %s8112_s15]]   ;;  %s8117_s15 = smov 15  }
  0x11   :  { %s8235_s24 = sld [smem:[%s9084_s0 + %s8113_s20]]  }
  0x12   :  { %s8240_s30 = sld [smem:[%s9084_s0 + %s8114_s26]]  }
  0x13   :  { %9110 = sst [smem:[#allocation61_spill]] %s8215_s3 }
  0x14   :  { %9111 = sst [smem:[#allocation62_spill]] %s8220_s8 }
  0x15   :  { %9112 = sst [smem:[#allocation63_spill]] %s8225_s14 }
  0x16   :  { %9113 = sst [smem:[#allocation64_spill]] %s8230_s19 }
  0x17   :  { %s8245_s6 = sld [smem:[%s9084_s0 + %s8115_s1]]   ;;  %s8139_s1 = smov 37  }
  0x18   :  { %9114 = sst [smem:[#allocation65_spill]] %s8240_s30 }
  0x19   :  { %s8250_s12 = sld [smem:[%s9084_s0 + %s8116_s7]]   ;;  %s8120_s7 = smov 18  }
  0x1a   :  { %s8255_s20 = sld [smem:[%s9084_s0 + %s8117_s15]]   ;;  %s8121_s15 = smov 19  }
  0x1b   :  { %s8260_s27 = sld [smem:[%s9084_s0 + %s8118_s22]]   ;;  %s8122_s22 = smov 20  }
  0x1c   :  { %s8265_s4 = sld [smem:[%s9084_s0 + %s8119_s28]]   ;;  %s8123_s28 = smov 21  }
  0x1d   :  { %9115 = sst [smem:[#allocation66_spill]] %s8245_s6 }
  0x1e   :  { %s8270_s19 = sld [smem:[%s9084_s0 + %s8120_s7]]   ;;  %s8124_s7 = smov 22  }
  0x1f   :  { %9116 = sst [smem:[#allocation67_spill]] %s8250_s12 }
  0x20   :  { %s8275_s14 = sld [smem:[%s9084_s0 + %s8121_s15]]   ;;  %s8125_s15 = smov 23  }
  0x21   :  { %9117 = sst [smem:[#allocation68_spill]] %s8260_s27 }
  0x22   :  { %9118 = sst [smem:[#allocation69_spill]] %s8265_s4 }
  0x23   :  { %s8280_s17 = sld [smem:[%s9084_s0 + %s8122_s22]]   ;;  %s8126_s22 = smov 24  }
  0x24   :  { %9119 = sst [smem:[#allocation70_spill]] %s8270_s19 }
  0x25   :  { %s8285_s9 = sld [smem:[%s9084_s0 + %s8123_s28]]   ;;  %s8127_s28 = smov 25  }
  0x26   :  { %s8290_s5 = sld [smem:[%s9084_s0 + %s8124_s7]]   ;;  %s8128_s7 = smov 26  }
  0x27   :  { %s8295_s19 = sld [smem:[%s9084_s0 + %s8125_s15]]   ;;  %s8129_s15 = smov 27  }
  0x28   :  { %s8305_s27 = sld [smem:[%s9084_s0 + %s8127_s28]]   ;;  %s8131_s28 = smov 29  }
  0x29   :  { %9120 = sst [smem:[#allocation71_spill]] %s8280_s17 }
  0x2a   :  { %s8300_s17 = sld [smem:[%s9084_s0 + %s8126_s22]]   ;;  %s8130_s22 = smov 28  }
  0x2b   :  { %9121 = sst [smem:[#allocation72_spill]] %s8285_s9 }
  0x2c   :  { %9122 = sst [smem:[#allocation73_spill]] %s8290_s5 }
  0x2d   :  { %s8310_s5 = sld [smem:[%s9084_s0 + %s8128_s7]]   ;;  %s8132_s7 = smov 30  }
  0x2e   :  { %s8315_s12 = sld [smem:[%s9084_s0 + %s8129_s15]]   ;;  %s8133_s15 = smov 31  }
  0x2f   :  { %s8325_s30 = sld [smem:[%s9084_s0 + %s8131_s28]]   ;;  %s8135_s28 = smov 33  }
  0x30   :  { %9123 = sst [smem:[#allocation74_spill]] %s8300_s17 }
  0x31   :  { %s8320_s17 = sld [smem:[%s9084_s0 + %s8130_s22]]   ;;  %s8134_s22 = smov 32  }
  0x33   :  { %9124 = sst [smem:[#allocation75_spill]] %s8310_s5 }
  0x34   :  { %9125 = sst [smem:[#allocation76_spill]] %s8315_s12 }
  0x35   :  { %9127 = sst [smem:[#allocation78_spill]] %s8325_s30 }
  0x36   :  { %s8330_s5 = sld [smem:[%s9084_s0 + %s8132_s7]]   ;;  %s8136_s7 = smov 34  }
  0x37   :  { %9126 = sst [smem:[#allocation77_spill]] %s8320_s17 }
  0x38   :  { %s8335_s12 = sld [smem:[%s9084_s0 + %s8133_s15]]   ;;  %s8137_s15 = smov 35  }
  0x39   :  { %s8340_s17 = sld [smem:[%s9084_s0 + %s8134_s22]]   ;;  %s8138_s22 = smov 36  }
  0x3a   :  { %s8345_s30 = sld [smem:[%s9084_s0 + %s8135_s28]]  }
  0x3c   :  { %9128 = sst [smem:[#allocation79_spill]] %s8330_s5 }
  0x3d   :  { %s8350_s5 = sld [smem:[%s9084_s0 + %s8136_s7]]  }
  0x3e   :  { %9129 = sst [smem:[#allocation80_spill]] %s8335_s12 }
  0x3f   :  { %9130 = sst [smem:[#allocation81_spill]] %s8340_s17 }
  0x40   :  { %9131 = sst [smem:[#allocation82_spill]] %s8345_s30 }
  0x41   :  { %s8355_s12 = sld [smem:[%s9084_s0 + %s8137_s15]]  }
  0x42   :  { %s6367_s17 = sld [smem:[%s9084_s0 + %s8138_s22]]  }
  0x43   :  { %9132 = sst [smem:[#allocation83_spill]] %s8350_s5 }
  0x44   :  { %s8363_s30 = sld [smem:[%s9084_s0 + %s8139_s1]]  }
  0x47   :  { %9133 = sst [smem:[#allocation84_spill]] %s8355_s12 }
  0x48   :  { %v80_v0 = vstv %s6367_s17 }
  0x49   :  { %81 = vst [vmem:[#allocation2] sm:$0x1] %v80_v0 }
  0x4a   :  { %9134 = sst [smem:[#allocation85_spill]] %s8363_s30 }
  0x4b   :  { %82 = vsyncpa [#allocation4], 0 }
  0x4c   :  { %84 = vsyncpa [#allocation4 + $0x1], 0 }
  0x4d   :  { %85 = vsyncpa [#allocation7], 0 }
  0x4e   :  { %86 = vsyncpa [#allocation10], 0 }
  0x4f   :  { %87 = vsyncpa [#allocation13], 0 }
  0x50   :  { %88 = vsyncpa [#allocation16], 0 }
  0x51   :  { %89 = vsyncpa [#allocation19], 0 }
  0x52   :  { %90 = vsyncpa [#allocation22], 0 }
  0x53   :  { %91 = vsyncpa [#allocation25], 0 }
  0x54   :  { %92 = vsyncpa [#allocation28], 0 }
  0x55   :  { %93 = vsyncpa [#allocation31], 0 }
  0x56   :  { %94 = vsyncpa [#allocation34], 0 }
  0x57   :  { %95 = vsyncpa [#allocation37], 0 }
  0x58   :  { %96 = vsyncpa [#allocation40], 0 }
  0x59   :  { %97 = vsyncpa [#allocation5], 0 }
  0x5a   :  { %99 = vsyncpa [#allocation5 + $0x1], 0  ;;  %s8365_s0 = smov 0   ;;  %s8367_s17 = smov 0  }
  0x5b   :  { %s8369_s7 = smov 0   ;;  %s8371_s10 = smov 0  }
  0x5c LB: > { %s8140_s11 = smov [#allocation6]   ;;  %s8386_s16 = sadd.s32 4294967295, %s8101_s10   ;;  %s8101_s10 = sphi %s8371_s10, %s9210_s10   ;;  %s8097_s7 = sphi %s8369_s7, %s9209_s7   ;;  %s8093_s17 = sphi %s8367_s17, %s9208_s17   ;;  %s8089_s0 = sphi %s8365_s0, %s9207_s0  }
  0x5d   : > { %s934_s15 = sshll.u32 %s8140_s11, 4  ;;  %p6371_p0 = scmp.ge.s32.totalorder %s8101_s10, 1  ;;  %s935_s15 = int_to_ptr.vmem [resolvable:$true] %s934_s15 }
  0x5e   : > { %p9090_p1 = scmp.eq.s32.totalorder %s8386_s16, 0  ;;  %p918_p2 = scmp.lt.s32.totalorder %s8101_s10, 3 }
  0x5f   : > { %s8141_s22 = smov [#allocation9]   ;;  %s8142_s1 = smov [#allocation12]  }
  0x60   : > { %p8391_p3 = pnand %p6371_p0, %p918_p2  ;;  %s960_s23 = sshll.u32 %s8141_s22, 4  ;;  %s8404_s23 = int_to_ptr.vmem [resolvable:$true] %s960_s23 }
  0x61   : > { %s986_s28 = sshll.u32 %s8142_s1, 4  ;;  %s7374_s11 = scalar_lea.vmem %s935_s15, 16  ;;  %s987_s28 = int_to_ptr.vmem [resolvable:$true] %s986_s28 }
  0x62   : > { %s9135_s18 = scalar_select %p8391_p3, 1, 0 }
  0x63   : > { %p7088_p5 = pneg %p8391_p3  ;;  %p7375_p8 = scmp.ne.s32.totalorder %s935_s15, %s7374_s11 }
  0x64   : > { %s7381_s22 = scalar_lea.vmem %s935_s15, 32  ;;  %p7382_p11 = scmp.lt.s32.totalorder %s935_s15, %s935_s15 }
  0x65   : > { %p8400_p6 = pnand %p7088_p5, %p9090_p1  ;;  %p7383_p12 = scmp.lt.s32.totalorder %s7381_s22, %s7374_s11 }
  0x67   : > { %p8408_p7 = pneg %p8400_p6  ;;  %p7384_p13 = por %p7383_p12, %p7382_p11 }
  0x69   : > { %p7377_p9 = pnand %p7375_p8, %p8408_p7 }
  0x6b   : > { %p7378_p10 = pneg %p7377_p9 }
  0x6d   : > { %p7385_p0 = pnand %p7384_p13, %p7378_p10 }
  0x6f   : > { %7388 = shalt.err (!%p7385_p0)
}
  0x70   : > { %s9138_s13 = sld [smem:[#allocation58_spill]]  ;;  %s7400_s1 = scalar_lea.vmem %s8404_s23, 512 }
  0x71   : > { %p7401_p2 = scmp.ne.s32.totalorder %s8404_s23, %s7400_s1  ;;  %p7408_p9 = scmp.lt.s32.totalorder %s8404_s23, %s8404_s23 }
  0x72   : > { %p7409_p4 = scmp.lt.s32.totalorder %s7400_s1, %s7400_s1 }
  0x73   : > { %p7403_p5 = pnand %p7401_p2, %p8408_p7 }
  0x74   : > { %p7410_p1 = por %p7409_p4, %p7408_p9 }
  0x75   : > { %p7404_p8 = pneg %p7403_p5 }
  0x76   : > { %7091 = dma.hbm_to_vmem [thread:$0]  (!%p8400_p6), %s9138_s13, 16, %s935_s15, [#allocation7]  }
  0x77   : > { %p7411_p11 = pnand %p7410_p1, %p7404_p8 }
  0x79   : > { %7414 = shalt.err (!%p7411_p11)
}
  0x7a   : > { %s9091_s11 = smov 128   ;;  %s9139_s25 = sld [smem:[#allocation60_spill]] }
  0x7b   : > { %s9093_s22 = smov 8   ;;  %s7426_s15 = scalar_lea.vmem %s987_s28, 64 }
  0x7c   : > { %p7427_p10 = scmp.ne.s32.totalorder %s987_s28, %s7426_s15  ;;  %p7434_p4 = scmp.lt.s32.totalorder %s987_s28, %s987_s28 }
  0x7d   : > { %p7435_p1 = scmp.lt.s32.totalorder %s7426_s15, %s7426_s15 }
  0x7e   : > { %p7429_p12 = pnand %p7427_p10, %p8408_p7 }
  0x7f   : > { %p7436_p0 = por %p7435_p1, %p7434_p4 }
  0x80   : > { %7097 = dma.hbm_to_vmem [thread:$0]  (!%p8400_p6), %s9139_s25, 512, %s8404_s23, [#allocation10], %s9091_s11, %s9091_s11, %s9093_s22  }
  0x81   : > { %p7430_p13 = pneg %p7429_p12 }
  0x83   : > { %p7437_p2 = pnand %p7436_p0, %p7430_p13 }
  0x85   : > { %7440 = shalt.err (!%p7437_p2)
}
  0x86   : > { %s9096_s1 = smov 16   ;;  %s9140_s3 = sld [smem:[#allocation61_spill]] }
  0x87   : > { %s9099_s13 = smov 1   ;;  %s8147_s23 = smov [#allocation15]  }
  0x88   : > { %s1018_s11 = sshll.u32 %s8147_s23, 4  ;;  %s8148_s22 = smov [#allocation18]   ;;  %s1019_s11 = int_to_ptr.vmem [resolvable:$true] %s1018_s11 }
  0x89   : > { %s1042_s25 = sshll.u32 %s8148_s22, 4  ;;  %s7452_s30 = scalar_lea.vmem %s1019_s11, 512  ;;  %s1043_s25 = int_to_ptr.vmem [resolvable:$true] %s1042_s25 }
  0x8a   : > { %p7453_p5 = scmp.ne.s32.totalorder %s1019_s11, %s7452_s30  ;;  %p7460_p11 = scmp.lt.s32.totalorder %s1019_s11, %s1019_s11 }
  0x8b   : > { %p7461_p10 = scmp.lt.s32.totalorder %s7452_s30, %s7452_s30 }
  0x8c   : > { %7103 = dma.hbm_to_vmem [thread:$0]  (!%p8400_p6), %s9140_s3, 64, %s987_s28, [#allocation13], %s9096_s1, %s9096_s1, %s9099_s13  }
  0x8d   : > { %p7455_p8 = pnand %p7453_p5, %p8408_p7  ;;  %p7462_p12 = por %p7461_p10, %p7460_p11 }
  0x8f   : > { %p7456_p9 = pneg %p7455_p8 }
  0x91   : > { %p7463_p13 = pnand %p7462_p12, %p7456_p9 }
  0x93   : > { %7466 = shalt.err (!%p7463_p13)
}
  0x94   : > { %s9141_s15 = smov 8   ;;  %s9142_s12 = smov 128  }
  0x95   : > { %7109 = dma.hbm_to_vmem [thread:$0]  (!%p8400_p6), %s8235_s24, 512, %s1019_s11, [#allocation16], %s9142_s12, %s9142_s12, %s9141_s15  }
  0x96   : > { %s7478_s28 = scalar_lea.vmem %s1043_s25, 512  ;;  %p7486_p2 = scmp.lt.s32.totalorder %s1043_s25, %s1043_s25 }
  0x97   : > { %p7479_p4 = scmp.ne.s32.totalorder %s1043_s25, %s7478_s28  ;;  %p7487_p5 = scmp.lt.s32.totalorder %s7478_s28, %s7478_s28 }
  0x99   : > { %p7481_p1 = pnand %p7479_p4, %p8408_p7  ;;  %p7488_p8 = por %p7487_p5, %p7486_p2 }
  0x9b   : > { %p7482_p0 = pneg %p7481_p1 }
  0x9d   : > { %p7489_p11 = pnand %p7488_p8, %p7482_p0 }
  0x9f   : > { %7492 = shalt.err (!%p7489_p11)
}
  0xa0   : > { %s9143_s6 = sld [smem:[#allocation66_spill]]  ;;  %s8149_s30 = smov [#allocation21]  }
  0xa1   : > { %s1067_s11 = sshll.u32 %s8149_s30, 4  ;;  %s8150_s22 = smov [#allocation24]   ;;  %s1068_s11 = int_to_ptr.vmem [resolvable:$true] %s1067_s11 }
  0xa2   : > { %s1089_s23 = sshll.u32 %s8150_s22, 4  ;;  %s7504_s1 = scalar_lea.vmem %s1068_s11, 16  ;;  %s1090_s23 = int_to_ptr.vmem [resolvable:$true] %s1089_s23 }
  0xa3   : > { %p7505_p9 = scmp.ne.s32.totalorder %s1068_s11, %s7504_s1  ;;  %s7511_s28 = scalar_lea.vmem %s1068_s11, 32 }
  0xa4   : > { %p7512_p13 = scmp.lt.s32.totalorder %s1068_s11, %s1068_s11  ;;  %p7513_p4 = scmp.lt.s32.totalorder %s7511_s28, %s7504_s1 }
  0xa5   : > { %p7507_p10 = pnand %p7505_p9, %p8408_p7 }
  0xa6   : > { %7115 = dma.hbm_to_vmem [thread:$0]  (!%p8400_p6), %s9143_s6, 512, %s1043_s25, [#allocation19], %s9142_s12, %s9142_s12, %s9141_s15  }
  0xa7   : > { %p7508_p12 = pneg %p7507_p10  ;;  %p7514_p1 = por %p7513_p4, %p7512_p13 }
  0xa9   : > { %p7515_p0 = pnand %p7514_p1, %p7508_p12 }
  0xab   : > { %7518 = shalt.err (!%p7515_p0)
}
  0xac   : > { %7121 = dma.hbm_to_vmem [thread:$0]  (!%p8400_p6), %s8255_s20, 16, %s1068_s11, [#allocation22]  }
  0xad   : > { %s7530_s25 = scalar_lea.vmem %s1090_s23, 16  ;;  %s7537_s30 = scalar_lea.vmem %s1090_s23, 32 }
  0xae   : > { %p7531_p2 = scmp.ne.s32.totalorder %s1090_s23, %s7530_s25  ;;  %p7538_p11 = scmp.lt.s32.totalorder %s1090_s23, %s1090_s23 }
  0xaf   : > { %p7539_p9 = scmp.lt.s32.totalorder %s7537_s30, %s7530_s25 }
  0xb0   : > { %p7533_p5 = pnand %p7531_p2, %p8408_p7 }
  0xb1   : > { %p7540_p10 = por %p7539_p9, %p7538_p11 }
  0xb2   : > { %p7534_p8 = pneg %p7533_p5 }
  0xb4   : > { %p7541_p3 = pnand %p7540_p10, %p7534_p8 }
  0xb6   : > { %7544 = shalt.err (!%p7541_p3)
}
  0xb7   : > { %s9144_s4 = sld [smem:[#allocation69_spill]]  ;;  %s8151_s1 = smov [#allocation27]  }
  0xb8   : > { %s1110_s22 = sshll.u32 %s8151_s1, 4  ;;  %s8152_s11 = smov [#allocation30]   ;;  %s1111_s22 = int_to_ptr.vmem [resolvable:$true] %s1110_s22 }
  0xb9   : > { %s1136_s28 = sshll.u32 %s8152_s11, 4  ;;  %s7556_s13 = scalar_lea.vmem %s1111_s22, 512  ;;  %s1137_s28 = int_to_ptr.vmem [resolvable:$true] %s1136_s28 }
  0xba   : > { %p7557_p12 = scmp.ne.s32.totalorder %s1111_s22, %s7556_s13  ;;  %p7564_p1 = scmp.lt.s32.totalorder %s1111_s22, %s1111_s22 }
  0xbb   : > { %p7565_p0 = scmp.lt.s32.totalorder %s7556_s13, %s7556_s13 }
  0xbc   : > { %p7559_p13 = pnand %p7557_p12, %p8408_p7 }
  0xbd   : > { %7127 = dma.hbm_to_vmem [thread:$0]  (!%p8400_p6), %s9144_s4, 16, %s1090_s23, [#allocation25]  }
  0xbe   : > { %p7560_p4 = pneg %p7559_p13  ;;  %p7566_p2 = por %p7565_p0, %p7564_p1 }
  0xc0   : > { %p7567_p5 = pnand %p7566_p2, %p7560_p4 }
  0xc2   : > { %7570 = shalt.err (!%p7567_p5)
}
  0xc3   : > { %7133 = dma.hbm_to_vmem [thread:$0]  (!%p8400_p6), %s8275_s14, 512, %s1111_s22, [#allocation28], %s9142_s12, %s9142_s12, %s9141_s15  }
  0xc4   : > { %s7582_s23 = scalar_lea.vmem %s1137_s28, 512  ;;  %p7590_p9 = scmp.lt.s32.totalorder %s1137_s28, %s1137_s28 }
  0xc5   : > { %p7583_p3 = scmp.ne.s32.totalorder %s1137_s28, %s7582_s23  ;;  %p7591_p10 = scmp.lt.s32.totalorder %s7582_s23, %s7582_s23 }
  0xc7   : > { %p7585_p8 = pnand %p7583_p3, %p8408_p7  ;;  %p7592_p12 = por %p7591_p10, %p7590_p9 }
  0xc9   : > { %p7586_p11 = pneg %p7585_p8 }
  0xcb   : > { %p7593_p13 = pnand %p7592_p12, %p7586_p11 }
  0xcd   : > { %7596 = shalt.err (!%p7593_p13)
}
  0xce   : > { %s9145_s9 = sld [smem:[#allocation72_spill]]  ;;  %s8153_s13 = smov [#allocation33]  }
  0xcf   : > { %s1162_s25 = sshll.u32 %s8153_s13, 4  ;;  %s8154_s30 = smov [#allocation36]   ;;  %s1163_s25 = int_to_ptr.vmem [resolvable:$true] %s1162_s25 }
  0xd0   : > { %s1188_s1 = sshll.u32 %s8154_s30, 4  ;;  %s7608_s22 = scalar_lea.vmem %s1163_s25, 64  ;;  %s1189_s1 = int_to_ptr.vmem [resolvable:$true] %s1188_s1 }
  0xd1   : > { %p7609_p4 = scmp.ne.s32.totalorder %s1163_s25, %s7608_s22  ;;  %p7616_p2 = scmp.lt.s32.totalorder %s1163_s25, %s1163_s25 }
  0xd2   : > { %p7617_p5 = scmp.lt.s32.totalorder %s7608_s22, %s7608_s22 }
  0xd3   : > { %p7611_p1 = pnand %p7609_p4, %p8408_p7 }
  0xd4   : > { %7139 = dma.hbm_to_vmem [thread:$0]  (!%p8400_p6), %s9145_s9, 512, %s1137_s28, [#allocation31], %s9142_s12, %s9142_s12, %s9141_s15  }
  0xd5   : > { %p7612_p0 = pneg %p7611_p1  ;;  %p7618_p3 = por %p7617_p5, %p7616_p2 }
  0xd7   : > { %p7619_p8 = pnand %p7618_p3, %p7612_p0 }
  0xd9   : > { %7622 = shalt.err (!%p7619_p8)
}
  0xda   : > { %s9146_s11 = smov 1   ;;  %s9147_s23 = smov 16  }
  0xdb   : > { %7145 = dma.hbm_to_vmem [thread:$0]  (!%p8400_p6), %s8295_s19, 64, %s1163_s25, [#allocation34], %s9147_s23, %s9147_s23, %s9146_s11  }
  0xdc   : > { %s7634_s28 = scalar_lea.vmem %s1189_s1, 512  ;;  %p7642_p12 = scmp.lt.s32.totalorder %s1189_s1, %s1189_s1 }
  0xdd   : > { %p7635_p11 = scmp.ne.s32.totalorder %s1189_s1, %s7634_s28  ;;  %p7643_p13 = scmp.lt.s32.totalorder %s7634_s28, %s7634_s28 }
  0xdf   : > { %p7637_p9 = pnand %p7635_p11, %p8408_p7  ;;  %p7644_p4 = por %p7643_p13, %p7642_p12 }
  0xe1   : > { %p7638_p10 = pneg %p7637_p9 }
  0xe3   : > { %p7645_p1 = pnand %p7644_p4, %p7638_p10 }
  0xe5   : > { %7648 = shalt.err (!%p7645_p1)
}
  0xe6   : > { %7151 = dma.hbm_to_vmem [thread:$0]  (!%p8400_p6), %s8305_s27, 512, %s1189_s1, [#allocation37], %s9142_s12, %s9142_s12, %s9141_s15  }
  0xe7   : > { %s8155_s13 = smov [#allocation8]   ;;  %s8156_s30 = smov [#allocation11]  }
  0xe8   : > { %s947_s25 = sshll.u32 %s8155_s13, 4  ;;  %s973_s22 = sshll.u32 %s8156_s30, 4  ;;  %s948_s25 = int_to_ptr.vmem [resolvable:$true] %s947_s25  ;;  %s974_s22 = int_to_ptr.vmem [resolvable:$true] %s973_s22 }
  0xe9   : > { %s7660_s3 = scalar_lea.vmem %s948_s25, 512  ;;  %p7668_p3 = scmp.lt.s32.totalorder %s948_s25, %s948_s25 }
  0xea   : > { %p7661_p0 = scmp.ne.s32.totalorder %s948_s25, %s7660_s3  ;;  %p7669_p8 = scmp.lt.s32.totalorder %s7660_s3, %s7660_s3 }
  0xec   : > { %p7663_p2 = pnand %p7661_p0, %p8408_p7  ;;  %p7670_p11 = por %p7669_p8, %p7668_p3 }
  0xee   : > { %p7664_p5 = pneg %p7663_p2 }
  0xf0   : > { %p7671_p9 = pnand %p7670_p11, %p7664_p5 }
  0xf2   : > { %7674 = shalt.err (!%p7671_p9)
}
  0xf3   : > { %7094 = dma.hbm_to_vmem [thread:$0]  (!%p8400_p6), %s8200_s21, 512, %s948_s25, [#allocation7], %s9142_s12, %s9142_s12, %s9141_s15  }
  0xf4   : > { %s7686_s1 = scalar_lea.vmem %s974_s22, 64  ;;  %p7694_p4 = scmp.lt.s32.totalorder %s974_s22, %s974_s22 }
  0xf5   : > { %p7687_p10 = scmp.ne.s32.totalorder %s974_s22, %s7686_s1  ;;  %p7695_p1 = scmp.lt.s32.totalorder %s7686_s1, %s7686_s1 }
  0xf7   : > { %p7689_p12 = pnand %p7687_p10, %p8408_p7  ;;  %p7696_p0 = por %p7695_p1, %p7694_p4 }
  0xf9   : > { %p7690_p13 = pneg %p7689_p12 }
  0xfb   : > { %p7697_p2 = pnand %p7696_p0, %p7690_p13 }
  0xfd   : > { %7700 = shalt.err (!%p7697_p2)
}
  0xfe   : > { %7100 = dma.hbm_to_vmem [thread:$0]  (!%p8400_p6), %s8210_s29, 64, %s974_s22, [#allocation10], %s9147_s23, %s9147_s23, %s9146_s11  }
  0xff   : > { %s8157_s3 = smov [#allocation14]   ;;  %s8158_s13 = smov [#allocation17]  }
 0x100   : > { %s999_s28 = sshll.u32 %s8157_s3, 4  ;;  %s1032_s25 = sshll.u32 %s8158_s13, 4  ;;  %s1000_s28 = int_to_ptr.vmem [resolvable:$true] %s999_s28  ;;  %s1033_s25 = int_to_ptr.vmem [resolvable:$true] %s1032_s25 }
 0x101   : > { %s7712_s30 = scalar_lea.vmem %s1000_s28, 64  ;;  %p7720_p11 = scmp.lt.s32.totalorder %s1000_s28, %s1000_s28 }
 0x102   : > { %p7713_p5 = scmp.ne.s32.totalorder %s1000_s28, %s7712_s30  ;;  %p7721_p9 = scmp.lt.s32.totalorder %s7712_s30, %s7712_s30 }
 0x104   : > { %p7715_p3 = pnand %p7713_p5, %p8408_p7  ;;  %p7722_p10 = por %p7721_p9, %p7720_p11 }
 0x106   : > { %p7716_p8 = pneg %p7715_p3 }
 0x108   : > { %p7723_p12 = pnand %p7722_p10, %p7716_p8 }
 0x10a   : > { %7726 = shalt.err (!%p7723_p12)
}
 0x10b   : > { %s9148_s8 = sld [smem:[#allocation62_spill]]  ;;  %s7738_s22 = scalar_lea.vmem %s1033_s25, 16 }
 0x10c   : > { %p7739_p13 = scmp.ne.s32.totalorder %s1033_s25, %s7738_s22  ;;  %s7745_s1 = scalar_lea.vmem %s1033_s25, 32 }
 0x10d   : > { %p7746_p0 = scmp.lt.s32.totalorder %s1033_s25, %s1033_s25  ;;  %p7747_p2 = scmp.lt.s32.totalorder %s7745_s1, %s7738_s22 }
 0x10e   : > { %p7741_p4 = pnand %p7739_p13, %p8408_p7 }
 0x10f   : > { %p7748_p5 = por %p7747_p2, %p7746_p0 }
 0x110   : > { %p7742_p1 = pneg %p7741_p4 }
 0x111   : > { %7106 = dma.hbm_to_vmem [thread:$0]  (!%p8400_p6), %s9148_s8, 64, %s1000_s28, [#allocation13], %s9147_s23, %s9147_s23, %s9146_s11  }
 0x112   : > { %p7749_p3 = pnand %p7748_p5, %p7742_p1 }
 0x114   : > { %7752 = shalt.err (!%p7749_p3)
}
 0x115   : > { %s9149_s3 = sld [smem:[#allocation65_spill]]  ;;  %s8159_s13 = smov [#allocation20]  }
 0x116   : > { %s1056_s30 = sshll.u32 %s8159_s13, 4  ;;  %s8160_s28 = smov [#allocation23]   ;;  %s1057_s30 = int_to_ptr.vmem [resolvable:$true] %s1056_s30 }
 0x117   : > { %s1078_s4 = sshll.u32 %s8160_s28, 4  ;;  %s7764_s6 = scalar_lea.vmem %s1057_s30, 16  ;;  %s1079_s4 = int_to_ptr.vmem [resolvable:$true] %s1078_s4 }
 0x118   : > { %p7765_p8 = scmp.ne.s32.totalorder %s1057_s30, %s7764_s6  ;;  %s7771_s8 = scalar_lea.vmem %s1057_s30, 32 }
 0x119   : > { %p7772_p10 = scmp.lt.s32.totalorder %s1057_s30, %s1057_s30  ;;  %p7773_p12 = scmp.lt.s32.totalorder %s7771_s8, %s7764_s6 }
 0x11a   : > { %p7767_p11 = pnand %p7765_p8, %p8408_p7 }
 0x11b   : > { %7112 = dma.hbm_to_vmem [thread:$0]  (!%p8400_p6), %s9149_s3, 16, %s1033_s25, [#allocation16]  }
 0x11c   : > { %p7768_p9 = pneg %p7767_p11  ;;  %p7774_p13 = por %p7773_p12, %p7772_p10 }
 0x11e   : > { %p7775_p4 = pnand %p7774_p13, %p7768_p9 }
 0x120   : > { %7778 = shalt.err (!%p7775_p4)
}
 0x121   : > { %s9150_s22 = sld [smem:[#allocation67_spill]]  ;;  %s7790_s25 = scalar_lea.vmem %s1079_s4, 16 }
 0x122   : > { %p7791_p1 = scmp.ne.s32.totalorder %s1079_s4, %s7790_s25  ;;  %s7797_s1 = scalar_lea.vmem %s1079_s4, 32 }
 0x123   : > { %p7798_p5 = scmp.lt.s32.totalorder %s1079_s4, %s1079_s4  ;;  %p7799_p3 = scmp.lt.s32.totalorder %s7797_s1, %s7790_s25 }
 0x124   : > { %p7793_p0 = pnand %p7791_p1, %p8408_p7 }
 0x125   : > { %p7800_p8 = por %p7799_p3, %p7798_p5 }
 0x126   : > { %p7794_p2 = pneg %p7793_p0 }
 0x127   : > { %7118 = dma.hbm_to_vmem [thread:$0]  (!%p8400_p6), %s9150_s22, 16, %s1057_s30, [#allocation19]  }
 0x128   : > { %p7801_p11 = pnand %p7800_p8, %p7794_p2 }
 0x12a   : > { %7804 = shalt.err (!%p7801_p11)
}
 0x12b   : > { %s9151_s8 = sld [smem:[#allocation68_spill]]  ;;  %s8161_s6 = smov [#allocation26]  }
 0x12c   : > { %s1100_s3 = sshll.u32 %s8161_s6, 4  ;;  %s8162_s13 = smov [#allocation29]   ;;  %s1101_s3 = int_to_ptr.vmem [resolvable:$true] %s1100_s3 }
 0x12d   : > { %s1123_s30 = sshll.u32 %s8162_s13, 4  ;;  %s7816_s28 = scalar_lea.vmem %s1101_s3, 16  ;;  %s1124_s30 = int_to_ptr.vmem [resolvable:$true] %s1123_s30 }
 0x12e   : > { %p7817_p9 = scmp.ne.s32.totalorder %s1101_s3, %s7816_s28  ;;  %s7823_s22 = scalar_lea.vmem %s1101_s3, 32 }
 0x12f   : > { %p7824_p13 = scmp.lt.s32.totalorder %s1101_s3, %s1101_s3  ;;  %p7825_p4 = scmp.lt.s32.totalorder %s7823_s22, %s7816_s28 }
 0x130   : > { %p7819_p10 = pnand %p7817_p9, %p8408_p7 }
 0x131   : > { %7124 = dma.hbm_to_vmem [thread:$0]  (!%p8400_p6), %s9151_s8, 16, %s1079_s4, [#allocation22]  }
 0x132   : > { %p7820_p12 = pneg %p7819_p10  ;;  %p7826_p1 = por %p7825_p4, %p7824_p13 }
 0x134   : > { %p7827_p0 = pnand %p7826_p1, %p7820_p12 }
 0x136   : > { %7830 = shalt.err (!%p7827_p0)
}
 0x137   : > { %s9152_s25 = sld [smem:[#allocation70_spill]]  ;;  %s7842_s4 = scalar_lea.vmem %s1124_s30, 512 }
 0x138   : > { %p7843_p2 = scmp.ne.s32.totalorder %s1124_s30, %s7842_s4  ;;  %p7850_p8 = scmp.lt.s32.totalorder %s1124_s30, %s1124_s30 }
 0x139   : > { %p7851_p11 = scmp.lt.s32.totalorder %s7842_s4, %s7842_s4 }
 0x13a   : > { %p7845_p5 = pnand %p7843_p2, %p8408_p7 }
 0x13b   : > { %p7852_p9 = por %p7851_p11, %p7850_p8 }
 0x13c   : > { %p7846_p3 = pneg %p7845_p5 }
 0x13d   : > { %7130 = dma.hbm_to_vmem [thread:$0]  (!%p8400_p6), %s9152_s25, 16, %s1101_s3, [#allocation25]  }
 0x13e   : > { %p7853_p10 = pnand %p7852_p9, %p7846_p3 }
 0x140   : > { %7856 = shalt.err (!%p7853_p10)
}
 0x141   : > { %s9153_s1 = sld [smem:[#allocation71_spill]]  ;;  %s8163_s8 = smov [#allocation32]  }
 0x142   : > { %s1149_s6 = sshll.u32 %s8163_s8, 4  ;;  %s8164_s3 = smov [#allocation35]   ;;  %s1150_s6 = int_to_ptr.vmem [resolvable:$true] %s1149_s6 }
 0x143   : > { %s1175_s13 = sshll.u32 %s8164_s3, 4  ;;  %s7868_s28 = scalar_lea.vmem %s1150_s6, 64  ;;  %s1176_s13 = int_to_ptr.vmem [resolvable:$true] %s1175_s13 }
 0x144   : > { %p7869_p12 = scmp.ne.s32.totalorder %s1150_s6, %s7868_s28  ;;  %p7876_p1 = scmp.lt.s32.totalorder %s1150_s6, %s1150_s6 }
 0x145   : > { %p7877_p0 = scmp.lt.s32.totalorder %s7868_s28, %s7868_s28 }
 0x146   : > { %p7871_p13 = pnand %p7869_p12, %p8408_p7 }
 0x147   : > { %7136 = dma.hbm_to_vmem [thread:$0]  (!%p8400_p6), %s9153_s1, 512, %s1124_s30, [#allocation28], %s9142_s12, %s9142_s12, %s9141_s15  }
 0x148   : > { %p7872_p4 = pneg %p7871_p13  ;;  %p7878_p2 = por %p7877_p0, %p7876_p1 }
 0x14a   : > { %p7879_p5 = pnand %p7878_p2, %p7872_p4 }
 0x14c   : > { %7882 = shalt.err (!%p7879_p5)
}
 0x14d   : > { %s9154_s30 = sld [smem:[#allocation73_spill]]  ;;  %s7894_s22 = scalar_lea.vmem %s1176_s13, 64 }
 0x14e   : > { %p7895_p3 = scmp.ne.s32.totalorder %s1176_s13, %s7894_s22  ;;  %p7902_p9 = scmp.lt.s32.totalorder %s1176_s13, %s1176_s13 }
 0x14f   : > { %p7903_p10 = scmp.lt.s32.totalorder %s7894_s22, %s7894_s22 }
 0x150   : > { %p7897_p8 = pnand %p7895_p3, %p8408_p7 }
 0x151   : > { %p7904_p12 = por %p7903_p10, %p7902_p9 }
 0x152   : > { %p7898_p11 = pneg %p7897_p8 }
 0x153   : > { %7142 = dma.hbm_to_vmem [thread:$0]  (!%p8400_p6), %s9154_s30, 64, %s1150_s6, [#allocation31], %s9147_s23, %s9147_s23, %s9146_s11  }
 0x154   : > { %p7905_p13 = pnand %p7904_p12, %p7898_p11 }
 0x156   : > { %7908 = shalt.err (!%p7905_p13)
}
 0x157   : > { %s9155_s25 = sld [smem:[#allocation74_spill]]  ;;  %s8165_s4 = smov [#allocation38]  }
 0x158   : > { %s1202_s1 = sshll.u32 %s8165_s4, 4  ;;  %s8166_s8 = smov [#allocation39]   ;;  %s1203_s1 = int_to_ptr.vmem [resolvable:$true] %s1202_s1 }
 0x159   : > { %s1218_s6 = sshll.u32 %s8166_s8, 4  ;;  %s7920_s3 = scalar_lea.vmem %s1203_s1, 16  ;;  %s1219_s6 = int_to_ptr.vmem [resolvable:$true] %s1218_s6 }
 0x15a   : > { %p7921_p4 = scmp.ne.s32.totalorder %s1203_s1, %s7920_s3  ;;  %s7927_s28 = scalar_lea.vmem %s1203_s1, 32 }
 0x15b   : > { %p7928_p2 = scmp.lt.s32.totalorder %s1203_s1, %s1203_s1  ;;  %p7929_p5 = scmp.lt.s32.totalorder %s7927_s28, %s7920_s3 }
 0x15c   : > { %p7923_p1 = pnand %p7921_p4, %p8408_p7 }
 0x15d   : > { %7148 = dma.hbm_to_vmem [thread:$0]  (!%p8400_p6), %s9155_s25, 64, %s1176_s13, [#allocation34], %s9147_s23, %s9147_s23, %s9146_s11  }
 0x15e   : > { %p7924_p0 = pneg %p7923_p1  ;;  %p7930_p3 = por %p7929_p5, %p7928_p2 }
 0x160   : > { %p7931_p8 = pnand %p7930_p3, %p7924_p0 }
 0x162   : > { %7934 = shalt.err (!%p7931_p8)
}
 0x163   : > { %s9156_s30 = sld [smem:[#allocation75_spill]]  ;;  %s7946_s11 = scalar_lea.vmem %s1219_s6, 512 }
 0x164   : > { %p7947_p11 = scmp.ne.s32.totalorder %s1219_s6, %s7946_s11  ;;  %p7954_p12 = scmp.lt.s32.totalorder %s1219_s6, %s1219_s6 }
 0x165   : > { %p7955_p13 = scmp.lt.s32.totalorder %s7946_s11, %s7946_s11 }
 0x166   : > { %p7949_p9 = pnand %p7947_p11, %p8408_p7 }
 0x167   : > { %p7956_p4 = por %p7955_p13, %p7954_p12 }
 0x168   : > { %p7950_p10 = pneg %p7949_p9 }
 0x169   : > { %7154 = dma.hbm_to_vmem [thread:$0]  (!%p8400_p6), %s9156_s30, 16, %s1203_s1, [#allocation37]  }
 0x16a   : > { %p7957_p1 = pnand %p7956_p4, %p7950_p10 }
 0x16c   : > { %7960 = shalt.err (!%p7957_p1)
}
 0x16d   : > { %s9157_s23 = sld [smem:[#allocation78_spill]]  ;;  %s6370_s26 = sadd.s32 4294967294, %s8101_s10  }
 0x16e   : > { %s8579_s2 = sadd.s32 1, %s8101_s10   ;;  %s112_s13 = sadd.s32 1, %s8097_s7 }
 0x16f   : > { %s109_s22 = ssub.s32 %s8101_s10, %s8579_s2  ;;  %s9158_s25 = sld [smem:[#allocation56_spill]] }
 0x170   : > { %p119_p7 = scmp.ne.s32.totalorder %s8097_s7, %s8093_s17  ;;  %p110_p0 = scmp.eq.s32.totalorder %s109_s22, 0 }
 0x171   : > { %p120_p2 = scmp.eq.s32.totalorder %s8101_s10, 0  ;;  %p125_p5 = scmp.ne.s32.totalorder %s8093_s17, %s8089_s0 }
 0x172   : > { %p905_p3 = scmp.eq.s32.totalorder %s8386_s16, 1  ;;  %p9159_p11 = scmp.eq.s32.totalorder %s8386_s16, 0 }
 0x173   : > { %7157 = dma.hbm_to_vmem [thread:$0]  (!%p8400_p6), %s9157_s23, 512, %s1219_s6, [#allocation40], %s9142_s12, %s9142_s12, %s9141_s15  }
 0x174   : > { %s8591_s4 = scalar_select %p110_p0, %s8097_s7, %s112_s13  }
 0x175   : > { %p121_p8 = por %p120_p2, %p119_p7  ;;  %p8595_p9 = por %p9159_p11, %p125_p5 }
 0x176   : > { %p8599_p6 = por %p905_p3, %p119_p7  ;;  %p911_p10 = scmp.eq.s32.totalorder %s6370_s26, 1 }
 0x177   : > { %s9160_s12 = scalar_select %p8595_p9, 1, 0 }
 0x178   : > { %s9161_s15 = scalar_select %p8599_p6, 1, 0 }
 0x179   : > { %p7189_p12 = scmp.lt.s32.totalorder %s8101_s10, 2  ;;  %s1253_s1 = sand.u32 1, %s8097_s7  }
 0x17a   : > { %p8605_p13 = por %p911_p10, %p125_p5  ;;  %s6396_s6 = sshll.u32 %s1253_s1, 3 }
 0x17b   : > { %s6397_s3 = sshll.u32 %s8101_s10, 7  ;;  %s1257_s30 = scalar_lea.vmem [#allocation3], %s6396_s6 }
 0x17c   : > { %s9162_s8 = scalar_select %p8605_p13, 1, 0 }
 0x17d   : > { %s8611_s28 = scalar_lea.hbm %s9158_s25, %s6397_s3  ;;  %s1264_s11 = sshll.u32 %s1257_s30, 4  ;;  %s1265_s11 = int_to_ptr.vmem [resolvable:$true] %s1264_s11 }
 0x17e   : > { %p8613_p4 = pnand %p7189_p12, %p121_p8  ;;  %s1254_s26 = scalar_lea.sflag [#allocation4], %s1253_s1 }
 0x17f   : > { %s7961_s13 = scalar_lea.hbm %s8611_s28, 128  ;;  %s7966_s22 = scalar_lea.hbm %s9158_s25, 256 }
 0x180   : > { %s9163_s23 = scalar_select %p8613_p4, 1, 0 }
 0x181   : > { %p7962_p1 = scmp.ne.s32.totalorder %s8611_s28, %s7961_s13  ;;  %p7963_p7 = pneg %p8613_p4 }
 0x182   : > { %p7967_p5 = scmp.lt.s32.totalorder %s8611_s28, %s9158_s25  ;;  %p7968_p3 = scmp.lt.s32.totalorder %s7966_s22, %s7961_s13 }
 0x183   : > { %p7964_p0 = pnand %p7963_p7, %p7962_p1 }
 0x184   : > { %p7969_p11 = por %p7968_p3, %p7967_p5 }
 0x185   : > { %p7965_p2 = pneg %p7964_p0 }
 0x187   : > { %p7970_p10 = pnand %p7969_p11, %p7965_p2 }
 0x189   : > { %7973 = shalt.err (!%p7970_p10)
}
 0x18a   : > { %s7974_s6 = scalar_lea.vmem %s1265_s11, 128  ;;  %s8167_s3 = smov [#allocation3]  }
 0x18b   : > { %p7975_p8 = scmp.ne.s32.totalorder %s1265_s11, %s7974_s6  ;;  %s7979_s30 = sshll.u32 %s8167_s3, 4  ;;  %s7980_s30 = int_to_ptr.vmem [resolvable:$false] %s7979_s30 }
 0x18c   : > { %s7981_s1 = scalar_lea.vmem %s7980_s30, 256  ;;  %p7982_p6 = scmp.lt.s32.totalorder %s1265_s11, %s7980_s30 }
 0x18d   : > { %p7977_p12 = pnand %p7975_p8, %p7963_p7  ;;  %p7983_p9 = scmp.lt.s32.totalorder %s7981_s1, %s7974_s6 }
 0x18f   : > { %p7978_p13 = pneg %p7977_p12  ;;  %p7984_p4 = por %p7983_p9, %p7982_p6 }
 0x191   : > { %p7985_p1 = pnand %p7984_p4, %p7978_p13 }
 0x193   : > { %7988 = shalt.err (!%p7985_p1)
}
 0x194   : > { %p9164_p0 = scmp.ne.s32.totalorder %s9163_s23, 0  ;;  %p9165_p2 = scmp.ne.s32.totalorder %s9135_s18, 0 }
 0x195   : > { %s8630_s13 = sand.u32 (!%p9165_p2), 1, %s8093_s17   ;;  %p9166_p9 = scmp.ne.s32.totalorder (!%p9165_p2), %s9160_s12, 0 }
 0x196   : > { %7161 = dma.hbm_to_vmem [thread:$0]  (!%p9164_p0), %s8611_s28, 128, %s1265_s11, %s1254_s26  }
 0x197   : > { %1273 = sbr.rel (%p9165_p2) target bundleno = 10287 (0x282f), region = 168  ;;  %s6399_s22 = sshll.u32 (!%p9165_p2), %s8630_s13, 3 }
 0x198   : > { %s1276_s3 = scalar_lea.sflag (!%p9165_p2), [#allocation4], %s8630_s13  ;;  %s8634_s30 = scalar_lea.vmem (!%p9165_p2), [#allocation3], %s6399_s22 }
 0x19c   : > { %8032 = dma.done.wait (%p9166_p9), %s1276_s3, 128  }
 0x19d   : > { %8034 = vsyncadd (%p9166_p9), %s1276_s3, 4294967168  ;;  %p9167_p6 = scmp.eq.s32.totalorder %s8386_s16, 0 }
 0x19f   : > { %8036 = dma.done.wait (%p9167_p6), [#allocation7], 528   ;;  %p9168_p13 = pmov %p9167_p6 }
 0x1a0   : > { %p9169_p4 = pmov %p9167_p6 }
 0x1a1   : > { %8038 = vsyncadd (%p9168_p13), [#allocation7], 4294966768 }
 0x1a2   : > { %8040 = dma.done.wait (%p9169_p4), [#allocation10], 576   ;;  %p9170_p7 = pmov %p9169_p4 }
 0x1a3   : > { %p9171_p5 = pmov %p9169_p4 }
 0x1a4   : > { %8042 = vsyncadd (%p9170_p7), [#allocation10], 4294966720 }
 0x1a5   : > { %8044 = dma.done.wait (%p9171_p5), [#allocation13], 128   ;;  %p9172_p3 = pmov %p9169_p4 }
 0x1a7   : > { %8046 = vsyncadd (%p9172_p3), [#allocation13], 4294967168  ;;  %p9173_p11 = pmov %p9172_p3 }
 0x1a8   : > { %p9174_p10 = pmov %p9172_p3 }
 0x1a9   : > { %8048 = dma.done.wait (%p9173_p11), [#allocation16], 528  }
 0x1aa   : > { %8050 = vsyncadd (%p9174_p10), [#allocation16], 4294966768  ;;  %p9175_p8 = pmov %p9172_p3 }
 0x1ab   : > { %p9176_p12 = pmov %p9172_p3 }
 0x1ac   : > { %8052 = dma.done.wait (%p9175_p8), [#allocation19], 528  }
 0x1ad   : > { %8054 = vsyncadd (%p9176_p12), [#allocation19], 4294966768  ;;  %p9177_p1 = pmov %p9172_p3 }
 0x1af   : > { %8056 = dma.done.wait (%p9177_p1), [#allocation22], 32   ;;  %p9178_p0 = pmov %p9177_p1 }
 0x1b1   : > { %8058 = vsyncadd (%p9178_p0), [#allocation22], 4294967264  ;;  %p9179_p2 = pmov %p9178_p0 }
 0x1b2   : > { %p9180_p9 = pmov %p9178_p0 }
 0x1b3   : > { %8060 = dma.done.wait (%p9179_p2), [#allocation25], 32  }
 0x1b4   : > { %8062 = vsyncadd (%p9180_p9), [#allocation25], 4294967264  ;;  %p9181_p6 = pmov %p9178_p0 }
 0x1b5   : > { %p9182_p13 = pmov %p9178_p0 }
 0x1b6   : > { %8064 = dma.done.wait (%p9181_p6), [#allocation28], 1024  }
 0x1b7   : > { %8066 = vsyncadd (%p9182_p13), [#allocation28], 4294966272  ;;  %p9183_p4 = pmov %p9178_p0 }
 0x1b8   : > { %p9184_p7 = pmov %p9178_p0 }
 0x1b9   : > { %8068 = dma.done.wait (%p9183_p4), [#allocation31], 576  }
 0x1ba   : > { %8070 = vsyncadd (%p9184_p7), [#allocation31], 4294966720  ;;  %p9185_p5 = pmov %p9178_p0 }
 0x1bb   : > { %p9186_p3 = pmov %p9178_p0 }
 0x1bc   : > { %8072 = dma.done.wait (%p9185_p5), [#allocation34], 128  }
 0x1bd   : > { %8074 = vsyncadd (%p9186_p3), [#allocation34], 4294967168  ;;  %p9187_p11 = pmov %p9178_p0 }
 0x1be   : > { %p9188_p10 = pmov %p9178_p0 }
 0x1bf   : > { %8076 = dma.done.wait (%p9187_p11), [#allocation37], 528  }
 0x1c0   : > { %8078 = vsyncadd (%p9188_p10), [#allocation37], 4294966768  ;;  %p9189_p8 = pmov %p9178_p0 }
 0x1c1   : > { %p9190_p12 = pmov %p9178_p0 }
 0x1c2   : > { %8080 = dma.done.wait (%p9189_p8), [#allocation40], 512  }
 0x1c3   : > { %8082 = vsyncadd (%p9190_p12), [#allocation40], 4294966784  ;;  %s9191_s18 = sld [smem:[#allocation57_spill]]  ;;  %v8168_v1 = vmov 0.0   ;;  %vm8169_vm0 = vmmov 0   ;;  %vm1473_vm1 = vcmask 130048  }
 0x1c4   : > { %6697 = vmatprep.subr.mxu0 %v8168_v1  ;;  %6705 = vmatprep.mubr.msk.f32.mxu0 %vm8169_vm0, %v8168_v1  ;;  %s9192_s12 = sld [smem:[#allocation59_spill]]  ;;  %v1461_v6 = vld [vmem:[%s8634_s30] sm:$0xff]  ;;  %vm1567_vm2 = vcmask 261120   ;;  %v6423_v8 = vld [vmem:[#allocation6] ss:$0 sm:$0xff]  ;;  %v1644_v11 = vld [vmem:[#allocation8] sm:$0xff] }
 0x1c5   : > { %6708 = vmatprep.subr.mxu1 %v8168_v1  ;;  %6710 = vmatprep.mubr.msk.f32.mxu1 %vm8169_vm0, %v8168_v1  ;;  %v1725_v13 = vld [vmem:[#allocation9] sm:$0xff]  ;;  %vm1807_vm3 = vcmask 64512   ;;  %v6435_v22 = vld [vmem:[#allocation14] ss:$0 sm:$0xff]  ;;  %v6448_v34 = vld [vmem:[#allocation14 + $0x1] ss:$0 sm:$0xff] }
 0x1c6   : > { %v6429_v15 = vld [vmem:[#allocation11] ss:$0 sm:$0xff]  ;;  %v6432_v17 = vld [vmem:[#allocation12] ss:$0 sm:$0xff]  ;;  %v2136_v28 = vld [vmem:[#allocation9 + $0x8] sm:$0xff]  ;;  %s9193_s28 = sld [smem:[#allocation63_spill]] }
 0x1c7   : > { %v2053_v46 = vld [vmem:[#allocation8 + $0x8] sm:$0xff]  ;;  %v6442_v48 = vld [vmem:[#allocation11 + $0x1] ss:$0 sm:$0xff]  ;;  %v6445_v50 = vld [vmem:[#allocation12 + $0x1] ss:$0 sm:$0xff]  ;;  %s9194_s11 = sld [smem:[#allocation64_spill]] }
 0x1c8   : > { %s9195_s23 = sld [smem:[#allocation76_spill]]  ;;  %vm6023_vm6 = vcmask 253952   ;;  %p9204_p0 = scmp.ne.s32.totalorder %s9161_s15, 0 }
 0x1c9   : > { %v1465_v2 = vld [vmem:[%s9191_s18 + $0x18] sm:$0xff]  ;;  %v1464_v3 = vld [vmem:[%s9191_s18 + $0x10] sm:$0xff]  ;;  %v1463_v4 = vld [vmem:[%s9191_s18 + $0x8] sm:$0xff]  ;;  %s9196_s26 = sld [smem:[#allocation80_spill]] }
 0x1ca   : > { %6698 = vmatpush3.xpose.msk.msra.mxu0 %vm1473_vm1, %v1465_v2  ;;  %v1462_v5 = vld [vmem:[%s9191_s18] sm:$0xff]  ;;  %v6441_v25 = vld [vmem:[%s9192_s12 + $0x8] sm:$0xff]  ;;  %s9197_s6 = sld [smem:[#allocation81_spill]] }
 0x1cb   : > { %6699 = vmatprep.subr.mxu0 %v8168_v1  ;;  %v1559_v7 = vld [vmem:[%s9192_s12] sm:$0xff]  ;;  %s9198_s1 = sld [smem:[#allocation77_spill]] }
 0x1cc   : > { %6709 = vmatpush3.xpose.msk.msra.mxu1 %vm1567_vm2, %v1559_v7  ;;  %v6454_v0 = vld [vmem:[%s9193_s28 + $0x8] sm:$0xff]  ;;  %v6457_v7 = vld [vmem:[%s9192_s12 + $0x10] sm:$0xff]  ;;  %s9199_s22 = sld [smem:[#allocation79_spill]] }
 0x1cd   : > { %6713 = vmatprep.subr.mxu1 %v8168_v1  ;;  %s9200_s3 = sld [smem:[#allocation82_spill]] }
 0x1ce   : > { %6700 = vmatpush3.xpose.msk.msra.mxu0 %vm1473_vm1, %v1464_v3  ;;  %s9201_s5 = sld [smem:[#allocation83_spill]] }
 0x1cf   : > { %6701 = vmatprep.subr.mxu0 %v8168_v1  ;;  %s9202_s30 = sld [smem:[#allocation84_spill]] }
 0x1d2   : > { %6702 = vmatpush3.xpose.msk.msra.mxu0 %vm1473_vm1, %v1463_v4 }
 0x1d3   : > { %6703 = vmatprep.subr.mxu0 %v8168_v1 }
 0x1d6   : > { %6704 = vmatpush3.xpose.msk.msra.mxu0 %vm1473_vm1, %v1462_v5  ;;  %v1968_v5 = vld [vmem:[%s9193_s28] sm:$0xff] }
 0x1d7   : > { %6728 = vmatprep.subr.mxu0 %v8168_v1 }
 0x1d9   : > { %6706 = vmatmul.mubr.msk.f32.vlgmr.msra.gmra.mxu0 %vm1473_vm1, %v1461_v6  ;;  %v2611_v6 = vld [vmem:[#allocation8 + $0x10] sm:$0xff] }
 0x1da   : > { %6730 = vmatprep.mubr.msk.f32.mxu0 %vm8169_vm0, %v8168_v1 }
 0x299   : > { %v1555_v9 = vpop.f32.mrf.mxu0 }
 0x29a   : > { %v8708_v10 = vadd.f32 %v6423_v8, %v1555_v9 }
 0x29b   : > { %v6707_v12 = vpop.f32.mrf.mxu0 }
 0x29c   : > { %6711 = vmatmul.mubr.msk.f32.vlgmr.msra.gmra.mxu1 %vm1567_vm2, %v8708_v10 }
 0x29d   : > { %6714 = vmatpush3.xpose.msk.msra.mxu1 %vm1567_vm2, %v1644_v11  ;;  %6715 = vmatprep.mubr.msk.f32.mxu1 %vm8169_vm0, %v8168_v1  ;;  %v2694_v11 = vld [vmem:[#allocation9 + $0x10] sm:$0xff] }
 0x29e   : > { %6718 = vmatprep.subr.mxu1 %v8168_v1 }
 0x2a0   : > { %6716 = vmatmul.mubr.msk.f32.vlgmr.msra.gmra.mxu1 %vm1567_vm2, %v8708_v10 }
 0x2a1   : > { %6719 = vmatpush3.xpose.msk.msra.mxu1 %vm1567_vm2, %v1725_v13  ;;  %6720 = vmatprep.mubr.msk.f32.mxu1 %vm8169_vm0, %v8168_v1 }
 0x2a2   : > { %6723 = vmatprep.subr.mxu1 %v8168_v1 }
 0x2a4   : > { %6721 = vmatmul.mubr.msk.f32.vlgmr.msra.gmra.mxu1 %vm1567_vm2, %v8708_v10 }
 0x2a5   : > { %6725 = vmatprep.mubr.msk.f32.mxu1 %vm8169_vm0, %v8168_v1 }
 0x35c   : > { %v1640_v14 = vpop.f32.mrf.mxu1 }
 0x35d   : > { %v1641_v18 = vadd.f32 %v6429_v15, %v1640_v14  ;;  %v6461_v14 = vld [vmem:[#allocation12 + $0x2] ss:$0 sm:$0xff] }
 0x35e   : > { %v6712_v16 = vpop.f32.mrf.mxu1 }
 0x35f   : > { %v1806_v23 = vmul.f32 0.35355338, %v1641_v18 }
 0x360   : > { %v1721_v19 = vpop.f32.mrf.mxu1 }
 0x361   : > { %v1722_v20 = vadd.f32 %v6432_v17, %v1721_v19 }
 0x362   : > { %v6717_v21 = vpop.f32.mrf.mxu1 }
 0x363   : > { %6724 = vmatpush3.xpose.msk.msra.mxu1 %vm1807_vm3, %v1722_v20  ;;  %v6458_v20 = vld [vmem:[#allocation11 + $0x2] ss:$0 sm:$0xff] }
 0x364   : > { %v1802_v24 = vpop.f32.mrf.mxu1  ;;  %6733 = vmatprep.subr.mxu1 %v8168_v1 }
 0x365   : > { %v1803_v26 = vadd.f32 %v6435_v22, %v1802_v24  ;;  %v6464_v24 = vld [vmem:[#allocation14 + $0x2] ss:$0 sm:$0xff] }
 0x366   : > { %v6722_v27 = vpop.f32.mrf.mxu1  ;;  %6726 = vmatmul.mubr.msk.f32.vlgmr.msra.gmra.mxu1 %vm1807_vm3, %v1806_v23 }
 0x367   : > { %6729 = vmatpush3.msra.mxu0 %v1803_v26  ;;  %6734 = vmatpush3.xpose.msk.msra.mxu1 %vm1567_vm2, %v6441_v25 }
 0x368   : > { %6735 = vmatprep.mubr.msk.f32.mxu1 %vm8169_vm0, %v8168_v1  ;;  %6743 = vmatprep.subr.mxu1 %v8168_v1 }
 0x369   : > { %6738 = vmatprep.subr.mxu0 %v8168_v1 }
 0x36a   : > { %6736 = vmatmul.mubr.msk.f32.vlgmr.msra.gmra.mxu1 %vm1567_vm2, %v8708_v10 }
 0x36b   : > { %6744 = vmatpush3.xpose.msk.msra.mxu1 %vm1567_vm2, %v2136_v28  ;;  %6745 = vmatprep.mubr.msk.f32.mxu1 %vm8169_vm0, %v8168_v1 }
 0x36c   : > { %6753 = vmatprep.subr.mxu1 %v8168_v1 }
 0x36e   : > { %6746 = vmatmul.mubr.msk.f32.vlgmr.msra.gmra.mxu1 %vm1567_vm2, %v8708_v10 }
 0x36f   : > { %6755 = vmatprep.mubr.msk.f32.mxu1 %vm8169_vm0, %v8168_v1 }
 0x426   : > { %v1880_v29 = vpop.f32.mrf.mxu1 }
 0x427   : > { %v1884_v30 = vsel %vm1807_vm3, %v1880_v29, -inf }
 0x428   : > { %1885 = vmax.xlane.f32.xlu0 %v1884_v30  ;;  %v6727_v31 = vpop.f32.mrf.mxu1 }
 0x42a   : > { %v2048_v32 = vpop.f32.mrf.mxu1 }
 0x42b   : > { %v2049_v51 = vadd.f32 %v6442_v48, %v2048_v32  ;;  %v6479_v48 = vld [vmem:[#allocation14 + $0x3] ss:$0 sm:$0xff] }
 0x42c   : > { %v6737_v33 = vpop.f32.mrf.mxu1 }
 0x42d   : > { %v2218_v55 = vmul.f32 0.35355338, %v2049_v51 }
 0x42e   : > { %v2214_v35 = vpop.f32.mrf.mxu1 }
 0x42f   : > { %v2215_v36 = vadd.f32 %v6448_v34, %v2214_v35 }
 0x430   : > { %v6747_v37 = vpop.f32.mrf.mxu1 }
 0x431   : > { %6754 = vmatpush3.msra.mxu1 %v2215_v36  ;;  %v6470_v37 = vld [vmem:[%s9193_s28 + $0x10] sm:$0xff] }
 0x432   : > { %6763 = vmatprep.subr.mxu1 %v8168_v1 }
 0x4b1   : > { %v1886_v38 = vpop.xlane.xlu0 %1885 }
 0x4b2   : > { %v1887_v39 = vsub.f32 %v1880_v29, %v1886_v38 }
 0x4b4   : > { %v1888_v40 = vmul.f32 1.442695, %v1887_v39 }
 0x4b6   : > { %7315 = vpow2.f32 %v1888_v40 }
 0x4c3   : > { %v7316_v41 = vpop.eup %7315 }
 0x4c4   : > { %v1890_v42 = vsel %vm1807_vm3, %v7316_v41, 0.0 }
 0x4c5   : > { %1891 = vadd.xlane.f32.xlu0 %v1890_v42  ;;  %v3180_v42 = vld [vmem:[#allocation9 + $0x18] sm:$0xff] }
 0x54e   : > { %v1892_v43 = vpop.xlane.xlu0 %1891 }
 0x54f   : > { %7317 = vrcp.f32 %v1892_v43  ;;  %v3097_v43 = vld [vmem:[#allocation8 + $0x18] sm:$0xff] }
 0x55c   : > { %v7318_v44 = vpop.eup %7317 }
 0x55d   : > { %v1894_v45 = vmul.f32 %v7318_v44, %v7316_v41  ;;  %v6472_v41 = vld [vmem:[%s9192_s12 + $0x18] sm:$0xff] }
 0x55f   : > { %6731 = vmatmul.mubr.msk.f32.vlgmr.msra.gmra.mxu0 %vm1807_vm3, %v1894_v45 }
 0x560   : > { %6739 = vmatpush3.xpose.msk.msra.mxu0 %vm1567_vm2, %v2053_v46  ;;  %6740 = vmatprep.mubr.msk.f32.mxu0 %vm8169_vm0, %v8168_v1 }
 0x561   : > { %6748 = vmatprep.subr.mxu0 %v8168_v1 }
 0x563   : > { %6741 = vmatmul.mubr.msk.f32.vlgmr.msra.gmra.mxu0 %vm1567_vm2, %v8708_v10 }
 0x564   : > { %6750 = vmatprep.mubr.msk.f32.mxu0 %vm8169_vm0, %v8168_v1 }
 0x61f   : > { %v1964_v47 = vpop.f32.mrf.mxu0 }
 0x621   : > { %v6732_v49 = vpop.f32.mrf.mxu0 }
 0x623   : > { %v2131_v52 = vpop.f32.mrf.mxu0 }
 0x624   : > { %v2132_v53 = vadd.f32 %v6445_v50, %v2131_v52 }
 0x625   : > { %v6742_v54 = vpop.f32.mrf.mxu0 }
 0x626   : > { %6749 = vmatpush3.xpose.msk.msra.mxu0 %vm1807_vm3, %v2132_v53  ;;  %v6473_v54 = vld [vmem:[#allocation11 + $0x3] ss:$0 sm:$0xff] }
 0x627   : > { %6758 = vmatprep.subr.mxu0 %v8168_v1 }
 0x629   : > { %6751 = vmatmul.mubr.msk.f32.vlgmr.msra.gmra.mxu0 %vm1807_vm3, %v2218_v55 }
 0x62a   : > { %6760 = vmatprep.mubr.msk.f32.mxu0 %vm8169_vm0, %v8168_v1  ;;  %6759 = vmatpush3.msra.mxu0 %v6454_v0 }
 0x62b   : > { %6768 = vmatprep.subr.mxu0 %v8168_v1 }
 0x6e9   : > { %v2291_v56 = vpop.f32.mrf.mxu0 }
 0x6ea   : > { %v2295_v57 = vsel %vm1807_vm3, %v2291_v56, -inf }
 0x6eb   : > { %2296 = vmax.xlane.f32.xlu1 %v2295_v57  ;;  %v6752_v58 = vpop.f32.mrf.mxu0  ;;  %v6476_v57 = vld [vmem:[#allocation12 + $0x3] ss:$0 sm:$0xff] }
 0x774   : > { %v2297_v59 = vpop.xlane.xlu1 %2296 }
 0x775   : > { %v2298_v60 = vsub.f32 %v2291_v56, %v2297_v59 }
 0x777   : > { %v2299_v61 = vmul.f32 1.442695, %v2298_v60 }
 0x779   : > { %7319 = vpow2.f32 %v2299_v61 }
 0x786   : > { %v7320_v62 = vpop.eup %7319 }
 0x787   : > { %v2301_v63 = vsel %vm1807_vm3, %v7320_v62, 0.0 }
 0x788   : > { %2302 = vadd.xlane.f32.xlu1 %v2301_v63 }
 0x811   : > { %v2303_v2 = vpop.xlane.xlu1 %2302 }
 0x812   : > { %7321 = vrcp.f32 %v2303_v2 }
 0x81f   : > { %v7322_v3 = vpop.eup %7321 }
 0x820   : > { %v2305_v4 = vmul.f32 %v7322_v3, %v7320_v62 }
 0x822   : > { %6756 = vmatmul.mubr.msk.f32.vlgmr.msra.gmra.mxu1 %vm1807_vm3, %v2305_v4 }
 0x823   : > { %6764 = vmatpush3.msra.mxu1 %v1968_v5  ;;  %6765 = vmatprep.mubr.msk.f32.mxu1 %vm8169_vm0, %v8168_v1 }
 0x824   : > { %6773 = vmatprep.subr.mxu1 %v8168_v1 }
 0x826   : > { %6766 = vmatmul.mubr.msk.f32.vlgmr.msra.gmra.mxu1 %vm1807_vm3, %v1964_v47 }
 0x827   : > { %6774 = vmatpush3.xpose.msk.msra.mxu1 %vm1567_vm2, %v2611_v6  ;;  %6775 = vmatprep.mubr.msk.f32.mxu1 %vm8169_vm0, %v8168_v1 }
 0x828   : > { %6783 = vmatprep.subr.mxu1 %v8168_v1 }
 0x82a   : > { %6776 = vmatmul.mubr.msk.f32.vlgmr.msra.gmra.mxu1 %vm1567_vm2, %v8708_v10 }
 0x82b   : > { %6785 = vmatprep.mubr.msk.f32.mxu1 %vm8169_vm0, %v8168_v1 }
 0x8e2   : > { %v2375_v8 = vpop.f32.mrf.mxu1 }
 0x8e3   : > { %6761 = vmatmul.mubr.msk.f32.vlgmr.msra.gmra.mxu0 %vm1807_vm3, %v2375_v8  ;;  %v6485_v8 = vld [vmem:[%s9193_s28 + $0x18] sm:$0xff] }
 0x8e4   : > { %v6757_v9 = vpop.f32.mrf.mxu1  ;;  %6769 = vmatpush3.xpose.msk.msra.mxu0 %vm1567_vm2, %v6457_v7  ;;  %6770 = vmatprep.mubr.msk.f32.mxu0 %vm8169_vm0, %v8168_v1 }
 0x8e5   : > { %6778 = vmatprep.subr.mxu0 %v8168_v1 }
 0x8e6   : > { %v8786_v12 = vpop.f32.mrf.mxu1 }
 0x8e7   : > { %6771 = vmatmul.mubr.msk.f32.vlgmr.msra.gmra.mxu0 %vm1567_vm2, %v8708_v10 }
 0x8e8   : > { %v6767_v13 = vpop.f32.mrf.mxu1  ;;  %6779 = vmatpush3.xpose.msk.msra.mxu0 %vm1567_vm2, %v2694_v11  ;;  %6780 = vmatprep.mubr.msk.f32.mxu0 %vm8169_vm0, %v8168_v1 }
 0x8e9   : > { %6788 = vmatprep.subr.mxu0 %v8168_v1 }
 0x8ea   : > { %v2689_v15 = vpop.f32.mrf.mxu1 }
 0x8eb   : > { %v2690_v16 = vadd.f32 %v6461_v14, %v2689_v15  ;;  %6781 = vmatmul.mubr.msk.f32.vlgmr.msra.gmra.mxu0 %vm1567_vm2, %v8708_v10 }
 0x8ec   : > { %v6777_v17 = vpop.f32.mrf.mxu1  ;;  %6790 = vmatprep.mubr.msk.f32.mxu0 %vm8169_vm0, %v8168_v1 }
 0x8ed   : > { %6784 = vmatpush3.xpose.msk.msra.mxu1 %vm1807_vm3, %v2690_v16  ;;  %v6487_v16 = vld [vmem:[%s9194_s11] ss:$0 sm:$0xff]  ;;  %s9203_s11 = sld [smem:[#allocation85_spill]] }
 0x8ee   : > { %6793 = vmatprep.subr.mxu1 %v8168_v1 }
 0x9a3   : > { %v2450_v18 = vpop.f32.mrf.mxu0 }
 0x9a4   : > { %v2524_v52 = vadd.f32 %v8786_v12, %v2450_v18 }
 0x9a5   : > { %v6762_v19 = vpop.f32.mrf.mxu0 }
 0x9a7   : > { %v2606_v21 = vpop.f32.mrf.mxu0 }
 0x9a8   : > { %v2607_v22 = vadd.f32 %v6458_v20, %v2606_v21 }
 0x9a9   : > { %v6772_v23 = vpop.f32.mrf.mxu0 }
 0x9aa   : > { %v2776_v25 = vmul.f32 0.35355338, %v2607_v22 }
 0x9ab   : > { %v2772_v26 = vpop.f32.mrf.mxu0 }
 0x9ac   : > { %v2773_v27 = vadd.f32 %v6464_v24, %v2772_v26  ;;  %6786 = vmatmul.mubr.msk.f32.vlgmr.msra.gmra.mxu1 %vm1807_vm3, %v2776_v25 }
 0x9ad   : > { %v6782_v28 = vpop.f32.mrf.mxu0  ;;  %6795 = vmatprep.mubr.msk.f32.mxu1 %vm8169_vm0, %v8168_v1  ;;  %6794 = vmatpush3.msra.mxu1 %v6470_v37 }
 0x9ae   : > { %6789 = vmatpush3.msra.mxu0 %v2773_v27  ;;  %6803 = vmatprep.subr.mxu1 %v8168_v1  ;;  %v3541_v27 = vld [vmem:[#allocation15 + $0x18] sm:$0xff]  ;;  %v3540_v28 = vld [vmem:[#allocation15 + $0x10] sm:$0xff] }
 0x9af   : > { %6798 = vmatprep.subr.mxu0 %v8168_v1 }
 0xa6c   : > { %v2849_v29 = vpop.f32.mrf.mxu1 }
 0xa6d   : > { %v2853_v30 = vsel %vm1807_vm3, %v2849_v29, -inf }
 0xa6e   : > { %2854 = vmax.xlane.f32.xlu0 %v2853_v30  ;;  %v6787_v31 = vpop.f32.mrf.mxu1 }
 0xaf7   : > { %v2855_v32 = vpop.xlane.xlu0 %2854 }
 0xaf8   : > { %v2856_v33 = vsub.f32 %v2849_v29, %v2855_v32  ;;  %v3538_v29 = vld [vmem:[#allocation15] sm:$0xff] }
 0xafa   : > { %v2857_v34 = vmul.f32 1.442695, %v2856_v33 }
 0xafc   : > { %7323 = vpow2.f32 %v2857_v34  ;;  %v6488_v34 = vld [vmem:[#allocation21] ss:$0 sm:$0xff] }
 0xb09   : > { %v7324_v35 = vpop.eup %7323 }
 0xb0a   : > { %v2859_v36 = vsel %vm1807_vm3, %v7324_v35, 0.0 }
 0xb0b   : > { %2860 = vadd.xlane.f32.xlu1 %v2859_v36  ;;  %v6489_v36 = vld [vmem:[#allocation23] ss:$0 sm:$0xff] }
 0xb94   : > { %v2861_v38 = vpop.xlane.xlu1 %2860 }
 0xb95   : > { %7325 = vrcp.f32 %v2861_v38 }
 0xba2   : > { %v7326_v39 = vpop.eup %7325 }
 0xba3   : > { %v2863_v40 = vmul.f32 %v7326_v39, %v7324_v35  ;;  %v3664_v39 = vld [vmem:[#allocation18 + $0x18] sm:$0xff] }
 0xba5   : > { %6791 = vmatmul.mubr.msk.f32.vlgmr.msra.gmra.mxu0 %vm1807_vm3, %v2863_v40  ;;  %v3663_v40 = vld [vmem:[#allocation18 + $0x10] sm:$0xff] }
 0xba6   : > { %6799 = vmatpush3.xpose.msk.msra.mxu0 %vm1567_vm2, %v6472_v41  ;;  %6800 = vmatprep.mubr.msk.f32.mxu0 %vm8169_vm0, %v8168_v1  ;;  %v3662_v41 = vld [vmem:[#allocation18 + $0x8] sm:$0xff] }
 0xba7   : > { %6808 = vmatprep.subr.mxu0 %v8168_v1 }
 0xba9   : > { %6801 = vmatmul.mubr.msk.f32.vlgmr.msra.gmra.mxu0 %vm1567_vm2, %v8708_v10 }
 0xbaa   : > { %6809 = vmatpush3.xpose.msk.msra.mxu0 %vm1567_vm2, %v3180_v42  ;;  %6810 = vmatprep.mubr.msk.f32.mxu0 %vm8169_vm0, %v8168_v1  ;;  %v3661_v42 = vld [vmem:[#allocation18] sm:$0xff] }
 0xbab   : > { %6818 = vmatprep.subr.mxu0 %v8168_v1 }
 0xbad   : > { %6811 = vmatmul.mubr.msk.f32.vlgmr.msra.gmra.mxu0 %vm1567_vm2, %v8708_v10 }
 0xbae   : > { %6820 = vmatprep.mubr.msk.f32.mxu0 %vm8169_vm0, %v8168_v1 }
 0xc65   : > { %v2933_v44 = vpop.f32.mrf.mxu0 }
 0xc66   : > { %6796 = vmatmul.mubr.msk.f32.vlgmr.msra.gmra.mxu1 %vm1807_vm3, %v2933_v44 }
 0xc67   : > { %v6792_v45 = vpop.f32.mrf.mxu0  ;;  %6804 = vmatpush3.xpose.msk.msra.mxu1 %vm1567_vm2, %v3097_v43  ;;  %6805 = vmatprep.mubr.msk.f32.mxu1 %vm8169_vm0, %v8168_v1  ;;  %v6490_v43 = vld [vmem:[#allocation17] ss:$0 sm:$0xff] }
 0xc68   : > { %6813 = vmatprep.subr.mxu1 %v8168_v1 }
 0xc69   : > { %v3092_v46 = vpop.f32.mrf.mxu0 }
 0xc6a   : > { %6806 = vmatmul.mubr.msk.f32.vlgmr.msra.gmra.mxu1 %vm1567_vm2, %v8708_v10  ;;  %v3093_v58 = vadd.f32 %v6473_v54, %v3092_v46 }
 0xc6b   : > { %v6802_v47 = vpop.f32.mrf.mxu0  ;;  %6815 = vmatprep.mubr.msk.f32.mxu1 %vm8169_vm0, %v8168_v1 }
 0xc6c   : > { %v3262_v62 = vmul.f32 0.35355338, %v3093_v58 }
 0xc6d   : > { %v3258_v49 = vpop.f32.mrf.mxu0 }
 0xc6e   : > { %v3259_v50 = vadd.f32 %v6479_v48, %v3258_v49 }
 0xc6f   : > { %v6812_v51 = vpop.f32.mrf.mxu0 }
 0xc70   : > { %6819 = vmatpush3.msra.mxu0 %v3259_v50 }
 0xc71   : > { %6828 = vmatprep.subr.mxu0 %v8168_v1 }
 0xd26   : > { %v3008_v53 = vpop.f32.mrf.mxu1 }
 0xd27   : > { %v3012_v55 = vadd.f32 %v3008_v53, %v2524_v52 }
 0xd28   : > { %v6797_v56 = vpop.f32.mrf.mxu1 }
 0xd2a   : > { %v3175_v59 = vpop.f32.mrf.mxu1 }
 0xd2b   : > { %v3176_v60 = vadd.f32 %v6476_v57, %v3175_v59 }
 0xd2c   : > { %v6807_v61 = vpop.f32.mrf.mxu1 }
 0xd2d   : > { %6814 = vmatpush3.xpose.msk.msra.mxu1 %vm1807_vm3, %v3176_v60 }
 0xd2e   : > { %6823 = vmatprep.subr.mxu1 %v8168_v1 }
 0xd30   : > { %6816 = vmatmul.mubr.msk.f32.vlgmr.msra.gmra.mxu1 %vm1807_vm3, %v3262_v62 }
 0xd31   : > { %6825 = vmatprep.mubr.msk.f32.mxu1 %vm8169_vm0, %v8168_v1  ;;  %6824 = vmatpush3.msra.mxu1 %v6485_v8 }
 0xd32   : > { %6839 = vmatprep.subr.mxu1 %v8168_v1 }
 0xdf0   : > { %v3335_v63 = vpop.f32.mrf.mxu1 }
 0xdf1   : > { %v3339_v0 = vsel %vm1807_vm3, %v3335_v63, -inf }
 0xdf2   : > { %3340 = vmax.xlane.f32.xlu0 %v3339_v0  ;;  %v6817_v2 = vpop.f32.mrf.mxu1 }
 0xe7b   : > { %v3341_v3 = vpop.xlane.xlu0 %3340 }
 0xe7c   : > { %v3342_v4 = vsub.f32 %v3335_v63, %v3341_v3 }
 0xe7e   : > { %v3343_v5 = vmul.f32 1.442695, %v3342_v4 }
 0xe80   : > { %7327 = vpow2.f32 %v3343_v5 }
 0xe8d   : > { %v7328_v6 = vpop.eup %7327 }
 0xe8e   : > { %v3345_v7 = vsel %vm1807_vm3, %v7328_v6, 0.0 }
 0xe8f   : > { %3346 = vadd.xlane.f32.xlu1 %v3345_v7 }
 0xf18   : > { %v3347_v9 = vpop.xlane.xlu1 %3346 }
 0xf19   : > { %7329 = vrcp.f32 %v3347_v9  ;;  %v6496_v9 = vld [vmem:[#allocation20] ss:$0 sm:$0xff] }
 0xf26   : > { %v7330_v11 = vpop.eup %7329 }
 0xf27   : > { %v3349_v12 = vmul.f32 %v7330_v11, %v7328_v6 }
 0xf29   : > { %6821 = vmatmul.mubr.msk.f32.vlgmr.msra.gmra.mxu0 %vm1807_vm3, %v3349_v12 }
 0xf2a   : > { %6836 = vmatprep.mubr.msk.f32.mxu0 %vm8169_vm0, %v8168_v1  ;;  %6829 = vmatpush3.xpose.msk.msra.mxu0 %vm1567_vm2, %v3541_v27  ;;  %v6502_v27 = vld [vmem:[#allocation24] ss:$0 sm:$0xff] }
 0xf2b   : > { %6830 = vmatprep.subr.mxu0 %v8168_v1 }
 0xf2e   : > { %6831 = vmatpush3.xpose.msk.msra.mxu0 %vm1567_vm2, %v3540_v28 }
 0xf2f   : > { %6832 = vmatprep.subr.mxu0 %v8168_v1 }
 0xfe9   : > { %v3419_v13 = vpop.f32.mrf.mxu0 }
 0xfea   : > { %6826 = vmatmul.mubr.msk.f32.vlgmr.msra.gmra.mxu1 %vm1807_vm3, %v3419_v13 }
 0xfeb   : > { %v6822_v14 = vpop.f32.mrf.mxu0  ;;  %6847 = vmatprep.mubr.msk.f32.mxu1 %vm8169_vm0, %v8168_v1  ;;  %6840 = vmatpush3.xpose.msk.msra.mxu1 %vm1567_vm2, %v3664_v39 }
 0xfec   : > { %6841 = vmatprep.subr.mxu1 %v8168_v1 }
 0xfef   : > { %6842 = vmatpush3.xpose.msk.msra.mxu1 %vm1567_vm2, %v3663_v40  ;;  %v6510_v40 = vld [vmem:[#allocation35] ss:$0 sm:$0xff] }
 0xff0   : > { %6843 = vmatprep.subr.mxu1 %v8168_v1 }
 0xff3   : > { %6844 = vmatpush3.xpose.msk.msra.mxu1 %vm1567_vm2, %v3662_v41 }
 0xff4   : > { %6845 = vmatprep.subr.mxu1 %v8168_v1 }
 0xff7   : > { %6846 = vmatpush3.xpose.msk.msra.mxu1 %vm1567_vm2, %v3661_v42 }
 0xff8   : > { %6855 = vmatprep.subr.mxu1 %v8168_v1 }
0x10aa   : > { %v3494_v15 = vpop.f32.mrf.mxu1 }
0x10ab   : > { %v3498_v17 = vadd.f32 %v3494_v15, %v3012_v55 }
0x10ac   : > { %v6827_v18 = vpop.f32.mrf.mxu1 }
0x10ad   : > { %v3506_v19 = vadd.f32 %v6487_v16, %v3498_v17 }
0x10af   : > { %v3507_v20 = vadd.f32 %v3506_v19, %v8708_v10  ;;  %v3539_v10 = vld [vmem:[#allocation15 + $0x8] sm:$0xff] }
0x10b0   : > { %6833 = vmatpush3.xpose.msk.msra.mxu0 %vm1567_vm2, %v3539_v10  ;;  %v6503_v10 = vld [vmem:[#allocation26] ss:$0 sm:$0xff] }
0x10b1   : > { %v3510_v21 = vsel %vm1567_vm2, %v3507_v20, 0.0  ;;  %6834 = vmatprep.subr.mxu0 %v8168_v1 }
0x10b2   : > { %3511 = vadd.xlane.f32.xlu0 %v3510_v21  ;;  %v3787_v21 = vld [vmem:[#allocation27] sm:$0xff] }
0x10b4   : > { %6835 = vmatpush3.xpose.msk.msra.mxu0 %vm1567_vm2, %v3538_v29 }
0x10b5   : > { %6850 = vmatprep.subr.mxu0 %v8168_v1 }
0x113b   : > { %v3512_v22 = vpop.xlane.xlu0 %3511 }
0x113c   : > { %v3514_v23 = vmul.f32 0.03125, %v3512_v22  ;;  %v3871_v22 = vld [vmem:[#allocation29] sm:$0xff] }
0x113e   : > { %v3515_v24 = vsub.f32 %v3507_v20, %v3514_v23 }
0x1140   : > { %v3516_v25 = vmul.f32 %v3515_v24, %v3515_v24 }
0x1142   : > { %v3517_v26 = vsel %vm1567_vm2, %v3516_v25, 0.0 }
0x1143   : > { %3518 = vadd.xlane.f32.xlu1 %v3517_v26 }
0x11cc   : > { %v3519_v30 = vpop.xlane.xlu1 %3518 }
0x11cd   : > { %v3520_v31 = vmul.f32 0.03125, %v3519_v30 }
0x11cf   : > { %v3521_v32 = vadd.f32 1e-05, %v3520_v31  ;;  %v3952_v31 = vld [vmem:[#allocation30] sm:$0xff] }
0x11d1   : > { %7331 = vrsqrt.f32 %v3521_v32  ;;  %v6504_v32 = vld [vmem:[#allocation32] ss:$0 sm:$0xff] }
0x11de   : > { %v7332_v33 = vpop.eup %7331 }
0x11df   : > { %v3523_v35 = vmul.f32 %v7332_v33, %v3515_v24  ;;  %v6507_v33 = vld [vmem:[#allocation33] ss:$0 sm:$0xff] }
0x11e1   : > { %v3530_v37 = vmul.f32 %v6488_v34, %v3523_v35 }
0x11e3   : > { %v3537_v38 = vadd.f32 %v6489_v36, %v3530_v37 }
0x11e5   : > { %6837 = vmatmul.mubr.msk.f32.vlgmr.msra.gmra.mxu0 %vm1567_vm2, %v3537_v38 }
0x11e6   : > { %6852 = vmatprep.mubr.msk.f32.mxu0 %vm8169_vm0, %v8168_v1  ;;  %6851 = vmatpush3.xpose.msk.msra.mxu0 %vm1567_vm2, %v3787_v21 }
0x11e7   : > { %6860 = vmatprep.subr.mxu0 %v8168_v1 }
0x12a5   : > { %v3630_v44 = vpop.f32.mrf.mxu0 }
0x12a6   : > { %v3631_v45 = vadd.f32 %v6490_v43, %v3630_v44  ;;  %v4196_v43 = vld [vmem:[#allocation27 + $0x8] sm:$0xff] }
0x12a7   : > { %v6838_v46 = vpop.f32.mrf.mxu0 }
0x12a8   : > { %v3635_v47 = vmul.f32 0.70710677, %v3631_v45  ;;  %v3634_v6 = vmul.f32 0.5, %v3631_v45  ;;  %v4362_v46 = vld [vmem:[#allocation30 + $0x8] sm:$0xff] }
0x12aa   : > { %v3636_v48 = vand.u32 2147483647, %v3635_v47  ;;  %vm3656_vm4 = vcmp.ge.f32.partialorder %v3635_v47, 0.0 }
0x12ac   : > { %v3637_v49 = vmul.f32 0.3275911, %v3636_v48  ;;  %v3650_v51 = vsub.f32 0.0, %v3636_v48 }
0x12ae   : > { %v3638_v50 = vadd.f32 1.0, %v3637_v49  ;;  %v3651_v52 = vmul.f32 %v3650_v51, %v3636_v48 }
0x12b0   : > { %7333 = vrcp.f32 %v3638_v50  ;;  %v3652_v55 = vmul.f32 1.442695, %v3651_v52  ;;  %v6522_v52 = vld [vmem:[#allocation35 + $0x1] ss:$0 sm:$0xff] }
0x12b2   : > { %7335 = vpow2.f32 %v3652_v55 }
0x12bd   : > { %v7334_v53 = vpop.eup %7333 }
0x12be   : > { %v3641_v54 = vmul.f32 1.0614054, %v7334_v53 }
0x12bf   : > { %v7336_v0 = vpop.eup %7335 }
0x12c0   : > { %v3642_v56 = vadd.f32 -1.4531521, %v3641_v54 }
0x12c2   : > { %v3643_v57 = vmul.f32 %v7334_v53, %v3642_v56 }
0x12c4   : > { %v3644_v58 = vadd.f32 1.4214138, %v3643_v57 }
0x12c6   : > { %v3645_v59 = vmul.f32 %v7334_v53, %v3644_v58 }
0x12c8   : > { %v3646_v60 = vadd.f32 -0.28449672, %v3645_v59 }
0x12ca   : > { %v3647_v61 = vmul.f32 %v7334_v53, %v3646_v60 }
0x12cc   : > { %v3648_v62 = vadd.f32 0.2548296, %v3647_v61 }
0x12ce   : > { %v3649_v63 = vmul.f32 %v7334_v53, %v3648_v62 }
0x12d0   : > { %v3654_v2 = vmul.f32 %v7336_v0, %v3649_v63  ;;  %v4279_v0 = vld [vmem:[#allocation29 + $0x8] sm:$0xff] }
0x12d2   : > { %v3655_v3 = vsub.f32 1.0, %v3654_v2 }
0x12d4   : > { %v3657_v4 = vsub.f32 0.0, %v3655_v3 }
0x12d6   : > { %v3658_v5 = vsel %vm3656_vm4, %v3655_v3, %v3657_v4  ;;  %v6516_v3 = vld [vmem:[#allocation32 + $0x1] ss:$0 sm:$0xff] }
0x12d7   : > { %v3659_v7 = vadd.f32 1.0, %v3658_v5  ;;  %v6519_v5 = vld [vmem:[#allocation33 + $0x1] ss:$0 sm:$0xff] }
0x12d9   : > { %v3660_v8 = vmul.f32 %v3659_v7, %v3634_v6 }
0x12db   : > { %6848 = vmatmul.mubr.msk.f32.vlgmr.msra.gmra.mxu1 %vm1567_vm2, %v3660_v8 }
0x12dc   : > { %6857 = vmatprep.mubr.msk.f32.mxu1 %vm8169_vm0, %v8168_v1  ;;  %6856 = vmatpush3.xpose.msk.msra.mxu1 %vm1567_vm2, %v3871_v22 }
0x12dd   : > { %6865 = vmatprep.subr.mxu1 %v8168_v1 }
0x139b   : > { %v3753_v11 = vpop.f32.mrf.mxu1 }
0x139c   : > { %v3754_v12 = vadd.f32 %v6496_v9, %v3753_v11 }
0x139d   : > { %v6849_v13 = vpop.f32.mrf.mxu1 }
0x139e   : > { %v3757_v14 = vadd.f32 %v3754_v12, %v3631_v45 }
0x13a0   : > { %v3760_v15 = vsel %vm1567_vm2, %v3757_v14, 0.0 }
0x13a1   : > { %3761 = vadd.xlane.f32.xlu0 %v3760_v15 }
0x142a   : > { %v3762_v16 = vpop.xlane.xlu0 %3761 }
0x142b   : > { %v3763_v17 = vmul.f32 0.03125, %v3762_v16 }
0x142d   : > { %v3764_v18 = vsub.f32 %v3757_v14, %v3763_v17 }
0x142f   : > { %v3765_v19 = vmul.f32 %v3764_v18, %v3764_v18 }
0x1431   : > { %v3766_v20 = vsel %vm1567_vm2, %v3765_v19, 0.0 }
0x1432   : > { %3767 = vadd.xlane.f32.xlu1 %v3766_v20  ;;  %v4606_v20 = vld [vmem:[#allocation36 + $0x8] sm:$0xff] }
0x14bb   : > { %v3768_v23 = vpop.xlane.xlu1 %3767 }
0x14bc   : > { %v3769_v24 = vmul.f32 0.03125, %v3768_v23 }
0x14be   : > { %v3770_v25 = vadd.f32 1e-05, %v3769_v24  ;;  %v4194_v24 = vld [vmem:[#allocation36] sm:$0xff] }
0x14c0   : > { %7337 = vrsqrt.f32 %v3770_v25  ;;  %v4837_v25 = vld [vmem:[#allocation29 + $0x10] sm:$0xff] }
0x14cd   : > { %v7338_v26 = vpop.eup %7337 }
0x14ce   : > { %v3772_v28 = vmul.f32 %v7338_v26, %v3764_v18  ;;  %v4754_v26 = vld [vmem:[#allocation27 + $0x10] sm:$0xff] }
0x14d0   : > { %v3779_v29 = vmul.f32 %v6502_v27, %v3772_v28 }
0x14d2   : > { %v8882_v30 = vadd.f32 %v6503_v10, %v3779_v29  ;;  %v4920_v10 = vld [vmem:[#allocation30 + $0x10] sm:$0xff] }
0x14d4   : > { %6853 = vmatmul.mubr.msk.f32.vlgmr.msra.gmra.mxu0 %vm1567_vm2, %v8882_v30  ;;  %6858 = vmatmul.mubr.msk.f32.vlgmr.msra.gmra.mxu1 %vm1567_vm2, %v8882_v30 }
0x14d5   : > { %6861 = vmatpush3.xpose.msk.msra.mxu0 %vm1567_vm2, %v3952_v31  ;;  %6862 = vmatprep.mubr.msk.f32.mxu0 %vm8169_vm0, %v8168_v1 }
0x14d6   : > { %6867 = vmatprep.mubr.msk.f32.mxu1 %vm8169_vm0, %v8168_v1  ;;  %6870 = vmatprep.subr.mxu0 %v8168_v1 }
0x14d8   : > { %6863 = vmatmul.mubr.msk.f32.vlgmr.msra.gmra.mxu0 %vm1567_vm2, %v8882_v30 }
0x14d9   : > { %6872 = vmatprep.mubr.msk.f32.mxu0 %vm8169_vm0, %v8168_v1 }
0x1594   : > { %v3867_v34 = vpop.f32.mrf.mxu0  ;;  %v3948_v35 = vpop.f32.mrf.mxu1 }
0x1595   : > { %v3868_v36 = vadd.f32 %v6504_v32, %v3867_v34  ;;  %v3949_v37 = vadd.f32 %v6507_v33, %v3948_v35  ;;  %v6533_v32 = vld [vmem:[#allocation33 + $0x2] ss:$0 sm:$0xff] }
0x1596   : > { %v6854_v38 = vpop.f32.mrf.mxu0  ;;  %v6859_v39 = vpop.f32.mrf.mxu1 }
0x1597   : > { %v4033_v41 = vmul.f32 0.35355338, %v3868_v36  ;;  %6866 = vmatpush3.xpose.msk.msra.mxu1 %vm1807_vm3, %v3949_v37  ;;  %v6530_v38 = vld [vmem:[#allocation32 + $0x2] ss:$0 sm:$0xff] }
0x1598   : > { %v4029_v42 = vpop.f32.mrf.mxu0  ;;  %6875 = vmatprep.subr.mxu1 %v8168_v1 }
0x1599   : > { %v4030_v44 = vadd.f32 %v6510_v40, %v4029_v42  ;;  %v6536_v42 = vld [vmem:[#allocation35 + $0x2] ss:$0 sm:$0xff] }
0x159a   : > { %v6864_v45 = vpop.f32.mrf.mxu0  ;;  %6868 = vmatmul.mubr.msk.f32.vlgmr.msra.gmra.mxu1 %vm1807_vm3, %v4033_v41 }
0x159b   : > { %6871 = vmatpush3.msra.mxu0 %v4030_v44  ;;  %6876 = vmatpush3.xpose.msk.msra.mxu1 %vm1567_vm2, %v4196_v43 }
0x159c   : > { %6877 = vmatprep.mubr.msk.f32.mxu1 %vm8169_vm0, %v8168_v1  ;;  %6885 = vmatprep.subr.mxu1 %v8168_v1 }
0x159d   : > { %6880 = vmatprep.subr.mxu0 %v8168_v1 }
0x159e   : > { %6878 = vmatmul.mubr.msk.f32.vlgmr.msra.gmra.mxu1 %vm1567_vm2, %v8882_v30 }
0x159f   : > { %6886 = vmatpush3.xpose.msk.msra.mxu1 %vm1567_vm2, %v4362_v46  ;;  %6887 = vmatprep.mubr.msk.f32.mxu1 %vm8169_vm0, %v8168_v1 }
0x15a0   : > { %6895 = vmatprep.subr.mxu1 %v8168_v1 }
0x15a2   : > { %6888 = vmatmul.mubr.msk.f32.vlgmr.msra.gmra.mxu1 %vm1567_vm2, %v8882_v30 }
0x15a3   : > { %6897 = vmatprep.mubr.msk.f32.mxu1 %vm8169_vm0, %v8168_v1 }
0x165a   : > { %v4106_v47 = vpop.f32.mrf.mxu1 }
0x165b   : > { %v4110_v48 = vsel %vm1807_vm3, %v4106_v47, -inf }
0x165c   : > { %4111 = vmax.xlane.f32.xlu0 %v4110_v48  ;;  %v6869_v49 = vpop.f32.mrf.mxu1 }
0x165e   : > { %v4274_v50 = vpop.f32.mrf.mxu1 }
0x165f   : > { %v4275_v6 = vadd.f32 %v6516_v3, %v4274_v50  ;;  %v6549_v3 = vld [vmem:[#allocation35 + $0x3] ss:$0 sm:$0xff] }
0x1660   : > { %v6879_v51 = vpop.f32.mrf.mxu1 }
0x1661   : > { %v4444_v11 = vmul.f32 0.35355338, %v4275_v6 }
0x1662   : > { %v4440_v53 = vpop.f32.mrf.mxu1 }
0x1663   : > { %v4441_v54 = vadd.f32 %v6522_v52, %v4440_v53 }
0x1664   : > { %v6889_v55 = vpop.f32.mrf.mxu1 }
0x1665   : > { %6896 = vmatpush3.msra.mxu1 %v4441_v54  ;;  %v5164_v55 = vld [vmem:[#allocation36 + $0x10] sm:$0xff] }
0x1666   : > { %6905 = vmatprep.subr.mxu1 %v8168_v1 }
0x16e5   : > { %v4112_v56 = vpop.xlane.xlu0 %4111 }
0x16e6   : > { %v4113_v57 = vsub.f32 %v4106_v47, %v4112_v56 }
0x16e8   : > { %v4114_v58 = vmul.f32 1.442695, %v4113_v57 }
0x16ea   : > { %7339 = vpow2.f32 %v4114_v58 }
0x16f7   : > { %v7340_v59 = vpop.eup %7339 }
0x16f8   : > { %v4116_v60 = vsel %vm1807_vm3, %v7340_v59, 0.0 }
0x16f9   : > { %4117 = vadd.xlane.f32.xlu1 %v4116_v60  ;;  %v5406_v60 = vld [vmem:[#allocation30 + $0x18] sm:$0xff] }
0x1782   : > { %v4118_v61 = vpop.xlane.xlu1 %4117 }
0x1783   : > { %7341 = vrcp.f32 %v4118_v61  ;;  %v5323_v61 = vld [vmem:[#allocation29 + $0x18] sm:$0xff] }
0x1790   : > { %v7342_v62 = vpop.eup %7341 }
0x1791   : > { %v4120_v63 = vmul.f32 %v7342_v62, %v7340_v59  ;;  %v5240_v59 = vld [vmem:[#allocation27 + $0x18] sm:$0xff] }
0x1793   : > { %6873 = vmatmul.mubr.msk.f32.vlgmr.msra.gmra.mxu0 %vm1807_vm3, %v4120_v63 }
0x1794   : > { %6881 = vmatpush3.xpose.msk.msra.mxu0 %vm1567_vm2, %v4279_v0  ;;  %6882 = vmatprep.mubr.msk.f32.mxu0 %vm8169_vm0, %v8168_v1 }
0x1795   : > { %6890 = vmatprep.subr.mxu0 %v8168_v1 }
0x1797   : > { %6883 = vmatmul.mubr.msk.f32.vlgmr.msra.gmra.mxu0 %vm1567_vm2, %v8882_v30 }
0x1798   : > { %6892 = vmatprep.mubr.msk.f32.mxu0 %vm8169_vm0, %v8168_v1 }
0x1853   : > { %v4190_v2 = vpop.f32.mrf.mxu0 }
0x1855   : > { %v6874_v4 = vpop.f32.mrf.mxu0 }
0x1857   : > { %v4357_v7 = vpop.f32.mrf.mxu0 }
0x1858   : > { %v4358_v8 = vadd.f32 %v6519_v5, %v4357_v7 }
0x1859   : > { %v6884_v9 = vpop.f32.mrf.mxu0 }
0x185a   : > { %6891 = vmatpush3.xpose.msk.msra.mxu0 %vm1807_vm3, %v4358_v8  ;;  %v6543_v9 = vld [vmem:[#allocation32 + $0x3] ss:$0 sm:$0xff] }
0x185b   : > { %6900 = vmatprep.subr.mxu0 %v8168_v1 }
0x185d   : > { %6893 = vmatmul.mubr.msk.f32.vlgmr.msra.gmra.mxu0 %vm1807_vm3, %v4444_v11 }
0x185e   : > { %6902 = vmatprep.mubr.msk.f32.mxu0 %vm8169_vm0, %v8168_v1  ;;  %6901 = vmatpush3.msra.mxu0 %v4606_v20 }
0x185f   : > { %6910 = vmatprep.subr.mxu0 %v8168_v1 }
0x191d   : > { %v4517_v12 = vpop.f32.mrf.mxu0 }
0x191e   : > { %v4521_v13 = vsel %vm1807_vm3, %v4517_v12, -inf }
0x191f   : > { %4522 = vmax.xlane.f32.xlu0 %v4521_v13  ;;  %v6894_v14 = vpop.f32.mrf.mxu0  ;;  %v6546_v13 = vld [vmem:[#allocation33 + $0x3] ss:$0 sm:$0xff] }
0x19a8   : > { %v4523_v15 = vpop.xlane.xlu0 %4522 }
0x19a9   : > { %v4524_v16 = vsub.f32 %v4517_v12, %v4523_v15 }
0x19ab   : > { %v4525_v17 = vmul.f32 1.442695, %v4524_v16 }
0x19ad   : > { %7343 = vpow2.f32 %v4525_v17 }
0x19ba   : > { %v7344_v18 = vpop.eup %7343 }
0x19bb   : > { %v4527_v19 = vsel %vm1807_vm3, %v7344_v18, 0.0 }
0x19bc   : > { %4528 = vadd.xlane.f32.xlu1 %v4527_v19 }
0x1a45   : > { %v4529_v21 = vpop.xlane.xlu1 %4528 }
0x1a46   : > { %7345 = vrcp.f32 %v4529_v21 }
0x1a53   : > { %v7346_v22 = vpop.eup %7345 }
0x1a54   : > { %v4531_v23 = vmul.f32 %v7346_v22, %v7344_v18 }
0x1a56   : > { %6898 = vmatmul.mubr.msk.f32.vlgmr.msra.gmra.mxu1 %vm1807_vm3, %v4531_v23 }
0x1a57   : > { %6906 = vmatpush3.msra.mxu1 %v4194_v24  ;;  %6907 = vmatprep.mubr.msk.f32.mxu1 %vm8169_vm0, %v8168_v1 }
0x1a58   : > { %6915 = vmatprep.subr.mxu1 %v8168_v1 }
0x1a5a   : > { %6908 = vmatmul.mubr.msk.f32.vlgmr.msra.gmra.mxu1 %vm1807_vm3, %v4190_v2 }
0x1a5b   : > { %6916 = vmatpush3.xpose.msk.msra.mxu1 %vm1567_vm2, %v4837_v25  ;;  %6917 = vmatprep.mubr.msk.f32.mxu1 %vm8169_vm0, %v8168_v1 }
0x1a5c   : > { %6925 = vmatprep.subr.mxu1 %v8168_v1 }
0x1a5e   : > { %6918 = vmatmul.mubr.msk.f32.vlgmr.msra.gmra.mxu1 %vm1567_vm2, %v8882_v30 }
0x1a5f   : > { %6927 = vmatprep.mubr.msk.f32.mxu1 %vm8169_vm0, %v8168_v1 }
0x1b16   : > { %v4601_v27 = vpop.f32.mrf.mxu1 }
0x1b17   : > { %6903 = vmatmul.mubr.msk.f32.vlgmr.msra.gmra.mxu0 %vm1807_vm3, %v4601_v27  ;;  %v5650_v27 = vld [vmem:[#allocation36 + $0x18] sm:$0xff] }
0x1b18   : > { %v6899_v28 = vpop.f32.mrf.mxu1  ;;  %6911 = vmatpush3.xpose.msk.msra.mxu0 %vm1567_vm2, %v4754_v26  ;;  %6912 = vmatprep.mubr.msk.f32.mxu0 %vm8169_vm0, %v8168_v1 }
0x1b19   : > { %6920 = vmatprep.subr.mxu0 %v8168_v1 }
0x1b1a   : > { %v8954_v29 = vpop.f32.mrf.mxu1 }
0x1b1b   : > { %6913 = vmatmul.mubr.msk.f32.vlgmr.msra.gmra.mxu0 %vm1567_vm2, %v8882_v30 }
0x1b1c   : > { %v6909_v31 = vpop.f32.mrf.mxu1  ;;  %6921 = vmatpush3.xpose.msk.msra.mxu0 %vm1567_vm2, %v4920_v10  ;;  %6922 = vmatprep.mubr.msk.f32.mxu0 %vm8169_vm0, %v8168_v1 }
0x1b1d   : > { %6930 = vmatprep.subr.mxu0 %v8168_v1 }
0x1b1e   : > { %v4915_v33 = vpop.f32.mrf.mxu1 }
0x1b1f   : > { %v4916_v34 = vadd.f32 %v6533_v32, %v4915_v33  ;;  %6923 = vmatmul.mubr.msk.f32.vlgmr.msra.gmra.mxu0 %vm1567_vm2, %v8882_v30 }
0x1b20   : > { %v6919_v35 = vpop.f32.mrf.mxu1  ;;  %6932 = vmatprep.mubr.msk.f32.mxu0 %vm8169_vm0, %v8168_v1 }
0x1b21   : > { %6926 = vmatpush3.xpose.msk.msra.mxu1 %vm1807_vm3, %v4916_v34  ;;  %v6556_v34 = vld [vmem:[#allocation38] ss:$0 sm:$0xff] }
0x1b22   : > { %6935 = vmatprep.subr.mxu1 %v8168_v1 }
0x1bd7   : > { %v4676_v36 = vpop.f32.mrf.mxu0 }
0x1bd8   : > { %v4750_v7 = vadd.f32 %v8954_v29, %v4676_v36 }
0x1bd9   : > { %v6904_v37 = vpop.f32.mrf.mxu0 }
0x1bdb   : > { %v4832_v39 = vpop.f32.mrf.mxu0 }
0x1bdc   : > { %v4833_v40 = vadd.f32 %v6530_v38, %v4832_v39 }
0x1bdd   : > { %v6914_v41 = vpop.f32.mrf.mxu0 }
0x1bde   : > { %v5002_v43 = vmul.f32 0.35355338, %v4833_v40 }
0x1bdf   : > { %v4998_v44 = vpop.f32.mrf.mxu0 }
0x1be0   : > { %v4999_v45 = vadd.f32 %v6536_v42, %v4998_v44  ;;  %6928 = vmatmul.mubr.msk.f32.vlgmr.msra.gmra.mxu1 %vm1807_vm3, %v5002_v43 }
0x1be1   : > { %v6924_v46 = vpop.f32.mrf.mxu0  ;;  %6937 = vmatprep.mubr.msk.f32.mxu1 %vm8169_vm0, %v8168_v1  ;;  %6936 = vmatpush3.msra.mxu1 %v5164_v55 }
0x1be2   : > { %6931 = vmatpush3.msra.mxu0 %v4999_v45  ;;  %6945 = vmatprep.subr.mxu1 %v8168_v1  ;;  %v5766_v45 = vld [vmem:[%s9195_s23 + $0x18] sm:$0xff]  ;;  %v5765_v46 = vld [vmem:[%s9195_s23 + $0x10] sm:$0xff] }
0x1be3   : > { %6940 = vmatprep.subr.mxu0 %v8168_v1 }
0x1ca0   : > { %v5075_v47 = vpop.f32.mrf.mxu1 }
0x1ca1   : > { %v5079_v48 = vsel %vm1807_vm3, %v5075_v47, -inf }
0x1ca2   : > { %5080 = vmax.xlane.f32.xlu0 %v5079_v48  ;;  %v6929_v49 = vpop.f32.mrf.mxu1 }
0x1d2b   : > { %v5081_v50 = vpop.xlane.xlu0 %5080 }
0x1d2c   : > { %v5082_v51 = vsub.f32 %v5075_v47, %v5081_v50  ;;  %v5763_v47 = vld [vmem:[%s9195_s23] sm:$0xff] }
0x1d2e   : > { %v5083_v52 = vmul.f32 1.442695, %v5082_v51 }
0x1d30   : > { %7347 = vpow2.f32 %v5083_v52  ;;  %v6557_v52 = vld [vmem:[%s9196_s26] ss:$0 sm:$0xff]  ;;  %s1460_s26 = scalar_lea.vmem [#allocation41], %s8630_s13 }
0x1d3d   : > { %v7348_v53 = vpop.eup %7347 }
0x1d3e   : > { %v5085_v54 = vsel %vm1807_vm3, %v7348_v53, 0.0 }
0x1d3f   : > { %5086 = vadd.xlane.f32.xlu1 %v5085_v54  ;;  %v6558_v54 = vld [vmem:[%s9197_s6] ss:$0 sm:$0xff]  ;;  %s6048_s6 = sshll.u32 %s1460_s26, 4  ;;  %s9050_s6 = int_to_ptr.vmem [resolvable:$true] %s6048_s6 }
0x1dc8   : > { %v5087_v56 = vpop.xlane.xlu1 %5086 }
0x1dc9   : > { %7349 = vrcp.f32 %v5087_v56 }
0x1dd6   : > { %v7350_v57 = vpop.eup %7349 }
0x1dd7   : > { %v5089_v58 = vmul.f32 %v7350_v57, %v7348_v53  ;;  %v5889_v57 = vld [vmem:[#allocation39 + $0x18] sm:$0xff] }
0x1dd9   : > { %6933 = vmatmul.mubr.msk.f32.vlgmr.msra.gmra.mxu0 %vm1807_vm3, %v5089_v58  ;;  %v5888_v58 = vld [vmem:[#allocation39 + $0x10] sm:$0xff] }
0x1dda   : > { %6941 = vmatpush3.xpose.msk.msra.mxu0 %vm1567_vm2, %v5240_v59  ;;  %6942 = vmatprep.mubr.msk.f32.mxu0 %vm8169_vm0, %v8168_v1  ;;  %v5887_v59 = vld [vmem:[#allocation39 + $0x8] sm:$0xff] }
0x1ddb   : > { %6950 = vmatprep.subr.mxu0 %v8168_v1 }
0x1ddd   : > { %6943 = vmatmul.mubr.msk.f32.vlgmr.msra.gmra.mxu0 %vm1567_vm2, %v8882_v30 }
0x1dde   : > { %6951 = vmatpush3.xpose.msk.msra.mxu0 %vm1567_vm2, %v5406_v60  ;;  %6952 = vmatprep.mubr.msk.f32.mxu0 %vm8169_vm0, %v8168_v1  ;;  %v5886_v60 = vld [vmem:[#allocation39] sm:$0xff] }
0x1ddf   : > { %6960 = vmatprep.subr.mxu0 %v8168_v1 }
0x1de1   : > { %6953 = vmatmul.mubr.msk.f32.vlgmr.msra.gmra.mxu0 %vm1567_vm2, %v8882_v30 }
0x1de2   : > { %6962 = vmatprep.mubr.msk.f32.mxu0 %vm8169_vm0, %v8168_v1 }
0x1e99   : > { %v5159_v62 = vpop.f32.mrf.mxu0 }
0x1e9a   : > { %6938 = vmatmul.mubr.msk.f32.vlgmr.msra.gmra.mxu1 %vm1807_vm3, %v5159_v62 }
0x1e9b   : > { %v6934_v63 = vpop.f32.mrf.mxu0  ;;  %6946 = vmatpush3.xpose.msk.msra.mxu1 %vm1567_vm2, %v5323_v61  ;;  %6947 = vmatprep.mubr.msk.f32.mxu1 %vm8169_vm0, %v8168_v1  ;;  %v6559_v61 = vld [vmem:[%s9198_s1] ss:$0 sm:$0xff]  ;;  %s6573_s1 = sshll.u32 %s8386_s16, 4 }
0x1e9c   : > { %6955 = vmatprep.subr.mxu1 %v8168_v1 }
0x1e9d   : > { %v5318_v0 = vpop.f32.mrf.mxu0 }
0x1e9e   : > { %6948 = vmatmul.mubr.msk.f32.vlgmr.msra.gmra.mxu1 %vm1567_vm2, %v8882_v30  ;;  %v5319_v14 = vadd.f32 %v6543_v9, %v5318_v0 }
0x1e9f   : > { %v6944_v2 = vpop.f32.mrf.mxu0  ;;  %6957 = vmatprep.mubr.msk.f32.mxu1 %vm8169_vm0, %v8168_v1 }
0x1ea0   : > { %v5488_v18 = vmul.f32 0.35355338, %v5319_v14 }
0x1ea1   : > { %v5484_v4 = vpop.f32.mrf.mxu0 }
0x1ea2   : > { %v5485_v5 = vadd.f32 %v6549_v3, %v5484_v4 }
0x1ea3   : > { %v6954_v6 = vpop.f32.mrf.mxu0 }
0x1ea4   : > { %6961 = vmatpush3.msra.mxu0 %v5485_v5 }
0x1ea5   : > { %6970 = vmatprep.subr.mxu0 %v8168_v1 }
0x1f5a   : > { %v5234_v8 = vpop.f32.mrf.mxu1 }
0x1f5b   : > { %v5238_v11 = vadd.f32 %v5234_v8, %v4750_v7 }
0x1f5c   : > { %v6939_v12 = vpop.f32.mrf.mxu1 }
0x1f5e   : > { %v5401_v15 = vpop.f32.mrf.mxu1 }
0x1f5f   : > { %v5402_v16 = vadd.f32 %v6546_v13, %v5401_v15 }
0x1f60   : > { %v6949_v17 = vpop.f32.mrf.mxu1 }
0x1f61   : > { %6956 = vmatpush3.xpose.msk.msra.mxu1 %vm1807_vm3, %v5402_v16 }
0x1f62   : > { %6965 = vmatprep.subr.mxu1 %v8168_v1 }
0x1f64   : > { %6958 = vmatmul.mubr.msk.f32.vlgmr.msra.gmra.mxu1 %vm1807_vm3, %v5488_v18 }
0x1f65   : > { %6967 = vmatprep.mubr.msk.f32.mxu1 %vm8169_vm0, %v8168_v1  ;;  %6966 = vmatpush3.msra.mxu1 %v5650_v27  ;;  %v6565_v27 = vld [vmem:[%s9199_s22] ss:$0 sm:$0xff]  ;;  %s6046_s22 = scalar_lea.hbm %s9203_s11, %s6573_s1 }
0x1f66   : > { %6981 = vmatprep.subr.mxu1 %v8168_v1 }
0x2024   : > { %v5561_v19 = vpop.f32.mrf.mxu1 }
0x2025   : > { %v5565_v20 = vsel %vm1807_vm3, %v5561_v19, -inf }
0x2026   : > { %5566 = vmax.xlane.f32.xlu0 %v5565_v20  ;;  %v6959_v21 = vpop.f32.mrf.mxu1 }
0x20af   : > { %v5567_v22 = vpop.xlane.xlu0 %5566 }
0x20b0   : > { %v5568_v23 = vsub.f32 %v5561_v19, %v5567_v22 }
0x20b2   : > { %v5569_v24 = vmul.f32 1.442695, %v5568_v23 }
0x20b4   : > { %7351 = vpow2.f32 %v5569_v24 }
0x20c1   : > { %v7352_v25 = vpop.eup %7351 }
0x20c2   : > { %v5571_v26 = vsel %vm1807_vm3, %v7352_v25, 0.0 }
0x20c3   : > { %5572 = vadd.xlane.f32.xlu1 %v5571_v26 }
0x214c   : > { %v5573_v28 = vpop.xlane.xlu1 %5572 }
0x214d   : > { %7353 = vrcp.f32 %v5573_v28 }
0x215a   : > { %v7354_v10 = vpop.eup %7353 }
0x215b   : > { %v5575_v29 = vmul.f32 %v7354_v10, %v7352_v25 }
0x215d   : > { %6963 = vmatmul.mubr.msk.f32.vlgmr.msra.gmra.mxu0 %vm1807_vm3, %v5575_v29 }
0x215e   : > { %6978 = vmatprep.mubr.msk.f32.mxu0 %vm8169_vm0, %v8168_v1  ;;  %6971 = vmatpush3.xpose.msk.msra.mxu0 %vm1567_vm2, %v5766_v45 }
0x215f   : > { %6972 = vmatprep.subr.mxu0 %v8168_v1 }
0x2162   : > { %6973 = vmatpush3.xpose.msk.msra.mxu0 %vm1567_vm2, %v5765_v46 }
0x2163   : > { %6974 = vmatprep.subr.mxu0 %v8168_v1 }
0x221d   : > { %v5645_v31 = vpop.f32.mrf.mxu0 }
0x221e   : > { %6968 = vmatmul.mubr.msk.f32.vlgmr.msra.gmra.mxu1 %vm1807_vm3, %v5645_v31 }
0x221f   : > { %v6964_v32 = vpop.f32.mrf.mxu0  ;;  %6989 = vmatprep.mubr.msk.f32.mxu1 %vm8169_vm0, %v8168_v1  ;;  %6982 = vmatpush3.xpose.msk.msra.mxu1 %vm1567_vm2, %v5889_v57  ;;  %v8170_v57 = vmov 0  }
0x2220   : > { %6983 = vmatprep.subr.mxu1 %v8168_v1  ;;  %7313 = vset.pattern.permute.xlu1 %v8170_v57 }
0x2221   : > { %7314 = vset.pattern.permute.xlu0 %v8170_v57 }
0x2223   : > { %6984 = vmatpush3.xpose.msk.msra.mxu1 %vm1567_vm2, %v5888_v58  ;;  %v6027_v58 = vld [vmem:[#allocation2] sm:$0x1] }
0x2224   : > { %6985 = vmatprep.subr.mxu1 %v8168_v1 }
0x2227   : > { %6986 = vmatpush3.xpose.msk.msra.mxu1 %vm1567_vm2, %v5887_v59 }
0x2228   : > { %6987 = vmatprep.subr.mxu1 %v8168_v1 }
0x222b   : > { %6988 = vmatpush3.xpose.msk.msra.mxu1 %vm1567_vm2, %v5886_v60 }
0x22de   : > { %v5720_v33 = vpop.f32.mrf.mxu1 }
0x22df   : > { %v5724_v35 = vadd.f32 %v5720_v33, %v5238_v11 }
0x22e0   : > { %v6969_v36 = vpop.f32.mrf.mxu1 }
0x22e1   : > { %v5732_v37 = vadd.f32 %v6556_v34, %v5724_v35 }
0x22e3   : > { %v5733_v38 = vadd.f32 %v5732_v37, %v8882_v30  ;;  %v5764_v30 = vld [vmem:[%s9195_s23 + $0x8] sm:$0xff] }
0x22e4   : > { %6975 = vmatpush3.xpose.msk.msra.mxu0 %vm1567_vm2, %v5764_v30 }
0x22e5   : > { %v5736_v39 = vsel %vm1567_vm2, %v5733_v38, 0.0  ;;  %6976 = vmatprep.subr.mxu0 %v8168_v1 }
0x22e6   : > { %5737 = vadd.xlane.f32.xlu0 %v5736_v39 }
0x22e8   : > { %6977 = vmatpush3.xpose.msk.msra.mxu0 %vm1567_vm2, %v5763_v47 }
0x236f   : > { %v5738_v40 = vpop.xlane.xlu0 %5737 }
0x2370   : > { %v5739_v41 = vmul.f32 0.03125, %v5738_v40 }
0x2372   : > { %v5740_v42 = vsub.f32 %v5733_v38, %v5739_v41 }
0x2374   : > { %v5741_v43 = vmul.f32 %v5740_v42, %v5740_v42 }
0x2376   : > { %v5742_v44 = vsel %vm1567_vm2, %v5741_v43, 0.0 }
0x2377   : > { %5743 = vadd.xlane.f32.xlu1 %v5742_v44  ;;  %v6572_v44 = vld [vmem:[%s9201_s5] ss:$0 sm:$0xff]  ;;  %s8171_s5 = smov [#allocation41]  }
0x2378   : > { %s7993_s9 = sshll.u32 %s8171_s5, 4  ;;  %s7994_s9 = int_to_ptr.vmem [resolvable:$false] %s7993_s9 }
0x2379   : > { %s7995_s12 = scalar_lea.vmem %s7994_s9, 32  ;;  %p7996_p6 = scmp.lt.s32.totalorder %s9050_s6, %s7994_s9 }
0x2400   : > { %v5744_v48 = vpop.xlane.xlu1 %5743 }
0x2401   : > { %v5745_v49 = vmul.f32 0.03125, %v5744_v48 }
0x2403   : > { %v5746_v50 = vadd.f32 1e-05, %v5745_v49 }
0x2405   : > { %7355 = vrsqrt.f32 %v5746_v50 }
0x2412   : > { %v7356_v51 = vpop.eup %7355 }
0x2413   : > { %v5748_v53 = vmul.f32 %v7356_v51, %v5740_v42  ;;  %v6571_v42 = vld [vmem:[%s9200_s3] ss:$0 sm:$0xff]  ;;  %s6036_s3 = scalar_lea.sflag [#allocation5], %s8630_s13 }
0x2415   : > { %v5755_v55 = vmul.f32 %v6557_v52, %v5748_v53  ;;  %v6021_v53 = vld [vmem:[%s9202_s30] sm:$0x1]  ;;  %s7989_s30 = scalar_lea.vmem %s9050_s6, 16 }
0x2416   : > { %p7990_p1 = scmp.ne.s32.totalorder %s9050_s6, %s7989_s30  ;;  %p7997_p13 = scmp.lt.s32.totalorder %s7995_s12, %s7989_s30 }
0x2417   : > { %v5762_v56 = vadd.f32 %v6558_v54, %v5755_v55 }
0x2418   : > { %p7991_p2 = pnand %p7990_p1, %p9204_p0  ;;  %p7998_p4 = por %p7997_p13, %p7996_p6 }
0x2419   : > { %6979 = vmatmul.mubr.msk.f32.vlgmr.msra.gmra.mxu0 %vm1567_vm2, %v5762_v56 }
0x241a   : > { %p7992_p9 = pneg %p7991_p2 }
0x241c   : > { %p7999_p7 = pnand %p7998_p4, %p7992_p9 }
0x24d9   : > { %v5855_v62 = vpop.f32.mrf.mxu0 }
0x24da   : > { %v5856_v63 = vadd.f32 %v6559_v61, %v5855_v62 }
0x24db   : > { %v6980_v0 = vpop.f32.mrf.mxu0 }
0x24dc   : > { %v5860_v2 = vmul.f32 0.70710677, %v5856_v63  ;;  %v5859_v24 = vmul.f32 0.5, %v5856_v63 }
0x24de   : > { %v5861_v3 = vand.u32 2147483647, %v5860_v2  ;;  %vm5881_vm5 = vcmp.ge.f32.partialorder %v5860_v2, 0.0 }
0x24e0   : > { %v5862_v4 = vmul.f32 0.3275911, %v5861_v3  ;;  %v5875_v6 = vsub.f32 0.0, %v5861_v3 }
0x24e2   : > { %v5863_v5 = vadd.f32 1.0, %v5862_v4  ;;  %v5876_v7 = vmul.f32 %v5875_v6, %v5861_v3 }
0x24e4   : > { %7357 = vrcp.f32 %v5863_v5  ;;  %v5877_v11 = vmul.f32 1.442695, %v5876_v7 }
0x24e6   : > { %7359 = vpow2.f32 %v5877_v11 }
0x24f1   : > { %v7358_v8 = vpop.eup %7357 }
0x24f2   : > { %v5866_v9 = vmul.f32 1.0614054, %v7358_v8 }
0x24f3   : > { %v7360_v19 = vpop.eup %7359 }
0x24f4   : > { %v5867_v12 = vadd.f32 -1.4531521, %v5866_v9 }
0x24f6   : > { %v5868_v13 = vmul.f32 %v7358_v8, %v5867_v12 }
0x24f8   : > { %v5869_v1 = vadd.f32 1.4214138, %v5868_v13 }
0x24fa   : > { %v5870_v14 = vmul.f32 %v7358_v8, %v5869_v1 }
0x24fc   : > { %v5871_v15 = vadd.f32 -0.28449672, %v5870_v14 }
0x24fe   : > { %v5872_v16 = vmul.f32 %v7358_v8, %v5871_v15 }
0x2500   : > { %v5873_v17 = vadd.f32 0.2548296, %v5872_v16 }
0x2502   : > { %v5874_v18 = vmul.f32 %v7358_v8, %v5873_v17 }
0x2504   : > { %v5879_v20 = vmul.f32 %v7360_v19, %v5874_v18 }
0x2506   : > { %v5880_v21 = vsub.f32 1.0, %v5879_v20 }
0x2508   : > { %v5882_v22 = vsub.f32 0.0, %v5880_v21 }
0x250a   : > { %v5883_v23 = vsel %vm5881_vm5, %v5880_v21, %v5882_v22 }
0x250b   : > { %v5884_v25 = vadd.f32 1.0, %v5883_v23 }
0x250d   : > { %v5885_v26 = vmul.f32 %v5884_v25, %v5859_v24 }
0x250f   : > { %6990 = vmatmul.mubr.msk.f32.vlgmr.msra.gmra.mxu1 %vm1567_vm2, %v5885_v26 }
0x25cf   : > { %v5978_v28 = vpop.f32.mrf.mxu1 }
0x25d0   : > { %v5979_v10 = vadd.f32 %v6565_v27, %v5978_v28 }
0x25d1   : > { %v6991_v29 = vpop.f32.mrf.mxu1 }
0x25d2   : > { %v5982_v31 = vadd.f32 %v5979_v10, %v5856_v63 }
0x25d4   : > { %v5985_v32 = vsel %vm1567_vm2, %v5982_v31, 0.0 }
0x25d5   : > { %5986 = vadd.xlane.f32.xlu0 %v5985_v32 }
0x265e   : > { %v5987_v33 = vpop.xlane.xlu0 %5986 }
0x265f   : > { %v5988_v34 = vmul.f32 0.03125, %v5987_v33 }
0x2661   : > { %v5989_v35 = vsub.f32 %v5982_v31, %v5988_v34 }
0x2663   : > { %v5990_v36 = vmul.f32 %v5989_v35, %v5989_v35 }
0x2665   : > { %v5991_v37 = vsel %vm1567_vm2, %v5990_v36, 0.0 }
0x2666   : > { %5992 = vadd.xlane.f32.xlu1 %v5991_v37 }
0x26ef   : > { %v5993_v38 = vpop.xlane.xlu1 %5992 }
0x26f0   : > { %v5994_v39 = vmul.f32 0.03125, %v5993_v38 }
0x26f2   : > { %v5995_v40 = vadd.f32 1e-05, %v5994_v39 }
0x26f4   : > { %7361 = vrsqrt.f32 %v5995_v40 }
0x2701   : > { %v7362_v41 = vpop.eup %7361 }
0x2702   : > { %v5997_v43 = vmul.f32 %v7362_v41, %v5989_v35 }
0x2704   : > { %v6004_v45 = vmul.f32 %v6571_v42, %v5997_v43 }
0x2706   : > { %v6011_v46 = vadd.f32 %v6572_v44, %v6004_v45 }
0x2708   : > { %v6012_v30 = vsel %vm1567_vm2, %v6011_v46, 0.0 }
0x2709   : > { %v6013_v47 = vrot.slane %v6012_v30, 4 }
0x270b   : > { %v6014_v48 = vadd.f32 %v6013_v47, %v6012_v30 }
0x270d   : > { %v6015_v49 = vrot.slane %v6014_v48, 2 }
0x270f   : > { %v6016_v50 = vadd.f32 %v6015_v49, %v6014_v48 }
0x2711   : > { %v6017_v51 = vrot.slane %v6016_v50, 1 }
0x2713   : > { %v6018_v52 = vadd.f32 %v6017_v51, %v6016_v50 }
0x2715   : > { %v6020_v54 = vmul.f32 0.125, %v6018_v52 }
0x2717   : > { %v6022_v55 = vmul.f32 %v6021_v53, %v6020_v54 }
0x2719   : > { %v6024_v56 = vsel %vm6023_vm6, %v6022_v55, 0.0 }
0x271a   : > { %6025 = vadd.xlane.f32.xlu0 %v6024_v56 }
0x27a3   : > { %v6026_v59 = vpop.xlane.xlu0 %6025 }
0x27a4   : > { %v6028_v60 = vadd.f32 %v6027_v58, %v6026_v59 }
0x27a6   : > { %6031 = vperm.xlu1 %7313, %v6028_v60  }
0x2821   : > { %v6032_v61 = vpop.permute.xlu1 %6031 }
0x2822   : > { %6034 = vst [vmem:[%s1460_s26] sm:$0x1] %v6032_v61 }
0x2823   : > { %8002 = shalt.err (!%p7999_p7)
}
0x2824   : > { %s8003_s16 = scalar_lea.hbm %s6046_s22, 16  ;;  %s8007_s13 = scalar_lea.hbm %s9203_s11, 32 }
0x2825   : > { %p8004_p5 = scmp.ne.s32.totalorder %s6046_s22, %s8003_s16  ;;  %p8008_p10 = scmp.lt.s32.totalorder %s6046_s22, %s9203_s11 }
0x2826   : > { %p8009_p8 = scmp.lt.s32.totalorder %s8007_s13, %s8003_s16 }
0x2827   : > { %p8005_p3 = pnand %p8004_p5, %p9204_p0 }
0x2828   : > { %p8010_p12 = por %p8009_p8, %p8008_p10 }
0x2829   : > { %p8006_p11 = pneg %p8005_p3 }
0x282b   : > { %p8011_p1 = pnand %p8010_p12, %p8006_p11 }
0x282d   : > { %8014 = shalt.err (!%p8011_p1)
}
0x282e   : > { %7086 = dma.vmem_to_hbm [thread:$0]  (%p9204_p0), %s9050_s6, 16, %s6046_s22, %s6036_s3  }
0x282f PF: > { %s6060_s5 = sand.u32 1, %s8089_s0   ;;  %p9205_p2 = scmp.ne.s32.totalorder %s9162_s8, 0 }
0x2830   : > { %p9206_p9 = scmp.ge.s32.totalorder %s8101_s10, 2  ;;  %s6061_s9 = scalar_lea.sflag [#allocation5], %s6060_s5 }
0x2832   : > { %p7163_p6 = pnand %p9206_p9, %p9205_p2 }
0x2834   : > { %p7164_p13 = pneg %p7163_p6 }
0x2836   : > { %8084 = dma.done.wait (%p7164_p13), %s6061_s9, 16  }
0x2837   : > { %8086 = vsyncadd (%p7164_p13), %s6061_s9, 4294967280  ;;  %p102_p4 = scmp.ge.s32.totalorder %s8579_s2, 4   ;;  %s9207_s0 = smov %s8093_s17 }
0x2838   : > { %s9208_s17 = smov %s8097_s7  ;;  %s9209_s7 = smov %s8591_s4 }
0x2839   : > { %s9210_s10 = smov %s8579_s2  ;;  %104 = sbr.rel (!%p102_p4) target bundleno = 92 (0x5c), region = 384 }
0x283e   :  { %6065 = vsyncpa [#allocation4], 1 }
0x283f   :  { %6067 = vsyncpa [#allocation4 + $0x1], 1 }
0x2840   :  { %6068 = vsyncpa [#allocation7], 1 }
0x2841   :  { %6069 = vsyncpa [#allocation10], 1 }
0x2842   :  { %6070 = vsyncpa [#allocation13], 1 }
0x2843   :  { %6071 = vsyncpa [#allocation16], 1 }
0x2844   :  { %6072 = vsyncpa [#allocation19], 1 }
0x2845   :  { %6073 = vsyncpa [#allocation22], 1 }
0x2846   :  { %6074 = vsyncpa [#allocation25], 1 }
0x2847   :  { %6075 = vsyncpa [#allocation28], 1 }
0x2848   :  { %6076 = vsyncpa [#allocation31], 1 }
0x2849   :  { %6077 = vsyncpa [#allocation34], 1 }
0x284a   :  { %6078 = vsyncpa [#allocation37], 1 }
0x284b   :  { %6079 = vsyncpa [#allocation40], 1 }
0x284c   :  { %6080 = vsyncpa [#allocation5], 1 }
0x284d   :  { %6082 = vsyncpa [#allocation5 + $0x1], 1 }

</bundles_post_ra>
